<compile_context>
chip_gen: v7x
topology: tpu7x:2x2x1
jax: 0.10.0
libtpu: 0.0.40
codegen_flags: <defaults>
</compile_context>

<pallas_src>
import math
from functools import partial

import jax
import jax.numpy as jnp
import numpy as np
from jax.experimental import pallas as pl
from jax.experimental.pallas import tpu as pltpu


# ----------------------------- in-kernel helpers -----------------------------

def _layernorm(x, g, b, eps=1e-5):
    mu = jnp.mean(x, axis=-1, keepdims=True)
    var = jnp.mean((x - mu) ** 2, axis=-1, keepdims=True)
    return (x - mu) * jax.lax.rsqrt(var + eps) * g + b


def _erf_poly(x):
    # Abramowitz & Stegun 7.1.26 rational approximation, |err| <= 1.5e-7.
    a1, a2, a3, a4, a5 = 0.254829592, -0.284496736, 1.421413741, -1.453152027, 1.061405429
    p = 0.3275911
    ax = jnp.abs(x)
    t = 1.0 / (1.0 + p * ax)
    poly = ((((a5 * t + a4) * t + a3) * t + a2) * t + a1) * t
    y = 1.0 - poly * jnp.exp(-ax * ax)
    return jnp.where(x >= 0, y, -y)


def _gelu_exact(x):
    # PyTorch nn.GELU() default = exact erf GELU.
    return 0.5 * x * (1.0 + _erf_poly(x * (1.0 / math.sqrt(2.0))))


# ------------------------------- Pallas kernel --------------------------------

def _resblock_kernel(x_ref, mask_ref,
                     ln1g_ref, ln1b_ref,
                     wqkv_ref, bqkv_ref, wo_ref, bo_ref,
                     ln2g_ref, ln2b_ref,
                     wfc_ref, bfc_ref, wpr_ref, bpr_ref,
                     lnfg_ref, lnfb_ref,
                     o_ref,
                     qkv_ref, ctx_ref, h2_ref,
                     *, num_heads, batch, apply_final):
    t = pl.program_id(0)                  # MLP hidden-dim tile index (only grid axis)
    BS, D = x_ref.shape
    S = BS // batch
    hd = D // num_heads
    bf16 = jnp.bfloat16

    # ---- phase 1 (t == 0): attention branch + residual; cache LN2(x) ----------
    @pl.when(t == 0)
    def _attention_phase():
        x = x_ref[...]                                               # (B*S, D) f32
        h1 = _layernorm(x, ln1g_ref[...], ln1b_ref[...]).astype(bf16)
        # Fused QKV projection (Q columns/bias pre-scaled by 1/sqrt(hd) at prep).
        qkv_ref[...] = jnp.dot(h1, wqkv_ref[...],
                               preferred_element_type=jnp.float32) + bqkv_ref[...]
        mask = mask_ref[...]                                         # (S, S) additive

        # Static (batch, head) loop: fully unrolled, MXU overlaps softmax work.
        for b in range(batch):
            r0 = b * S
            for h in range(num_heads):
                c0 = h * hd
                q = qkv_ref[r0:r0 + S, c0:c0 + hd].astype(bf16)
                k = qkv_ref[r0:r0 + S, D + c0:D + c0 + hd].astype(bf16)
                v = qkv_ref[r0:r0 + S, 2 * D + c0:2 * D + c0 + hd].astype(bf16)
                s = jax.lax.dot_general(q, k, (((1,), (1,)), ((), ())),
                                        preferred_element_type=jnp.float32) + mask
                s = s - jnp.max(s, axis=-1, keepdims=True)
                p = jnp.exp(s)
                p = p * pl.reciprocal(jnp.sum(p, axis=-1, keepdims=True), approx=False)
                oh = jnp.dot(p.astype(bf16), v, preferred_element_type=jnp.float32)
                ctx_ref[r0:r0 + S, c0:c0 + hd] = oh        # head ctx at static lanes

        # Single fused (B*S, D) @ (D, D) output projection over all heads.
        attn = jnp.dot(ctx_ref[...].astype(bf16), wo_ref[...],
                       preferred_element_type=jnp.float32) + bo_ref[...]
        x_attn = x + attn
        h2_ref[...] = _layernorm(x_attn, ln2g_ref[...], ln2b_ref[...]).astype(bf16)
        # Output block doubles as MLP accumulator; fold residual + MLP out bias.
        o_ref[...] = x_attn + bpr_ref[...]

    # ---- phase 2 (every t): one streamed tile of the MLP hidden dimension -----
    hid = jnp.dot(h2_ref[...], wfc_ref[...],
                  preferred_element_type=jnp.float32) + bfc_ref[...]
    hid = _gelu_exact(hid)
    o_ref[...] += jnp.dot(hid.astype(bf16), wpr_ref[...],
                          preferred_element_type=jnp.float32)

    # ---- fused ln_final epilogue on the last executed resblock ----------------
    if apply_final:
        @pl.when(t == pl.num_programs(0) - 1)
        def _ln_final():
            o_ref[...] = _layernorm(o_ref[...], lnfg_ref[...], lnfb_ref[...])


# ------------------------------- pallas_call glue ------------------------------

def _vmem_cap_bytes():
    try:
        cap = int(pltpu.get_tpu_info().vmem_capacity_bytes)
    except Exception:
        cap = 64 * 1024 * 1024            # conservative (v7x-sized) fallback
    return (cap * 7) // 8                 # leave headroom for internal scratch


def _pick_mlp_tile(hidden, vmem_cap):
    max_tile = 2048 if vmem_cap >= (96 << 20) else 1024   # smaller tiles on v7x
    for t in (2048, 1024, 512, 256, 128):
        if t <= max_tile and hidden % t == 0:
            return t
    return hidden


def _vmem_limit_bytes(BS, S, D, hidden, mlp_tile, vmem_cap):
    f32, bf = 4, 2
    est = 0
    est += 2 * 2 * BS * D * f32                        # x-in + out blocks (2-buffered)
    est += 2 * (D * 3 * D + D * D) * bf                # wqkv + wo (default 2-buffered)
    est += 2 * 2 * D * mlp_tile * bf                   # streamed wfc / wpr tiles
    est += 2 * (S * S + 12 * D + 4 * hidden) * f32     # mask, LN params, biases
    est += BS * 4 * D * f32 + BS * D * bf              # qkv / ctx / h2 scratches
    est = int(est * 1.25) + (2 << 20)
    return max(min(est, vmem_cap), 24 << 20)


def resblock_pallas(x2d, attn_mask, blk, lnf_g, lnf_b, *,
                    num_heads, batch, mlp_tile, apply_final):
    """One CLIP transformer resblock. x2d: (B*S_pad, D) float32 (batch folded in)."""
    BS, D = x2d.shape
    S = BS // batch
    hidden = blk["wfc"].shape[1]
    assert hidden % mlp_tile == 0
    n_t = hidden // mlp_tile

    consts = [blk["ln1_g"], blk["ln1_b"], blk["wqkv"], blk["bqkv"],
              blk["wo"], blk["bo"], blk["ln2_g"], blk["ln2_b"]]
    tail_consts = [blk["bpr"], lnf_g, lnf_b]

    def _const(a):                                    # full 2-D block, constant index
        return pl.BlockSpec(a.shape, lambda t: (0, 0))

    in_specs = ([pl.BlockSpec((BS, D), lambda t: (0, 0)),          # x (all batches)
                 _const(attn_mask)]
                + [_const(a) for a in consts]
                + [pl.BlockSpec((D, mlp_tile), lambda t: (0, t)),  # wfc tile (stream)
                   pl.BlockSpec((1, mlp_tile), lambda t: (0, t)),  # bfc tile
                   pl.BlockSpec((mlp_tile, D), lambda t: (t, 0))]  # wpr tile (stream)
                + [_const(a) for a in tail_consts])

    hd = D // num_heads
    flops = int(2 * BS * D * 3 * D                    # fused qkv
                + 4 * batch * num_heads * S * S * hd  # scores + p@v
                + 2 * BS * D * D                      # output projection
                + 4 * BS * D * hidden)                # MLP
    transc = int(batch * num_heads * S * S + 2 * BS * hidden)
    wbytes = (blk["wqkv"].size + blk["wo"].size + blk["wfc"].size + blk["wpr"].size) * 2
    bytes_accessed = int(wbytes + 3 * BS * D * 4 + attn_mask.size * 4)

    kernel = partial(_resblock_kernel, num_heads=num_heads, batch=batch,
                     apply_final=apply_final)
    vmem_cap = _vmem_cap_bytes()
    return pl.pallas_call(
        kernel,
        out_shape=jax.ShapeDtypeStruct((BS, D), jnp.float32),
        grid=(n_t,),
        in_specs=in_specs,
        out_specs=pl.BlockSpec((BS, D), lambda t: (0, 0)),
        scratch_shapes=[pltpu.VMEM((BS, 3 * D), jnp.float32),   # fused qkv
                        pltpu.VMEM((BS, D), jnp.float32),       # head contexts
                        pltpu.VMEM((BS, D), jnp.bfloat16)],     # cached LN2 acts
        compiler_params=pltpu.CompilerParams(
            dimension_semantics=("arbitrary",),
            vmem_limit_bytes=_vmem_limit_bytes(BS, S, D, hidden, mlp_tile, vmem_cap)),
        cost_estimate=pl.CostEstimate(flops=flops, transcendentals=transc,
                                      bytes_accessed=bytes_accessed),
    )(x2d, attn_mask, *consts, blk["wfc"], blk["bfc"], blk["wpr"], *tail_consts)


# -------------------------- parameter construction ----------------------------

def make_torch_like_params(key, *, vocab, width, num_layers, max_length):
    """Random parameters in the PyTorch / open_clip layouts (f32)."""
    D = width
    ks = iter(jax.random.split(key, 2 + 8 * num_layers))
    nrm = lambda shape, s: jax.random.normal(next(ks), shape, jnp.float32) * s
    params = {
        "token_embedding": nrm((vocab, D), 0.02),
        "positional_embedding": nrm((max_length, D), 0.01),
        "ln_final_g": jnp.ones((D,), jnp.float32),
        "ln_final_b": jnp.zeros((D,), jnp.float32),
        "blocks": [],
    }
    for _ in range(num_layers):
        params["blocks"].append({
            "ln1_g": jnp.ones((D,), jnp.float32),
            "ln1_b": jnp.zeros((D,), jnp.float32),
            "in_proj_w": nrm((3 * D, D), 0.02),       # (out, in) PyTorch layout
            "in_proj_b": nrm((3 * D,), 0.01),
            "out_proj_w": nrm((D, D), 0.02),
            "out_proj_b": nrm((D,), 0.01),
            "ln2_g": jnp.ones((D,), jnp.float32),
            "ln2_b": jnp.zeros((D,), jnp.float32),
            "c_fc_w": nrm((4 * D, D), 0.02),
            "c_fc_b": nrm((4 * D,), 0.01),
            "c_proj_w": nrm((D, 4 * D), 0.02),
            "c_proj_b": nrm((D,), 0.01),
        })
    return params


def prepare_params(raw, *, num_heads):
    """Frozen-weight transform: fused QKV layout, Q pre-scale, transpose, bf16."""
    D = raw["token_embedding"].shape[1]
    hd = D // num_heads
    scale = 1.0 / math.sqrt(hd)
    bf, f32 = jnp.bfloat16, jnp.float32
    out = {
        "token_embedding": raw["token_embedding"].astype(bf),
        "positional_embedding": raw["positional_embedding"].astype(bf),
        "ln_final_g": raw["ln_final_g"].reshape(1, D).astype(f32),
        "ln_final_b": raw["ln_final_b"].reshape(1, D).astype(f32),
        "blocks": [],
    }
    for b in raw["blocks"]:
        wq_t = b["in_proj_w"][:D].T * scale           # (D_in, D_out), Q pre-scaled
        wk_t = b["in_proj_w"][D:2 * D].T
        wv_t = b["in_proj_w"][2 * D:].T
        bq = b["in_proj_b"][:D] * scale
        bk = b["in_proj_b"][D:2 * D]
        bv = b["in_proj_b"][2 * D:]
        out["blocks"].append({
            "ln1_g": b["ln1_g"].reshape(1, D).astype(f32),
            "ln1_b": b["ln1_b"].reshape(1, D).astype(f32),
            "wqkv": jnp.concatenate([wq_t, wk_t, wv_t], axis=1).astype(bf),  # (D, 3D)
            "bqkv": jnp.concatenate([bq, bk, bv]).reshape(1, 3 * D).astype(f32),
            "wo": b["out_proj_w"].T.astype(bf),                              # (D, D)
            "bo": b["out_proj_b"].reshape(1, D).astype(f32),
            "ln2_g": b["ln2_g"].reshape(1, D).astype(f32),
            "ln2_b": b["ln2_b"].reshape(1, D).astype(f32),
            "wfc": b["c_fc_w"].T.astype(bf),                                 # (D, 4D)
            "bfc": b["c_fc_b"].reshape(1, -1).astype(f32),
            "wpr": b["c_proj_w"].T.astype(bf),                               # (4D, D)
            "bpr": b["c_proj_b"].reshape(1, D).astype(f32),
        })
    return out


# ------------------------------ full forward pass ------------------------------

def frozen_openclip_embedder_forward(tokens, params, *, num_heads, layer="last",
                                     mlp_tile=None):
    """tokens: (B, max_length) int32 token ids. Returns (B, max_length, width)."""
    assert layer in ("last", "penultimate")
    layer_idx = 0 if layer == "last" else 1

    # TODO(synk): open_clip.tokenize (BPE tokenizer) has no Pallas/JAX equivalent;
    # token ids are taken directly as input.
    x = jnp.take(params["token_embedding"], tokens, axis=0).astype(jnp.float32)
    x = x + params["positional_embedding"][None, :, :].astype(jnp.float32)
    B, S, D = x.shape

    # Pad rows only to the sublane multiple (8); padded key columns are masked.
    S_pad = ((S + 7) // 8) * 8
    x = jnp.pad(x, ((0, 0), (0, S_pad - S), (0, 0)))
    x2 = x.reshape(B * S_pad, D)

    idx = jnp.arange(S_pad)
    banned = (idx[None, :] > idx[:, None]) | (idx[None, :] >= S)   # causal + key pad
    attn_mask = jnp.where(banned, -1e9, 0.0).astype(jnp.float32)

    vmem_cap = _vmem_cap_bytes()
    hidden = params["blocks"][0]["wfc"].shape[1]
    if mlp_tile is None:
        mlp_tile = _pick_mlp_tile(hidden, vmem_cap)

    n_run = len(params["blocks"]) - layer_idx
    for li, blk in enumerate(params["blocks"][:n_run]):
        x2 = resblock_pallas(x2, attn_mask, blk,
                             params["ln_final_g"], params["ln_final_b"],
                             num_heads=num_heads, batch=B, mlp_tile=mlp_tile,
                             apply_final=(li == n_run - 1))
    return x2.reshape(B, S_pad, D)[:, :S, :]


# ------------------------------ pure-JAX reference -----------------------------

def _ref_forward(tokens, params, *, num_heads, layer="last"):
    """Straightforward JAX implementation with the same bf16 weight quantization."""
    layer_idx = 0 if layer == "last" else 1
    bf = jnp.bfloat16
    x = jnp.take(params["token_embedding"], tokens, axis=0).astype(jnp.float32)
    x = x + params["positional_embedding"][None, :, :].astype(jnp.float32)
    B, S, D = x.shape
    H = num_heads
    hd = D // H
    mask = jnp.where(jnp.arange(S)[None, :] > jnp.arange(S)[:, None], -1e9, 0.0)

    def ln(v, g, b, eps=1e-5):
        mu = jnp.mean(v, -1, keepdims=True)
        var = jnp.mean((v - mu) ** 2, -1, keepdims=True)
        return (v - mu) * jax.lax.rsqrt(var + eps) * g + b

    n_run = len(params["blocks"]) - layer_idx
    for bp in params["blocks"][:n_run]:
        h1 = ln(x, bp["ln1_g"], bp["ln1_b"]).astype(bf)
        qkv = jnp.einsum("bsd,de->bse", h1, bp["wqkv"],
                         preferred_element_type=jnp.float32) + bp["bqkv"]
        q, k, v = qkv[..., :D], qkv[..., D:2 * D], qkv[..., 2 * D:]
        split = lambda a: a.reshape(B, S, H, hd).transpose(0, 2, 1, 3).astype(bf)
        q, k, v = split(q), split(k), split(v)
        s = jnp.einsum("bhqe,bhke->bhqk", q, k,
                       preferred_element_type=jnp.float32) + mask
        a = jax.nn.softmax(s, axis=-1)
        o = jnp.einsum("bhqk,bhke->bhqe", a.astype(bf), v,
                       preferred_element_type=jnp.float32)
        ctx = o.transpose(0, 2, 1, 3).reshape(B, S, D)
        attn = jnp.einsum("bsd,de->bse", ctx.astype(bf), bp["wo"],
                          preferred_element_type=jnp.float32) + bp["bo"]
        x = x + attn
        h2 = ln(x, bp["ln2_g"], bp["ln2_b"]).astype(bf)
        hid = jnp.einsum("bsd,dm->bsm", h2, bp["wfc"],
                         preferred_element_type=jnp.float32) + bp["bfc"]
        hid = 0.5 * hid * (1.0 + jax.lax.erf(hid / math.sqrt(2.0)))
        x = x + jnp.einsum("bsm,md->bsd", hid.astype(bf), bp["wpr"],
                           preferred_element_type=jnp.float32) + bp["bpr"]
    return ln(x, params["ln_final_g"], params["ln_final_b"])


# ----------------------------------- main --------------------------------------

# Small synthetic config (real ViT-H-14 text tower: width=1024, heads=16,
# layers=24, vocab=49408, max_length=77 — scaled down here per instructions).
MAX_LENGTH = 8
WIDTH = 64
NUM_HEADS = 4
NUM_LAYERS = 2
VOCAB = 1000
BATCH = 2

if __name__ == "__main__":
    key = jax.random.PRNGKey(0)
    k_params, k_tokens = jax.random.split(key)

    raw = make_torch_like_params(k_params, vocab=VOCAB, width=WIDTH,
                                 num_layers=NUM_LAYERS, max_length=MAX_LENGTH)
    params = prepare_params(raw, num_heads=NUM_HEADS)

    tokens = jax.random.randint(k_tokens, (BATCH, MAX_LENGTH), 0, VOCAB, jnp.int32)

    fwd = jax.jit(partial(frozen_openclip_embedder_forward,
                          num_heads=NUM_HEADS, layer="last", mlp_tile=128))
    z = jax.block_until_ready(fwd(tokens, params))

    z_ref = _ref_forward(tokens, params, num_heads=NUM_HEADS, layer="last")
    np.testing.assert_allclose(np.asarray(z), np.asarray(z_ref, dtype=np.float32),
                               rtol=5e-3, atol=5e-3)

    assert z.shape == (BATCH, MAX_LENGTH, WIDTH)
    print("KERNEL_OK")
</pallas_src>

<mosaic_0001>
module attributes {stable_mosaic.version = 11 : i64} {
  func.func @_resblock_kernel(%arg0: i32, %arg1: memref<16x64xf32, #tpu.memory_space<vmem>>, %arg2: memref<8x8xf32, #tpu.memory_space<vmem>>, %arg3: memref<1x64xf32, #tpu.memory_space<vmem>>, %arg4: memref<1x64xf32, #tpu.memory_space<vmem>>, %arg5: memref<64x192xbf16, #tpu.memory_space<vmem>>, %arg6: memref<1x192xf32, #tpu.memory_space<vmem>>, %arg7: memref<64x64xbf16, #tpu.memory_space<vmem>>, %arg8: memref<1x64xf32, #tpu.memory_space<vmem>>, %arg9: memref<1x64xf32, #tpu.memory_space<vmem>>, %arg10: memref<1x64xf32, #tpu.memory_space<vmem>>, %arg11: memref<64x128xbf16, #tpu.memory_space<vmem>>, %arg12: memref<1x128xf32, #tpu.memory_space<vmem>>, %arg13: memref<128x64xbf16, #tpu.memory_space<vmem>>, %arg14: memref<1x64xf32, #tpu.memory_space<vmem>>, %arg15: memref<1x64xf32, #tpu.memory_space<vmem>>, %arg16: memref<1x64xf32, #tpu.memory_space<vmem>>, %arg17: memref<16x64xf32, #tpu.memory_space<vmem>>, %arg18: memref<16x192xf32, #tpu.memory_space<vmem>>, %arg19: memref<16x64xf32, #tpu.memory_space<vmem>>, %arg20: memref<16x64xbf16, #tpu.memory_space<vmem>>) attributes {dimension_semantics = [#tpu.dimension_semantics<arbitrary>], iteration_bounds = array<i64: 2>, scalar_prefetch = 0 : i64, scratch_operands = 3 : i64, tpu.core_type = #tpu.core_type<tc>, window_params = [{pipeline_mode = #tpu.pipeline_mode<synchronous>, transform_indices = @transform_0, window_bounds = array<i64: 16, 64>}, {pipeline_mode = #tpu.pipeline_mode<synchronous>, transform_indices = @transform_1, window_bounds = array<i64: 8, 8>}, {pipeline_mode = #tpu.pipeline_mode<synchronous>, transform_indices = @transform_2, window_bounds = array<i64: 1, 64>}, {pipeline_mode = #tpu.pipeline_mode<synchronous>, transform_indices = @transform_3, window_bounds = array<i64: 1, 64>}, {pipeline_mode = #tpu.pipeline_mode<synchronous>, transform_indices = @transform_4, window_bounds = array<i64: 64, 192>}, {pipeline_mode = #tpu.pipeline_mode<synchronous>, transform_indices = @transform_5, window_bounds = array<i64: 1, 192>}, {pipeline_mode = #tpu.pipeline_mode<synchronous>, transform_indices = @transform_6, window_bounds = array<i64: 64, 64>}, {pipeline_mode = #tpu.pipeline_mode<synchronous>, transform_indices = @transform_7, window_bounds = array<i64: 1, 64>}, {pipeline_mode = #tpu.pipeline_mode<synchronous>, transform_indices = @transform_8, window_bounds = array<i64: 1, 64>}, {pipeline_mode = #tpu.pipeline_mode<synchronous>, transform_indices = @transform_9, window_bounds = array<i64: 1, 64>}, {transform_indices = @transform_10, window_bounds = array<i64: 64, 128>}, {transform_indices = @transform_11, window_bounds = array<i64: 1, 128>}, {transform_indices = @transform_12, window_bounds = array<i64: 128, 64>}, {pipeline_mode = #tpu.pipeline_mode<synchronous>, transform_indices = @transform_13, window_bounds = array<i64: 1, 64>}, {pipeline_mode = #tpu.pipeline_mode<synchronous>, transform_indices = @transform_14, window_bounds = array<i64: 1, 64>}, {pipeline_mode = #tpu.pipeline_mode<synchronous>, transform_indices = @transform_15, window_bounds = array<i64: 1, 64>}, {pipeline_mode = #tpu.pipeline_mode<synchronous>, transform_indices = @transform_16, window_bounds = array<i64: 16, 64>}]} {
    %c0_i32 = arith.constant 0 : i32
    %0 = arith.cmpi eq, %arg0, %c0_i32 : i32
    %1 = arith.extui %0 : i1 to i32
    %c0_i32_0 = arith.constant 0 : i32
    %2 = arith.cmpi ne, %1, %c0_i32_0 : i32
    scf.if %2 {
      %c0_28 = arith.constant 0 : index
      %c0_29 = arith.constant 0 : index
      %55 = vector.load %arg1[%c0_28, %c0_29] : memref<16x64xf32, #tpu.memory_space<vmem>>, vector<16x64xf32>
      %c0_30 = arith.constant 0 : index
      %c0_31 = arith.constant 0 : index
      %56 = vector.load %arg3[%c0_30, %c0_31] : memref<1x64xf32, #tpu.memory_space<vmem>>, vector<1x64xf32>
      %c0_32 = arith.constant 0 : index
      %c0_33 = arith.constant 0 : index
      %57 = vector.load %arg4[%c0_32, %c0_33] : memref<1x64xf32, #tpu.memory_space<vmem>>, vector<1x64xf32>
      %cst_34 = arith.constant dense<0.000000e+00> : vector<16xf32>
      %58 = vector.multi_reduction <add>, %55, %cst_34 [1] : vector<16x64xf32> to vector<16xf32>
      %59 = vector.shape_cast %58 : vector<16xf32> to vector<16x1xf32>
      %cst_35 = arith.constant 6.400000e+01 : f32
      %60 = vector.broadcast %cst_35 : f32 to vector<16x1xf32>
      %61 = arith.divf %59, %60 : vector<16x1xf32>
      %62 = vector.broadcast %61 : vector<16x1xf32> to vector<16x64xf32>
      %63 = arith.subf %55, %62 : vector<16x64xf32>
      %64 = arith.mulf %63, %63 : vector<16x64xf32>
      %cst_36 = arith.constant dense<0.000000e+00> : vector<16xf32>
      %65 = vector.multi_reduction <add>, %64, %cst_36 [1] : vector<16x64xf32> to vector<16xf32>
      %66 = vector.shape_cast %65 : vector<16xf32> to vector<16x1xf32>
      %cst_37 = arith.constant 6.400000e+01 : f32
      %67 = vector.broadcast %cst_37 : f32 to vector<16x1xf32>
      %68 = arith.divf %66, %67 : vector<16x1xf32>
      %69 = vector.broadcast %61 : vector<16x1xf32> to vector<16x64xf32>
      %70 = arith.subf %55, %69 : vector<16x64xf32>
      %cst_38 = arith.constant 9.99999974E-6 : f32
      %71 = vector.broadcast %cst_38 : f32 to vector<16x1xf32>
      %72 = arith.addf %68, %71 : vector<16x1xf32>
      %73 = math.rsqrt %72 : vector<16x1xf32>
      %74 = vector.broadcast %73 : vector<16x1xf32> to vector<16x64xf32>
      %75 = arith.mulf %70, %74 : vector<16x64xf32>
      %76 = vector.broadcast %56 : vector<1x64xf32> to vector<16x64xf32>
      %77 = arith.mulf %75, %76 : vector<16x64xf32>
      %78 = vector.broadcast %57 : vector<1x64xf32> to vector<16x64xf32>
      %79 = arith.addf %77, %78 : vector<16x64xf32>
      %80 = arith.truncf %79 : vector<16x64xf32> to vector<16x64xbf16>
      %c0_39 = arith.constant 0 : index
      %c0_40 = arith.constant 0 : index
      %81 = vector.load %arg5[%c0_39, %c0_40] : memref<64x192xbf16, #tpu.memory_space<vmem>>, vector<64x192xbf16>
      %cst_41 = arith.constant dense<0.000000e+00> : vector<16x192xf32>
      %82 = tpu.matmul %80, %81, %cst_41 {dimension_numbers = #tpu.dot_dimension_numbers<[1], [0], [0], [1], [0, 0, 1, 1], [], []>} : vector<16x64xbf16>, vector<64x192xbf16>, vector<16x192xf32> -> vector<16x192xf32>
      %c0_42 = arith.constant 0 : index
      %c0_43 = arith.constant 0 : index
      %83 = vector.load %arg6[%c0_42, %c0_43] : memref<1x192xf32, #tpu.memory_space<vmem>>, vector<1x192xf32>
      %84 = vector.broadcast %83 : vector<1x192xf32> to vector<16x192xf32>
      %85 = arith.addf %82, %84 : vector<16x192xf32>
      %c0_44 = arith.constant 0 : index
      %c0_45 = arith.constant 0 : index
      %86 = vector.load %arg18[%c0_44, %c0_45] : memref<16x192xf32, #tpu.memory_space<vmem>>, vector<16x192xf32>
      tpu.vector_store %arg18[%c0_44, %c0_45], %85 {strides = array<i32>} : memref<16x192xf32, #tpu.memory_space<vmem>>, vector<16x192xf32>,
      %c0_46 = arith.constant 0 : index
      %c0_47 = arith.constant 0 : index
      %87 = vector.load %arg2[%c0_46, %c0_47] : memref<8x8xf32, #tpu.memory_space<vmem>>, vector<8x8xf32>
      %c0_48 = arith.constant 0 : index
      %c0_49 = arith.constant 0 : index
      %88 = vector.load %arg18[%c0_48, %c0_49] : memref<16x192xf32, #tpu.memory_space<vmem>>, vector<8x16xf32>
      %89 = arith.truncf %88 : vector<8x16xf32> to vector<8x16xbf16>
      %c0_50 = arith.constant 0 : index
      %c64 = arith.constant 64 : index
      %90 = vector.load %arg18[%c0_50, %c64] : memref<16x192xf32, #tpu.memory_space<vmem>>, vector<8x16xf32>
      %91 = arith.truncf %90 : vector<8x16xf32> to vector<8x16xbf16>
      %c0_51 = arith.constant 0 : index
      %c128 = arith.constant 128 : index
      %92 = vector.load %arg18[%c0_51, %c128] : memref<16x192xf32, #tpu.memory_space<vmem>>, vector<8x16xf32>
      %93 = arith.truncf %92 : vector<8x16xf32> to vector<8x16xbf16>
      %cst_52 = arith.constant dense<0.000000e+00> : vector<8x8xf32>
      %94 = tpu.matmul %89, %91, %cst_52 {dimension_numbers = #tpu.dot_dimension_numbers<[1], [1], [0], [0], [0, 0, 1, 0], [], []>} : vector<8x16xbf16>, vector<8x16xbf16>, vector<8x8xf32> -> vector<8x8xf32>
      %95 = arith.addf %94, %87 : vector<8x8xf32>
      %cst_53 = arith.constant dense<0xFF800000> : vector<8xf32>
      %96 = vector.multi_reduction <maximumf>, %95, %cst_53 [1] : vector<8x8xf32> to vector<8xf32>
      %97 = vector.shape_cast %96 : vector<8xf32> to vector<8x1xf32>
      %98 = vector.broadcast %97 : vector<8x1xf32> to vector<8x8xf32>
      %99 = arith.subf %95, %98 : vector<8x8xf32>
      %100 = math.exp %99 : vector<8x8xf32>
      %cst_54 = arith.constant dense<0.000000e+00> : vector<8xf32>
      %101 = vector.multi_reduction <add>, %100, %cst_54 [1] : vector<8x8xf32> to vector<8xf32>
      %102 = vector.shape_cast %101 : vector<8xf32> to vector<8x1xf32>
      %103 = tpu.reciprocal %102 : vector<8x1xf32> -> vector<8x1xf32>
      %104 = vector.broadcast %103 : vector<8x1xf32> to vector<8x8xf32>
      %105 = arith.mulf %100, %104 : vector<8x8xf32>
      %106 = arith.truncf %105 : vector<8x8xf32> to vector<8x8xbf16>
      %cst_55 = arith.constant dense<0.000000e+00> : vector<8x16xf32>
      %107 = tpu.matmul %106, %93, %cst_55 {dimension_numbers = #tpu.dot_dimension_numbers<[1], [0], [0], [1], [0, 0, 1, 1], [], []>} : vector<8x8xbf16>, vector<8x16xbf16>, vector<8x16xf32> -> vector<8x16xf32>
      %c0_56 = arith.constant 0 : index
      %c0_57 = arith.constant 0 : index
      %108 = vector.load %arg19[%c0_56, %c0_57] : memref<16x64xf32, #tpu.memory_space<vmem>>, vector<8x16xf32>
      tpu.vector_store %arg19[%c0_56, %c0_57], %107 {strides = array<i32>} : memref<16x64xf32, #tpu.memory_space<vmem>>, vector<8x16xf32>,
      %c0_58 = arith.constant 0 : index
      %c16 = arith.constant 16 : index
      %109 = vector.load %arg18[%c0_58, %c16] : memref<16x192xf32, #tpu.memory_space<vmem>>, vector<8x16xf32>
      %110 = arith.truncf %109 : vector<8x16xf32> to vector<8x16xbf16>
      %c0_59 = arith.constant 0 : index
      %c80 = arith.constant 80 : index
      %111 = vector.load %arg18[%c0_59, %c80] : memref<16x192xf32, #tpu.memory_space<vmem>>, vector<8x16xf32>
      %112 = arith.truncf %111 : vector<8x16xf32> to vector<8x16xbf16>
      %c0_60 = arith.constant 0 : index
      %c144 = arith.constant 144 : index
      %113 = vector.load %arg18[%c0_60, %c144] : memref<16x192xf32, #tpu.memory_space<vmem>>, vector<8x16xf32>
      %114 = arith.truncf %113 : vector<8x16xf32> to vector<8x16xbf16>
      %cst_61 = arith.constant dense<0.000000e+00> : vector<8x8xf32>
      %115 = tpu.matmul %110, %112, %cst_61 {dimension_numbers = #tpu.dot_dimension_numbers<[1], [1], [0], [0], [0, 0, 1, 0], [], []>} : vector<8x16xbf16>, vector<8x16xbf16>, vector<8x8xf32> -> vector<8x8xf32>
      %116 = arith.addf %115, %87 : vector<8x8xf32>
      %cst_62 = arith.constant dense<0xFF800000> : vector<8xf32>
      %117 = vector.multi_reduction <maximumf>, %116, %cst_62 [1] : vector<8x8xf32> to vector<8xf32>
      %118 = vector.shape_cast %117 : vector<8xf32> to vector<8x1xf32>
      %119 = vector.broadcast %118 : vector<8x1xf32> to vector<8x8xf32>
      %120 = arith.subf %116, %119 : vector<8x8xf32>
      %121 = math.exp %120 : vector<8x8xf32>
      %cst_63 = arith.constant dense<0.000000e+00> : vector<8xf32>
      %122 = vector.multi_reduction <add>, %121, %cst_63 [1] : vector<8x8xf32> to vector<8xf32>
      %123 = vector.shape_cast %122 : vector<8xf32> to vector<8x1xf32>
      %124 = tpu.reciprocal %123 : vector<8x1xf32> -> vector<8x1xf32>
      %125 = vector.broadcast %124 : vector<8x1xf32> to vector<8x8xf32>
      %126 = arith.mulf %121, %125 : vector<8x8xf32>
      %127 = arith.truncf %126 : vector<8x8xf32> to vector<8x8xbf16>
      %cst_64 = arith.constant dense<0.000000e+00> : vector<8x16xf32>
      %128 = tpu.matmul %127, %114, %cst_64 {dimension_numbers = #tpu.dot_dimension_numbers<[1], [0], [0], [1], [0, 0, 1, 1], [], []>} : vector<8x8xbf16>, vector<8x16xbf16>, vector<8x16xf32> -> vector<8x16xf32>
      %c0_65 = arith.constant 0 : index
      %c16_66 = arith.constant 16 : index
      %129 = vector.load %arg19[%c0_65, %c16_66] : memref<16x64xf32, #tpu.memory_space<vmem>>, vector<8x16xf32>
      tpu.vector_store %arg19[%c0_65, %c16_66], %128 {strides = array<i32>} : memref<16x64xf32, #tpu.memory_space<vmem>>, vector<8x16xf32>,
      %c0_67 = arith.constant 0 : index
      %c32 = arith.constant 32 : index
      %130 = vector.load %arg18[%c0_67, %c32] : memref<16x192xf32, #tpu.memory_space<vmem>>, vector<8x16xf32>
      %131 = arith.truncf %130 : vector<8x16xf32> to vector<8x16xbf16>
      %c0_68 = arith.constant 0 : index
      %c96 = arith.constant 96 : index
      %132 = vector.load %arg18[%c0_68, %c96] : memref<16x192xf32, #tpu.memory_space<vmem>>, vector<8x16xf32>
      %133 = arith.truncf %132 : vector<8x16xf32> to vector<8x16xbf16>
      %c0_69 = arith.constant 0 : index
      %c160 = arith.constant 160 : index
      %134 = vector.load %arg18[%c0_69, %c160] : memref<16x192xf32, #tpu.memory_space<vmem>>, vector<8x16xf32>
      %135 = arith.truncf %134 : vector<8x16xf32> to vector<8x16xbf16>
      %cst_70 = arith.constant dense<0.000000e+00> : vector<8x8xf32>
      %136 = tpu.matmul %131, %133, %cst_70 {dimension_numbers = #tpu.dot_dimension_numbers<[1], [1], [0], [0], [0, 0, 1, 0], [], []>} : vector<8x16xbf16>, vector<8x16xbf16>, vector<8x8xf32> -> vector<8x8xf32>
      %137 = arith.addf %136, %87 : vector<8x8xf32>
      %cst_71 = arith.constant dense<0xFF800000> : vector<8xf32>
      %138 = vector.multi_reduction <maximumf>, %137, %cst_71 [1] : vector<8x8xf32> to vector<8xf32>
      %139 = vector.shape_cast %138 : vector<8xf32> to vector<8x1xf32>
      %140 = vector.broadcast %139 : vector<8x1xf32> to vector<8x8xf32>
      %141 = arith.subf %137, %140 : vector<8x8xf32>
      %142 = math.exp %141 : vector<8x8xf32>
      %cst_72 = arith.constant dense<0.000000e+00> : vector<8xf32>
      %143 = vector.multi_reduction <add>, %142, %cst_72 [1] : vector<8x8xf32> to vector<8xf32>
      %144 = vector.shape_cast %143 : vector<8xf32> to vector<8x1xf32>
      %145 = tpu.reciprocal %144 : vector<8x1xf32> -> vector<8x1xf32>
      %146 = vector.broadcast %145 : vector<8x1xf32> to vector<8x8xf32>
      %147 = arith.mulf %142, %146 : vector<8x8xf32>
      %148 = arith.truncf %147 : vector<8x8xf32> to vector<8x8xbf16>
      %cst_73 = arith.constant dense<0.000000e+00> : vector<8x16xf32>
      %149 = tpu.matmul %148, %135, %cst_73 {dimension_numbers = #tpu.dot_dimension_numbers<[1], [0], [0], [1], [0, 0, 1, 1], [], []>} : vector<8x8xbf16>, vector<8x16xbf16>, vector<8x16xf32> -> vector<8x16xf32>
      %c0_74 = arith.constant 0 : index
      %c32_75 = arith.constant 32 : index
      %150 = vector.load %arg19[%c0_74, %c32_75] : memref<16x64xf32, #tpu.memory_space<vmem>>, vector<8x16xf32>
      tpu.vector_store %arg19[%c0_74, %c32_75], %149 {strides = array<i32>} : memref<16x64xf32, #tpu.memory_space<vmem>>, vector<8x16xf32>,
      %c0_76 = arith.constant 0 : index
      %c48 = arith.constant 48 : index
      %151 = vector.load %arg18[%c0_76, %c48] : memref<16x192xf32, #tpu.memory_space<vmem>>, vector<8x16xf32>
      %152 = arith.truncf %151 : vector<8x16xf32> to vector<8x16xbf16>
      %c0_77 = arith.constant 0 : index
      %c112 = arith.constant 112 : index
      %153 = vector.load %arg18[%c0_77, %c112] : memref<16x192xf32, #tpu.memory_space<vmem>>, vector<8x16xf32>
      %154 = arith.truncf %153 : vector<8x16xf32> to vector<8x16xbf16>
      %c0_78 = arith.constant 0 : index
      %c176 = arith.constant 176 : index
      %155 = vector.load %arg18[%c0_78, %c176] : memref<16x192xf32, #tpu.memory_space<vmem>>, vector<8x16xf32>
      %156 = arith.truncf %155 : vector<8x16xf32> to vector<8x16xbf16>
      %cst_79 = arith.constant dense<0.000000e+00> : vector<8x8xf32>
      %157 = tpu.matmul %152, %154, %cst_79 {dimension_numbers = #tpu.dot_dimension_numbers<[1], [1], [0], [0], [0, 0, 1, 0], [], []>} : vector<8x16xbf16>, vector<8x16xbf16>, vector<8x8xf32> -> vector<8x8xf32>
      %158 = arith.addf %157, %87 : vector<8x8xf32>
      %cst_80 = arith.constant dense<0xFF800000> : vector<8xf32>
      %159 = vector.multi_reduction <maximumf>, %158, %cst_80 [1] : vector<8x8xf32> to vector<8xf32>
      %160 = vector.shape_cast %159 : vector<8xf32> to vector<8x1xf32>
      %161 = vector.broadcast %160 : vector<8x1xf32> to vector<8x8xf32>
      %162 = arith.subf %158, %161 : vector<8x8xf32>
      %163 = math.exp %162 : vector<8x8xf32>
      %cst_81 = arith.constant dense<0.000000e+00> : vector<8xf32>
      %164 = vector.multi_reduction <add>, %163, %cst_81 [1] : vector<8x8xf32> to vector<8xf32>
      %165 = vector.shape_cast %164 : vector<8xf32> to vector<8x1xf32>
      %166 = tpu.reciprocal %165 : vector<8x1xf32> -> vector<8x1xf32>
      %167 = vector.broadcast %166 : vector<8x1xf32> to vector<8x8xf32>
      %168 = arith.mulf %163, %167 : vector<8x8xf32>
      %169 = arith.truncf %168 : vector<8x8xf32> to vector<8x8xbf16>
      %cst_82 = arith.constant dense<0.000000e+00> : vector<8x16xf32>
      %170 = tpu.matmul %169, %156, %cst_82 {dimension_numbers = #tpu.dot_dimension_numbers<[1], [0], [0], [1], [0, 0, 1, 1], [], []>} : vector<8x8xbf16>, vector<8x16xbf16>, vector<8x16xf32> -> vector<8x16xf32>
      %c0_83 = arith.constant 0 : index
      %c48_84 = arith.constant 48 : index
      %171 = vector.load %arg19[%c0_83, %c48_84] : memref<16x64xf32, #tpu.memory_space<vmem>>, vector<8x16xf32>
      tpu.vector_store %arg19[%c0_83, %c48_84], %170 {strides = array<i32>} : memref<16x64xf32, #tpu.memory_space<vmem>>, vector<8x16xf32>,
      %c8 = arith.constant 8 : index
      %c0_85 = arith.constant 0 : index
      %172 = vector.load %arg18[%c8, %c0_85] : memref<16x192xf32, #tpu.memory_space<vmem>>, vector<8x16xf32>
      %173 = arith.truncf %172 : vector<8x16xf32> to vector<8x16xbf16>
      %c8_86 = arith.constant 8 : index
      %c64_87 = arith.constant 64 : index
      %174 = vector.load %arg18[%c8_86, %c64_87] : memref<16x192xf32, #tpu.memory_space<vmem>>, vector<8x16xf32>
      %175 = arith.truncf %174 : vector<8x16xf32> to vector<8x16xbf16>
      %c8_88 = arith.constant 8 : index
      %c128_89 = arith.constant 128 : index
      %176 = vector.load %arg18[%c8_88, %c128_89] : memref<16x192xf32, #tpu.memory_space<vmem>>, vector<8x16xf32>
      %177 = arith.truncf %176 : vector<8x16xf32> to vector<8x16xbf16>
      %cst_90 = arith.constant dense<0.000000e+00> : vector<8x8xf32>
      %178 = tpu.matmul %173, %175, %cst_90 {dimension_numbers = #tpu.dot_dimension_numbers<[1], [1], [0], [0], [0, 0, 1, 0], [], []>} : vector<8x16xbf16>, vector<8x16xbf16>, vector<8x8xf32> -> vector<8x8xf32>
      %179 = arith.addf %178, %87 : vector<8x8xf32>
      %cst_91 = arith.constant dense<0xFF800000> : vector<8xf32>
      %180 = vector.multi_reduction <maximumf>, %179, %cst_91 [1] : vector<8x8xf32> to vector<8xf32>
      %181 = vector.shape_cast %180 : vector<8xf32> to vector<8x1xf32>
      %182 = vector.broadcast %181 : vector<8x1xf32> to vector<8x8xf32>
      %183 = arith.subf %179, %182 : vector<8x8xf32>
      %184 = math.exp %183 : vector<8x8xf32>
      %cst_92 = arith.constant dense<0.000000e+00> : vector<8xf32>
      %185 = vector.multi_reduction <add>, %184, %cst_92 [1] : vector<8x8xf32> to vector<8xf32>
      %186 = vector.shape_cast %185 : vector<8xf32> to vector<8x1xf32>
      %187 = tpu.reciprocal %186 : vector<8x1xf32> -> vector<8x1xf32>
      %188 = vector.broadcast %187 : vector<8x1xf32> to vector<8x8xf32>
      %189 = arith.mulf %184, %188 : vector<8x8xf32>
      %190 = arith.truncf %189 : vector<8x8xf32> to vector<8x8xbf16>
      %cst_93 = arith.constant dense<0.000000e+00> : vector<8x16xf32>
      %191 = tpu.matmul %190, %177, %cst_93 {dimension_numbers = #tpu.dot_dimension_numbers<[1], [0], [0], [1], [0, 0, 1, 1], [], []>} : vector<8x8xbf16>, vector<8x16xbf16>, vector<8x16xf32> -> vector<8x16xf32>
      %c8_94 = arith.constant 8 : index
      %c0_95 = arith.constant 0 : index
      %192 = vector.load %arg19[%c8_94, %c0_95] : memref<16x64xf32, #tpu.memory_space<vmem>>, vector<8x16xf32>
      tpu.vector_store %arg19[%c8_94, %c0_95], %191 {strides = array<i32>} : memref<16x64xf32, #tpu.memory_space<vmem>>, vector<8x16xf32>,
      %c8_96 = arith.constant 8 : index
      %c16_97 = arith.constant 16 : index
      %193 = vector.load %arg18[%c8_96, %c16_97] : memref<16x192xf32, #tpu.memory_space<vmem>>, vector<8x16xf32>
      %194 = arith.truncf %193 : vector<8x16xf32> to vector<8x16xbf16>
      %c8_98 = arith.constant 8 : index
      %c80_99 = arith.constant 80 : index
      %195 = vector.load %arg18[%c8_98, %c80_99] : memref<16x192xf32, #tpu.memory_space<vmem>>, vector<8x16xf32>
      %196 = arith.truncf %195 : vector<8x16xf32> to vector<8x16xbf16>
      %c8_100 = arith.constant 8 : index
      %c144_101 = arith.constant 144 : index
      %197 = vector.load %arg18[%c8_100, %c144_101] : memref<16x192xf32, #tpu.memory_space<vmem>>, vector<8x16xf32>
      %198 = arith.truncf %197 : vector<8x16xf32> to vector<8x16xbf16>
      %cst_102 = arith.constant dense<0.000000e+00> : vector<8x8xf32>
      %199 = tpu.matmul %194, %196, %cst_102 {dimension_numbers = #tpu.dot_dimension_numbers<[1], [1], [0], [0], [0, 0, 1, 0], [], []>} : vector<8x16xbf16>, vector<8x16xbf16>, vector<8x8xf32> -> vector<8x8xf32>
      %200 = arith.addf %199, %87 : vector<8x8xf32>
      %cst_103 = arith.constant dense<0xFF800000> : vector<8xf32>
      %201 = vector.multi_reduction <maximumf>, %200, %cst_103 [1] : vector<8x8xf32> to vector<8xf32>
      %202 = vector.shape_cast %201 : vector<8xf32> to vector<8x1xf32>
      %203 = vector.broadcast %202 : vector<8x1xf32> to vector<8x8xf32>
      %204 = arith.subf %200, %203 : vector<8x8xf32>
      %205 = math.exp %204 : vector<8x8xf32>
      %cst_104 = arith.constant dense<0.000000e+00> : vector<8xf32>
      %206 = vector.multi_reduction <add>, %205, %cst_104 [1] : vector<8x8xf32> to vector<8xf32>
      %207 = vector.shape_cast %206 : vector<8xf32> to vector<8x1xf32>
      %208 = tpu.reciprocal %207 : vector<8x1xf32> -> vector<8x1xf32>
      %209 = vector.broadcast %208 : vector<8x1xf32> to vector<8x8xf32>
      %210 = arith.mulf %205, %209 : vector<8x8xf32>
      %211 = arith.truncf %210 : vector<8x8xf32> to vector<8x8xbf16>
      %cst_105 = arith.constant dense<0.000000e+00> : vector<8x16xf32>
      %212 = tpu.matmul %211, %198, %cst_105 {dimension_numbers = #tpu.dot_dimension_numbers<[1], [0], [0], [1], [0, 0, 1, 1], [], []>} : vector<8x8xbf16>, vector<8x16xbf16>, vector<8x16xf32> -> vector<8x16xf32>
      %c8_106 = arith.constant 8 : index
      %c16_107 = arith.constant 16 : index
      %213 = vector.load %arg19[%c8_106, %c16_107] : memref<16x64xf32, #tpu.memory_space<vmem>>, vector<8x16xf32>
      tpu.vector_store %arg19[%c8_106, %c16_107], %212 {strides = array<i32>} : memref<16x64xf32, #tpu.memory_space<vmem>>, vector<8x16xf32>,
      %c8_108 = arith.constant 8 : index
      %c32_109 = arith.constant 32 : index
      %214 = vector.load %arg18[%c8_108, %c32_109] : memref<16x192xf32, #tpu.memory_space<vmem>>, vector<8x16xf32>
      %215 = arith.truncf %214 : vector<8x16xf32> to vector<8x16xbf16>
      %c8_110 = arith.constant 8 : index
      %c96_111 = arith.constant 96 : index
      %216 = vector.load %arg18[%c8_110, %c96_111] : memref<16x192xf32, #tpu.memory_space<vmem>>, vector<8x16xf32>
      %217 = arith.truncf %216 : vector<8x16xf32> to vector<8x16xbf16>
      %c8_112 = arith.constant 8 : index
      %c160_113 = arith.constant 160 : index
      %218 = vector.load %arg18[%c8_112, %c160_113] : memref<16x192xf32, #tpu.memory_space<vmem>>, vector<8x16xf32>
      %219 = arith.truncf %218 : vector<8x16xf32> to vector<8x16xbf16>
      %cst_114 = arith.constant dense<0.000000e+00> : vector<8x8xf32>
      %220 = tpu.matmul %215, %217, %cst_114 {dimension_numbers = #tpu.dot_dimension_numbers<[1], [1], [0], [0], [0, 0, 1, 0], [], []>} : vector<8x16xbf16>, vector<8x16xbf16>, vector<8x8xf32> -> vector<8x8xf32>
      %221 = arith.addf %220, %87 : vector<8x8xf32>
      %cst_115 = arith.constant dense<0xFF800000> : vector<8xf32>
      %222 = vector.multi_reduction <maximumf>, %221, %cst_115 [1] : vector<8x8xf32> to vector<8xf32>
      %223 = vector.shape_cast %222 : vector<8xf32> to vector<8x1xf32>
      %224 = vector.broadcast %223 : vector<8x1xf32> to vector<8x8xf32>
      %225 = arith.subf %221, %224 : vector<8x8xf32>
      %226 = math.exp %225 : vector<8x8xf32>
      %cst_116 = arith.constant dense<0.000000e+00> : vector<8xf32>
      %227 = vector.multi_reduction <add>, %226, %cst_116 [1] : vector<8x8xf32> to vector<8xf32>
      %228 = vector.shape_cast %227 : vector<8xf32> to vector<8x1xf32>
      %229 = tpu.reciprocal %228 : vector<8x1xf32> -> vector<8x1xf32>
      %230 = vector.broadcast %229 : vector<8x1xf32> to vector<8x8xf32>
      %231 = arith.mulf %226, %230 : vector<8x8xf32>
      %232 = arith.truncf %231 : vector<8x8xf32> to vector<8x8xbf16>
      %cst_117 = arith.constant dense<0.000000e+00> : vector<8x16xf32>
      %233 = tpu.matmul %232, %219, %cst_117 {dimension_numbers = #tpu.dot_dimension_numbers<[1], [0], [0], [1], [0, 0, 1, 1], [], []>} : vector<8x8xbf16>, vector<8x16xbf16>, vector<8x16xf32> -> vector<8x16xf32>
      %c8_118 = arith.constant 8 : index
      %c32_119 = arith.constant 32 : index
      %234 = vector.load %arg19[%c8_118, %c32_119] : memref<16x64xf32, #tpu.memory_space<vmem>>, vector<8x16xf32>
      tpu.vector_store %arg19[%c8_118, %c32_119], %233 {strides = array<i32>} : memref<16x64xf32, #tpu.memory_space<vmem>>, vector<8x16xf32>,
      %c8_120 = arith.constant 8 : index
      %c48_121 = arith.constant 48 : index
      %235 = vector.load %arg18[%c8_120, %c48_121] : memref<16x192xf32, #tpu.memory_space<vmem>>, vector<8x16xf32>
      %236 = arith.truncf %235 : vector<8x16xf32> to vector<8x16xbf16>
      %c8_122 = arith.constant 8 : index
      %c112_123 = arith.constant 112 : index
      %237 = vector.load %arg18[%c8_122, %c112_123] : memref<16x192xf32, #tpu.memory_space<vmem>>, vector<8x16xf32>
      %238 = arith.truncf %237 : vector<8x16xf32> to vector<8x16xbf16>
      %c8_124 = arith.constant 8 : index
      %c176_125 = arith.constant 176 : index
      %239 = vector.load %arg18[%c8_124, %c176_125] : memref<16x192xf32, #tpu.memory_space<vmem>>, vector<8x16xf32>
      %240 = arith.truncf %239 : vector<8x16xf32> to vector<8x16xbf16>
      %cst_126 = arith.constant dense<0.000000e+00> : vector<8x8xf32>
      %241 = tpu.matmul %236, %238, %cst_126 {dimension_numbers = #tpu.dot_dimension_numbers<[1], [1], [0], [0], [0, 0, 1, 0], [], []>} : vector<8x16xbf16>, vector<8x16xbf16>, vector<8x8xf32> -> vector<8x8xf32>
      %242 = arith.addf %241, %87 : vector<8x8xf32>
      %cst_127 = arith.constant dense<0xFF800000> : vector<8xf32>
      %243 = vector.multi_reduction <maximumf>, %242, %cst_127 [1] : vector<8x8xf32> to vector<8xf32>
      %244 = vector.shape_cast %243 : vector<8xf32> to vector<8x1xf32>
      %245 = vector.broadcast %244 : vector<8x1xf32> to vector<8x8xf32>
      %246 = arith.subf %242, %245 : vector<8x8xf32>
      %247 = math.exp %246 : vector<8x8xf32>
      %cst_128 = arith.constant dense<0.000000e+00> : vector<8xf32>
      %248 = vector.multi_reduction <add>, %247, %cst_128 [1] : vector<8x8xf32> to vector<8xf32>
      %249 = vector.shape_cast %248 : vector<8xf32> to vector<8x1xf32>
      %250 = tpu.reciprocal %249 : vector<8x1xf32> -> vector<8x1xf32>
      %251 = vector.broadcast %250 : vector<8x1xf32> to vector<8x8xf32>
      %252 = arith.mulf %247, %251 : vector<8x8xf32>
      %253 = arith.truncf %252 : vector<8x8xf32> to vector<8x8xbf16>
      %cst_129 = arith.constant dense<0.000000e+00> : vector<8x16xf32>
      %254 = tpu.matmul %253, %240, %cst_129 {dimension_numbers = #tpu.dot_dimension_numbers<[1], [0], [0], [1], [0, 0, 1, 1], [], []>} : vector<8x8xbf16>, vector<8x16xbf16>, vector<8x16xf32> -> vector<8x16xf32>
      %c8_130 = arith.constant 8 : index
      %c48_131 = arith.constant 48 : index
      %255 = vector.load %arg19[%c8_130, %c48_131] : memref<16x64xf32, #tpu.memory_space<vmem>>, vector<8x16xf32>
      tpu.vector_store %arg19[%c8_130, %c48_131], %254 {strides = array<i32>} : memref<16x64xf32, #tpu.memory_space<vmem>>, vector<8x16xf32>,
      %c0_132 = arith.constant 0 : index
      %c0_133 = arith.constant 0 : index
      %256 = vector.load %arg19[%c0_132, %c0_133] : memref<16x64xf32, #tpu.memory_space<vmem>>, vector<16x64xf32>
      %257 = arith.truncf %256 : vector<16x64xf32> to vector<16x64xbf16>
      %c0_134 = arith.constant 0 : index
      %c0_135 = arith.constant 0 : index
      %258 = vector.load %arg7[%c0_134, %c0_135] : memref<64x64xbf16, #tpu.memory_space<vmem>>, vector<64x64xbf16>
      %cst_136 = arith.constant dense<0.000000e+00> : vector<16x64xf32>
      %259 = tpu.matmul %257, %258, %cst_136 {dimension_numbers = #tpu.dot_dimension_numbers<[1], [0], [0], [1], [0, 0, 1, 1], [], []>} : vector<16x64xbf16>, vector<64x64xbf16>, vector<16x64xf32> -> vector<16x64xf32>
      %c0_137 = arith.constant 0 : index
      %c0_138 = arith.constant 0 : index
      %260 = vector.load %arg8[%c0_137, %c0_138] : memref<1x64xf32, #tpu.memory_space<vmem>>, vector<1x64xf32>
      %261 = vector.broadcast %260 : vector<1x64xf32> to vector<16x64xf32>
      %262 = arith.addf %259, %261 : vector<16x64xf32>
      %263 = arith.addf %55, %262 : vector<16x64xf32>
      %c0_139 = arith.constant 0 : index
      %c0_140 = arith.constant 0 : index
      %264 = vector.load %arg9[%c0_139, %c0_140] : memref<1x64xf32, #tpu.memory_space<vmem>>, vector<1x64xf32>
      %c0_141 = arith.constant 0 : index
      %c0_142 = arith.constant 0 : index
      %265 = vector.load %arg10[%c0_141, %c0_142] : memref<1x64xf32, #tpu.memory_space<vmem>>, vector<1x64xf32>
      %cst_143 = arith.constant dense<0.000000e+00> : vector<16xf32>
      %266 = vector.multi_reduction <add>, %263, %cst_143 [1] : vector<16x64xf32> to vector<16xf32>
      %267 = vector.shape_cast %266 : vector<16xf32> to vector<16x1xf32>
      %cst_144 = arith.constant 6.400000e+01 : f32
      %268 = vector.broadcast %cst_144 : f32 to vector<16x1xf32>
      %269 = arith.divf %267, %268 : vector<16x1xf32>
      %270 = vector.broadcast %269 : vector<16x1xf32> to vector<16x64xf32>
      %271 = arith.subf %263, %270 : vector<16x64xf32>
      %272 = arith.mulf %271, %271 : vector<16x64xf32>
      %cst_145 = arith.constant dense<0.000000e+00> : vector<16xf32>
      %273 = vector.multi_reduction <add>, %272, %cst_145 [1] : vector<16x64xf32> to vector<16xf32>
      %274 = vector.shape_cast %273 : vector<16xf32> to vector<16x1xf32>
      %cst_146 = arith.constant 6.400000e+01 : f32
      %275 = vector.broadcast %cst_146 : f32 to vector<16x1xf32>
      %276 = arith.divf %274, %275 : vector<16x1xf32>
      %277 = vector.broadcast %269 : vector<16x1xf32> to vector<16x64xf32>
      %278 = arith.subf %263, %277 : vector<16x64xf32>
      %cst_147 = arith.constant 9.99999974E-6 : f32
      %279 = vector.broadcast %cst_147 : f32 to vector<16x1xf32>
      %280 = arith.addf %276, %279 : vector<16x1xf32>
      %281 = math.rsqrt %280 : vector<16x1xf32>
      %282 = vector.broadcast %281 : vector<16x1xf32> to vector<16x64xf32>
      %283 = arith.mulf %278, %282 : vector<16x64xf32>
      %284 = vector.broadcast %264 : vector<1x64xf32> to vector<16x64xf32>
      %285 = arith.mulf %283, %284 : vector<16x64xf32>
      %286 = vector.broadcast %265 : vector<1x64xf32> to vector<16x64xf32>
      %287 = arith.addf %285, %286 : vector<16x64xf32>
      %288 = arith.truncf %287 : vector<16x64xf32> to vector<16x64xbf16>
      %c0_148 = arith.constant 0 : index
      %c0_149 = arith.constant 0 : index
      %289 = vector.load %arg20[%c0_148, %c0_149] : memref<16x64xbf16, #tpu.memory_space<vmem>>, vector<16x64xbf16>
      tpu.vector_store %arg20[%c0_148, %c0_149], %288 {strides = array<i32>} : memref<16x64xbf16, #tpu.memory_space<vmem>>, vector<16x64xbf16>,
      %c0_150 = arith.constant 0 : index
      %c0_151 = arith.constant 0 : index
      %290 = vector.load %arg14[%c0_150, %c0_151] : memref<1x64xf32, #tpu.memory_space<vmem>>, vector<1x64xf32>
      %291 = vector.broadcast %290 : vector<1x64xf32> to vector<16x64xf32>
      %292 = arith.addf %263, %291 : vector<16x64xf32>
      %c0_152 = arith.constant 0 : index
      %c0_153 = arith.constant 0 : index
      %293 = vector.load %arg17[%c0_152, %c0_153] : memref<16x64xf32, #tpu.memory_space<vmem>>, vector<16x64xf32>
      tpu.vector_store %arg17[%c0_152, %c0_153], %292 {strides = array<i32>} : memref<16x64xf32, #tpu.memory_space<vmem>>, vector<16x64xf32>,
    } else {
    }
    %c0 = arith.constant 0 : index
    %c0_1 = arith.constant 0 : index
    %3 = vector.load %arg20[%c0, %c0_1] : memref<16x64xbf16, #tpu.memory_space<vmem>>, vector<16x64xbf16>
    %c0_2 = arith.constant 0 : index
    %c0_3 = arith.constant 0 : index
    %4 = vector.load %arg11[%c0_2, %c0_3] : memref<64x128xbf16, #tpu.memory_space<vmem>>, vector<64x128xbf16>
    %cst = arith.constant dense<0.000000e+00> : vector<16x128xf32>
    %5 = tpu.matmul %3, %4, %cst {dimension_numbers = #tpu.dot_dimension_numbers<[1], [0], [0], [1], [0, 0, 1, 1], [], []>} : vector<16x64xbf16>, vector<64x128xbf16>, vector<16x128xf32> -> vector<16x128xf32>
    %c0_4 = arith.constant 0 : index
    %c0_5 = arith.constant 0 : index
    %6 = vector.load %arg12[%c0_4, %c0_5] : memref<1x128xf32, #tpu.memory_space<vmem>>, vector<1x128xf32>
    %7 = vector.broadcast %6 : vector<1x128xf32> to vector<16x128xf32>
    %8 = arith.addf %5, %7 : vector<16x128xf32>
    %cst_6 = arith.constant 5.000000e-01 : f32
    %9 = vector.broadcast %cst_6 : f32 to vector<16x128xf32>
    %10 = arith.mulf %9, %8 : vector<16x128xf32>
    %cst_7 = arith.constant 0.707106769 : f32
    %11 = vector.broadcast %cst_7 : f32 to vector<16x128xf32>
    %12 = arith.mulf %8, %11 : vector<16x128xf32>
    %13 = math.absf %12 : vector<16x128xf32>
    %cst_8 = arith.constant 0.327591091 : f32
    %14 = vector.broadcast %cst_8 : f32 to vector<16x128xf32>
    %15 = arith.mulf %14, %13 : vector<16x128xf32>
    %cst_9 = arith.constant 1.000000e+00 : f32
    %16 = vector.broadcast %cst_9 : f32 to vector<16x128xf32>
    %17 = arith.addf %16, %15 : vector<16x128xf32>
    %cst_10 = arith.constant 1.000000e+00 : f32
    %18 = vector.broadcast %cst_10 : f32 to vector<16x128xf32>
    %19 = arith.divf %18, %17 : vector<16x128xf32>
    %cst_11 = arith.constant 1.06140542 : f32
    %20 = vector.broadcast %cst_11 : f32 to vector<16x128xf32>
    %21 = arith.mulf %20, %19 : vector<16x128xf32>
    %cst_12 = arith.constant -1.45315206 : f32
    %22 = vector.broadcast %cst_12 : f32 to vector<16x128xf32>
    %23 = arith.addf %21, %22 : vector<16x128xf32>
    %24 = arith.mulf %23, %19 : vector<16x128xf32>
    %cst_13 = arith.constant 1.42141378 : f32
    %25 = vector.broadcast %cst_13 : f32 to vector<16x128xf32>
    %26 = arith.addf %24, %25 : vector<16x128xf32>
    %27 = arith.mulf %26, %19 : vector<16x128xf32>
    %cst_14 = arith.constant -0.284496725 : f32
    %28 = vector.broadcast %cst_14 : f32 to vector<16x128xf32>
    %29 = arith.addf %27, %28 : vector<16x128xf32>
    %30 = arith.mulf %29, %19 : vector<16x128xf32>
    %cst_15 = arith.constant 0.254829586 : f32
    %31 = vector.broadcast %cst_15 : f32 to vector<16x128xf32>
    %32 = arith.addf %30, %31 : vector<16x128xf32>
    %33 = arith.mulf %32, %19 : vector<16x128xf32>
    %cst_16 = arith.constant 0.000000e+00 : f32
    %34 = vector.broadcast %cst_16 : f32 to vector<16x128xf32>
    %35 = arith.subf %34, %13 : vector<16x128xf32>
    %36 = arith.mulf %35, %13 : vector<16x128xf32>
    %37 = math.exp %36 : vector<16x128xf32>
    %38 = arith.mulf %33, %37 : vector<16x128xf32>
    %cst_17 = arith.constant 1.000000e+00 : f32
    %39 = vector.broadcast %cst_17 : f32 to vector<16x128xf32>
    %40 = arith.subf %39, %38 : vector<16x128xf32>
    %cst_18 = arith.constant 0.000000e+00 : f32
    %41 = vector.broadcast %cst_18 : f32 to vector<16x128xf32>
    %42 = arith.cmpf oge, %12, %41 : vector<16x128xf32>
    %cst_19 = arith.constant 0.000000e+00 : f32
    %43 = vector.broadcast %cst_19 : f32 to vector<16x128xf32>
    %44 = arith.subf %43, %40 : vector<16x128xf32>
    %45 = arith.select %42, %40, %44 : vector<16x128xi1>, vector<16x128xf32>
    %cst_20 = arith.constant 1.000000e+00 : f32
    %46 = vector.broadcast %cst_20 : f32 to vector<16x128xf32>
    %47 = arith.addf %46, %45 : vector<16x128xf32>
    %48 = arith.mulf %10, %47 : vector<16x128xf32>
    %c0_21 = arith.constant 0 : index
    %c0_22 = arith.constant 0 : index
    %49 = vector.load %arg17[%c0_21, %c0_22] : memref<16x64xf32, #tpu.memory_space<vmem>>, vector<16x64xf32>
    %50 = arith.truncf %48 : vector<16x128xf32> to vector<16x128xbf16>
    %c0_23 = arith.constant 0 : index
    %c0_24 = arith.constant 0 : index
    %51 = vector.load %arg13[%c0_23, %c0_24] : memref<128x64xbf16, #tpu.memory_space<vmem>>, vector<128x64xbf16>
    %cst_25 = arith.constant dense<0.000000e+00> : vector<16x64xf32>
    %52 = tpu.matmul %50, %51, %cst_25 {dimension_numbers = #tpu.dot_dimension_numbers<[1], [0], [0], [1], [0, 0, 1, 1], [], []>} : vector<16x128xbf16>, vector<128x64xbf16>, vector<16x64xf32> -> vector<16x64xf32>
    %53 = arith.addf %49, %52 : vector<16x64xf32>
    %c0_26 = arith.constant 0 : index
    %c0_27 = arith.constant 0 : index
    %54 = vector.load %arg17[%c0_26, %c0_27] : memref<16x64xf32, #tpu.memory_space<vmem>>, vector<16x64xf32>
    tpu.vector_store %arg17[%c0_26, %c0_27], %53 {strides = array<i32>} : memref<16x64xf32, #tpu.memory_space<vmem>>, vector<16x64xf32>,
    return
  }
  func.func @transform_0(%arg0: i32) -> (i32, i32) {
    %c0_i32 = arith.constant 0 : i32
    %c0_i32_0 = arith.constant 0 : i32
    %c0_i32_1 = arith.constant 0 : i32
    return %c0_i32, %c0_i32_0 : i32, i32
  }
  func.func @transform_1(%arg0: i32) -> (i32, i32) {
    %c0_i32 = arith.constant 0 : i32
    %c0_i32_0 = arith.constant 0 : i32
    %c0_i32_1 = arith.constant 0 : i32
    return %c0_i32, %c0_i32_0 : i32, i32
  }
  func.func @transform_2(%arg0: i32) -> (i32, i32) {
    %c0_i32 = arith.constant 0 : i32
    %c0_i32_0 = arith.constant 0 : i32
    %c0_i32_1 = arith.constant 0 : i32
    return %c0_i32, %c0_i32_0 : i32, i32
  }
  func.func @transform_3(%arg0: i32) -> (i32, i32) {
    %c0_i32 = arith.constant 0 : i32
    %c0_i32_0 = arith.constant 0 : i32
    %c0_i32_1 = arith.constant 0 : i32
    return %c0_i32, %c0_i32_0 : i32, i32
  }
  func.func @transform_4(%arg0: i32) -> (i32, i32) {
    %c0_i32 = arith.constant 0 : i32
    %c0_i32_0 = arith.constant 0 : i32
    %c0_i32_1 = arith.constant 0 : i32
    return %c0_i32, %c0_i32_0 : i32, i32
  }
  func.func @transform_5(%arg0: i32) -> (i32, i32) {
    %c0_i32 = arith.constant 0 : i32
    %c0_i32_0 = arith.constant 0 : i32
    %c0_i32_1 = arith.constant 0 : i32
    return %c0_i32, %c0_i32_0 : i32, i32
  }
  func.func @transform_6(%arg0: i32) -> (i32, i32) {
    %c0_i32 = arith.constant 0 : i32
    %c0_i32_0 = arith.constant 0 : i32
    %c0_i32_1 = arith.constant 0 : i32
    return %c0_i32, %c0_i32_0 : i32, i32
  }
  func.func @transform_7(%arg0: i32) -> (i32, i32) {
    %c0_i32 = arith.constant 0 : i32
    %c0_i32_0 = arith.constant 0 : i32
    %c0_i32_1 = arith.constant 0 : i32
    return %c0_i32, %c0_i32_0 : i32, i32
  }
  func.func @transform_8(%arg0: i32) -> (i32, i32) {
    %c0_i32 = arith.constant 0 : i32
    %c0_i32_0 = arith.constant 0 : i32
    %c0_i32_1 = arith.constant 0 : i32
    return %c0_i32, %c0_i32_0 : i32, i32
  }
  func.func @transform_9(%arg0: i32) -> (i32, i32) {
    %c0_i32 = arith.constant 0 : i32
    %c0_i32_0 = arith.constant 0 : i32
    %c0_i32_1 = arith.constant 0 : i32
    return %c0_i32, %c0_i32_0 : i32, i32
  }
  func.func @transform_10(%arg0: i32) -> (i32, i32) {
    %c0_i32 = arith.constant 0 : i32
    %c0_i32_0 = arith.constant 0 : i32
    return %c0_i32, %arg0 : i32, i32
  }
  func.func @transform_11(%arg0: i32) -> (i32, i32) {
    %c0_i32 = arith.constant 0 : i32
    %c0_i32_0 = arith.constant 0 : i32
    return %c0_i32, %arg0 : i32, i32
  }
  func.func @transform_12(%arg0: i32) -> (i32, i32) {
    %c0_i32 = arith.constant 0 : i32
    %c0_i32_0 = arith.constant 0 : i32
    return %arg0, %c0_i32 : i32, i32
  }
  func.func @transform_13(%arg0: i32) -> (i32, i32) {
    %c0_i32 = arith.constant 0 : i32
    %c0_i32_0 = arith.constant 0 : i32
    %c0_i32_1 = arith.constant 0 : i32
    return %c0_i32, %c0_i32_0 : i32, i32
  }
  func.func @transform_14(%arg0: i32) -> (i32, i32) {
    %c0_i32 = arith.constant 0 : i32
    %c0_i32_0 = arith.constant 0 : i32
    %c0_i32_1 = arith.constant 0 : i32
    return %c0_i32, %c0_i32_0 : i32, i32
  }
  func.func @transform_15(%arg0: i32) -> (i32, i32) {
    %c0_i32 = arith.constant 0 : i32
    %c0_i32_0 = arith.constant 0 : i32
    %c0_i32_1 = arith.constant 0 : i32
    return %c0_i32, %c0_i32_0 : i32, i32
  }
  func.func @transform_16(%arg0: i32) -> (i32, i32) {
    %c0_i32 = arith.constant 0 : i32
    %c0_i32_0 = arith.constant 0 : i32
    %c0_i32_1 = arith.constant 0 : i32
    return %c0_i32, %c0_i32_0 : i32, i32
  }
}

module attributes {stable_mosaic.version = 11 : i64} {
  func.func @_resblock_kernel(%arg0: i32, %arg1: memref<16x64xf32, #tpu.memory_space<vmem>>, %arg2: memref<8x8xf32, #tpu.memory_space<vmem>>, %arg3: memref<1x64xf32, #tpu.memory_space<vmem>>, %arg4: memref<1x64xf32, #tpu.memory_space<vmem>>, %arg5: memref<64x192xbf16, #tpu.memory_space<vmem>>, %arg6: memref<1x192xf32, #tpu.memory_space<vmem>>, %arg7: memref<64x64xbf16, #tpu.memory_space<vmem>>, %arg8: memref<1x64xf32, #tpu.memory_space<vmem>>, %arg9: memref<1x64xf32, #tpu.memory_space<vmem>>, %arg10: memref<1x64xf32, #tpu.memory_space<vmem>>, %arg11: memref<64x128xbf16, #tpu.memory_space<vmem>>, %arg12: memref<1x128xf32, #tpu.memory_space<vmem>>, %arg13: memref<128x64xbf16, #tpu.memory_space<vmem>>, %arg14: memref<1x64xf32, #tpu.memory_space<vmem>>, %arg15: memref<1x64xf32, #tpu.memory_space<vmem>>, %arg16: memref<1x64xf32, #tpu.memory_space<vmem>>, %arg17: memref<16x64xf32, #tpu.memory_space<vmem>>, %arg18: memref<16x192xf32, #tpu.memory_space<vmem>>, %arg19: memref<16x64xf32, #tpu.memory_space<vmem>>, %arg20: memref<16x64xbf16, #tpu.memory_space<vmem>>) attributes {dimension_semantics = [#tpu.dimension_semantics<arbitrary>], iteration_bounds = array<i64: 2>, scalar_prefetch = 0 : i64, scratch_operands = 3 : i64, tpu.core_type = #tpu.core_type<tc>, window_params = [{pipeline_mode = #tpu.pipeline_mode<synchronous>, transform_indices = @transform_0, window_bounds = array<i64: 16, 64>}, {pipeline_mode = #tpu.pipeline_mode<synchronous>, transform_indices = @transform_1, window_bounds = array<i64: 8, 8>}, {pipeline_mode = #tpu.pipeline_mode<synchronous>, transform_indices = @transform_2, window_bounds = array<i64: 1, 64>}, {pipeline_mode = #tpu.pipeline_mode<synchronous>, transform_indices = @transform_3, window_bounds = array<i64: 1, 64>}, {pipeline_mode = #tpu.pipeline_mode<synchronous>, transform_indices = @transform_4, window_bounds = array<i64: 64, 192>}, {pipeline_mode = #tpu.pipeline_mode<synchronous>, transform_indices = @transform_5, window_bounds = array<i64: 1, 192>}, {pipeline_mode = #tpu.pipeline_mode<synchronous>, transform_indices = @transform_6, window_bounds = array<i64: 64, 64>}, {pipeline_mode = #tpu.pipeline_mode<synchronous>, transform_indices = @transform_7, window_bounds = array<i64: 1, 64>}, {pipeline_mode = #tpu.pipeline_mode<synchronous>, transform_indices = @transform_8, window_bounds = array<i64: 1, 64>}, {pipeline_mode = #tpu.pipeline_mode<synchronous>, transform_indices = @transform_9, window_bounds = array<i64: 1, 64>}, {transform_indices = @transform_10, window_bounds = array<i64: 64, 128>}, {transform_indices = @transform_11, window_bounds = array<i64: 1, 128>}, {transform_indices = @transform_12, window_bounds = array<i64: 128, 64>}, {pipeline_mode = #tpu.pipeline_mode<synchronous>, transform_indices = @transform_13, window_bounds = array<i64: 1, 64>}, {pipeline_mode = #tpu.pipeline_mode<synchronous>, transform_indices = @transform_14, window_bounds = array<i64: 1, 64>}, {pipeline_mode = #tpu.pipeline_mode<synchronous>, transform_indices = @transform_15, window_bounds = array<i64: 1, 64>}, {pipeline_mode = #tpu.pipeline_mode<synchronous>, transform_indices = @transform_16, window_bounds = array<i64: 16, 64>}]} {
    %c0_i32 = arith.constant 0 : i32
    %0 = arith.cmpi eq, %arg0, %c0_i32 : i32
    %1 = arith.extui %0 : i1 to i32
    %c0_i32_0 = arith.constant 0 : i32
    %2 = arith.cmpi ne, %1, %c0_i32_0 : i32
    scf.if %2 {
      %c0_29 = arith.constant 0 : index
      %c0_30 = arith.constant 0 : index
      %58 = vector.load %arg1[%c0_29, %c0_30] : memref<16x64xf32, #tpu.memory_space<vmem>>, vector<16x64xf32>
      %c0_31 = arith.constant 0 : index
      %c0_32 = arith.constant 0 : index
      %59 = vector.load %arg3[%c0_31, %c0_32] : memref<1x64xf32, #tpu.memory_space<vmem>>, vector<1x64xf32>
      %c0_33 = arith.constant 0 : index
      %c0_34 = arith.constant 0 : index
      %60 = vector.load %arg4[%c0_33, %c0_34] : memref<1x64xf32, #tpu.memory_space<vmem>>, vector<1x64xf32>
      %cst_35 = arith.constant dense<0.000000e+00> : vector<16xf32>
      %61 = vector.multi_reduction <add>, %58, %cst_35 [1] : vector<16x64xf32> to vector<16xf32>
      %62 = vector.shape_cast %61 : vector<16xf32> to vector<16x1xf32>
      %cst_36 = arith.constant 6.400000e+01 : f32
      %63 = vector.broadcast %cst_36 : f32 to vector<16x1xf32>
      %64 = arith.divf %62, %63 : vector<16x1xf32>
      %65 = vector.broadcast %64 : vector<16x1xf32> to vector<16x64xf32>
      %66 = arith.subf %58, %65 : vector<16x64xf32>
      %67 = arith.mulf %66, %66 : vector<16x64xf32>
      %cst_37 = arith.constant dense<0.000000e+00> : vector<16xf32>
      %68 = vector.multi_reduction <add>, %67, %cst_37 [1] : vector<16x64xf32> to vector<16xf32>
      %69 = vector.shape_cast %68 : vector<16xf32> to vector<16x1xf32>
      %cst_38 = arith.constant 6.400000e+01 : f32
      %70 = vector.broadcast %cst_38 : f32 to vector<16x1xf32>
      %71 = arith.divf %69, %70 : vector<16x1xf32>
      %72 = vector.broadcast %64 : vector<16x1xf32> to vector<16x64xf32>
      %73 = arith.subf %58, %72 : vector<16x64xf32>
      %cst_39 = arith.constant 9.99999974E-6 : f32
      %74 = vector.broadcast %cst_39 : f32 to vector<16x1xf32>
      %75 = arith.addf %71, %74 : vector<16x1xf32>
      %76 = math.rsqrt %75 : vector<16x1xf32>
      %77 = vector.broadcast %76 : vector<16x1xf32> to vector<16x64xf32>
      %78 = arith.mulf %73, %77 : vector<16x64xf32>
      %79 = vector.broadcast %59 : vector<1x64xf32> to vector<16x64xf32>
      %80 = arith.mulf %78, %79 : vector<16x64xf32>
      %81 = vector.broadcast %60 : vector<1x64xf32> to vector<16x64xf32>
      %82 = arith.addf %80, %81 : vector<16x64xf32>
      %83 = arith.truncf %82 : vector<16x64xf32> to vector<16x64xbf16>
      %c0_40 = arith.constant 0 : index
      %c0_41 = arith.constant 0 : index
      %84 = vector.load %arg5[%c0_40, %c0_41] : memref<64x192xbf16, #tpu.memory_space<vmem>>, vector<64x192xbf16>
      %cst_42 = arith.constant dense<0.000000e+00> : vector<16x192xf32>
      %85 = tpu.matmul %83, %84, %cst_42 {dimension_numbers = #tpu.dot_dimension_numbers<[1], [0], [0], [1], [0, 0, 1, 1], [], []>} : vector<16x64xbf16>, vector<64x192xbf16>, vector<16x192xf32> -> vector<16x192xf32>
      %c0_43 = arith.constant 0 : index
      %c0_44 = arith.constant 0 : index
      %86 = vector.load %arg6[%c0_43, %c0_44] : memref<1x192xf32, #tpu.memory_space<vmem>>, vector<1x192xf32>
      %87 = vector.broadcast %86 : vector<1x192xf32> to vector<16x192xf32>
      %88 = arith.addf %85, %87 : vector<16x192xf32>
      %c0_45 = arith.constant 0 : index
      %c0_46 = arith.constant 0 : index
      %89 = vector.load %arg18[%c0_45, %c0_46] : memref<16x192xf32, #tpu.memory_space<vmem>>, vector<16x192xf32>
      tpu.vector_store %arg18[%c0_45, %c0_46], %88 {strides = array<i32>} : memref<16x192xf32, #tpu.memory_space<vmem>>, vector<16x192xf32>,
      %c0_47 = arith.constant 0 : index
      %c0_48 = arith.constant 0 : index
      %90 = vector.load %arg2[%c0_47, %c0_48] : memref<8x8xf32, #tpu.memory_space<vmem>>, vector<8x8xf32>
      %c0_49 = arith.constant 0 : index
      %c0_50 = arith.constant 0 : index
      %91 = vector.load %arg18[%c0_49, %c0_50] : memref<16x192xf32, #tpu.memory_space<vmem>>, vector<8x16xf32>
      %92 = arith.truncf %91 : vector<8x16xf32> to vector<8x16xbf16>
      %c0_51 = arith.constant 0 : index
      %c64 = arith.constant 64 : index
      %93 = vector.load %arg18[%c0_51, %c64] : memref<16x192xf32, #tpu.memory_space<vmem>>, vector<8x16xf32>
      %94 = arith.truncf %93 : vector<8x16xf32> to vector<8x16xbf16>
      %c0_52 = arith.constant 0 : index
      %c128 = arith.constant 128 : index
      %95 = vector.load %arg18[%c0_52, %c128] : memref<16x192xf32, #tpu.memory_space<vmem>>, vector<8x16xf32>
      %96 = arith.truncf %95 : vector<8x16xf32> to vector<8x16xbf16>
      %cst_53 = arith.constant dense<0.000000e+00> : vector<8x8xf32>
      %97 = tpu.matmul %92, %94, %cst_53 {dimension_numbers = #tpu.dot_dimension_numbers<[1], [1], [0], [0], [0, 0, 1, 0], [], []>} : vector<8x16xbf16>, vector<8x16xbf16>, vector<8x8xf32> -> vector<8x8xf32>
      %98 = arith.addf %97, %90 : vector<8x8xf32>
      %cst_54 = arith.constant dense<0xFF800000> : vector<8xf32>
      %99 = vector.multi_reduction <maximumf>, %98, %cst_54 [1] : vector<8x8xf32> to vector<8xf32>
      %100 = vector.shape_cast %99 : vector<8xf32> to vector<8x1xf32>
      %101 = vector.broadcast %100 : vector<8x1xf32> to vector<8x8xf32>
      %102 = arith.subf %98, %101 : vector<8x8xf32>
      %103 = math.exp %102 : vector<8x8xf32>
      %cst_55 = arith.constant dense<0.000000e+00> : vector<8xf32>
      %104 = vector.multi_reduction <add>, %103, %cst_55 [1] : vector<8x8xf32> to vector<8xf32>
      %105 = vector.shape_cast %104 : vector<8xf32> to vector<8x1xf32>
      %106 = tpu.reciprocal %105 : vector<8x1xf32> -> vector<8x1xf32>
      %107 = vector.broadcast %106 : vector<8x1xf32> to vector<8x8xf32>
      %108 = arith.mulf %103, %107 : vector<8x8xf32>
      %109 = arith.truncf %108 : vector<8x8xf32> to vector<8x8xbf16>
      %cst_56 = arith.constant dense<0.000000e+00> : vector<8x16xf32>
      %110 = tpu.matmul %109, %96, %cst_56 {dimension_numbers = #tpu.dot_dimension_numbers<[1], [0], [0], [1], [0, 0, 1, 1], [], []>} : vector<8x8xbf16>, vector<8x16xbf16>, vector<8x16xf32> -> vector<8x16xf32>
      %c0_57 = arith.constant 0 : index
      %c0_58 = arith.constant 0 : index
      %111 = vector.load %arg19[%c0_57, %c0_58] : memref<16x64xf32, #tpu.memory_space<vmem>>, vector<8x16xf32>
      tpu.vector_store %arg19[%c0_57, %c0_58], %110 {strides = array<i32>} : memref<16x64xf32, #tpu.memory_space<vmem>>, vector<8x16xf32>,
      %c0_59 = arith.constant 0 : index
      %c16 = arith.constant 16 : index
      %112 = vector.load %arg18[%c0_59, %c16] : memref<16x192xf32, #tpu.memory_space<vmem>>, vector<8x16xf32>
      %113 = arith.truncf %112 : vector<8x16xf32> to vector<8x16xbf16>
      %c0_60 = arith.constant 0 : index
      %c80 = arith.constant 80 : index
      %114 = vector.load %arg18[%c0_60, %c80] : memref<16x192xf32, #tpu.memory_space<vmem>>, vector<8x16xf32>
      %115 = arith.truncf %114 : vector<8x16xf32> to vector<8x16xbf16>
      %c0_61 = arith.constant 0 : index
      %c144 = arith.constant 144 : index
      %116 = vector.load %arg18[%c0_61, %c144] : memref<16x192xf32, #tpu.memory_space<vmem>>, vector<8x16xf32>
      %117 = arith.truncf %116 : vector<8x16xf32> to vector<8x16xbf16>
      %cst_62 = arith.constant dense<0.000000e+00> : vector<8x8xf32>
      %118 = tpu.matmul %113, %115, %cst_62 {dimension_numbers = #tpu.dot_dimension_numbers<[1], [1], [0], [0], [0, 0, 1, 0], [], []>} : vector<8x16xbf16>, vector<8x16xbf16>, vector<8x8xf32> -> vector<8x8xf32>
      %119 = arith.addf %118, %90 : vector<8x8xf32>
      %cst_63 = arith.constant dense<0xFF800000> : vector<8xf32>
      %120 = vector.multi_reduction <maximumf>, %119, %cst_63 [1] : vector<8x8xf32> to vector<8xf32>
      %121 = vector.shape_cast %120 : vector<8xf32> to vector<8x1xf32>
      %122 = vector.broadcast %121 : vector<8x1xf32> to vector<8x8xf32>
      %123 = arith.subf %119, %122 : vector<8x8xf32>
      %124 = math.exp %123 : vector<8x8xf32>
      %cst_64 = arith.constant dense<0.000000e+00> : vector<8xf32>
      %125 = vector.multi_reduction <add>, %124, %cst_64 [1] : vector<8x8xf32> to vector<8xf32>
      %126 = vector.shape_cast %125 : vector<8xf32> to vector<8x1xf32>
      %127 = tpu.reciprocal %126 : vector<8x1xf32> -> vector<8x1xf32>
      %128 = vector.broadcast %127 : vector<8x1xf32> to vector<8x8xf32>
      %129 = arith.mulf %124, %128 : vector<8x8xf32>
      %130 = arith.truncf %129 : vector<8x8xf32> to vector<8x8xbf16>
      %cst_65 = arith.constant dense<0.000000e+00> : vector<8x16xf32>
      %131 = tpu.matmul %130, %117, %cst_65 {dimension_numbers = #tpu.dot_dimension_numbers<[1], [0], [0], [1], [0, 0, 1, 1], [], []>} : vector<8x8xbf16>, vector<8x16xbf16>, vector<8x16xf32> -> vector<8x16xf32>
      %c0_66 = arith.constant 0 : index
      %c16_67 = arith.constant 16 : index
      %132 = vector.load %arg19[%c0_66, %c16_67] : memref<16x64xf32, #tpu.memory_space<vmem>>, vector<8x16xf32>
      tpu.vector_store %arg19[%c0_66, %c16_67], %131 {strides = array<i32>} : memref<16x64xf32, #tpu.memory_space<vmem>>, vector<8x16xf32>,
      %c0_68 = arith.constant 0 : index
      %c32 = arith.constant 32 : index
      %133 = vector.load %arg18[%c0_68, %c32] : memref<16x192xf32, #tpu.memory_space<vmem>>, vector<8x16xf32>
      %134 = arith.truncf %133 : vector<8x16xf32> to vector<8x16xbf16>
      %c0_69 = arith.constant 0 : index
      %c96 = arith.constant 96 : index
      %135 = vector.load %arg18[%c0_69, %c96] : memref<16x192xf32, #tpu.memory_space<vmem>>, vector<8x16xf32>
      %136 = arith.truncf %135 : vector<8x16xf32> to vector<8x16xbf16>
      %c0_70 = arith.constant 0 : index
      %c160 = arith.constant 160 : index
      %137 = vector.load %arg18[%c0_70, %c160] : memref<16x192xf32, #tpu.memory_space<vmem>>, vector<8x16xf32>
      %138 = arith.truncf %137 : vector<8x16xf32> to vector<8x16xbf16>
      %cst_71 = arith.constant dense<0.000000e+00> : vector<8x8xf32>
      %139 = tpu.matmul %134, %136, %cst_71 {dimension_numbers = #tpu.dot_dimension_numbers<[1], [1], [0], [0], [0, 0, 1, 0], [], []>} : vector<8x16xbf16>, vector<8x16xbf16>, vector<8x8xf32> -> vector<8x8xf32>
      %140 = arith.addf %139, %90 : vector<8x8xf32>
      %cst_72 = arith.constant dense<0xFF800000> : vector<8xf32>
      %141 = vector.multi_reduction <maximumf>, %140, %cst_72 [1] : vector<8x8xf32> to vector<8xf32>
      %142 = vector.shape_cast %141 : vector<8xf32> to vector<8x1xf32>
      %143 = vector.broadcast %142 : vector<8x1xf32> to vector<8x8xf32>
      %144 = arith.subf %140, %143 : vector<8x8xf32>
      %145 = math.exp %144 : vector<8x8xf32>
      %cst_73 = arith.constant dense<0.000000e+00> : vector<8xf32>
      %146 = vector.multi_reduction <add>, %145, %cst_73 [1] : vector<8x8xf32> to vector<8xf32>
      %147 = vector.shape_cast %146 : vector<8xf32> to vector<8x1xf32>
      %148 = tpu.reciprocal %147 : vector<8x1xf32> -> vector<8x1xf32>
      %149 = vector.broadcast %148 : vector<8x1xf32> to vector<8x8xf32>
      %150 = arith.mulf %145, %149 : vector<8x8xf32>
      %151 = arith.truncf %150 : vector<8x8xf32> to vector<8x8xbf16>
      %cst_74 = arith.constant dense<0.000000e+00> : vector<8x16xf32>
      %152 = tpu.matmul %151, %138, %cst_74 {dimension_numbers = #tpu.dot_dimension_numbers<[1], [0], [0], [1], [0, 0, 1, 1], [], []>} : vector<8x8xbf16>, vector<8x16xbf16>, vector<8x16xf32> -> vector<8x16xf32>
      %c0_75 = arith.constant 0 : index
      %c32_76 = arith.constant 32 : index
      %153 = vector.load %arg19[%c0_75, %c32_76] : memref<16x64xf32, #tpu.memory_space<vmem>>, vector<8x16xf32>
      tpu.vector_store %arg19[%c0_75, %c32_76], %152 {strides = array<i32>} : memref<16x64xf32, #tpu.memory_space<vmem>>, vector<8x16xf32>,
      %c0_77 = arith.constant 0 : index
      %c48 = arith.constant 48 : index
      %154 = vector.load %arg18[%c0_77, %c48] : memref<16x192xf32, #tpu.memory_space<vmem>>, vector<8x16xf32>
      %155 = arith.truncf %154 : vector<8x16xf32> to vector<8x16xbf16>
      %c0_78 = arith.constant 0 : index
      %c112 = arith.constant 112 : index
      %156 = vector.load %arg18[%c0_78, %c112] : memref<16x192xf32, #tpu.memory_space<vmem>>, vector<8x16xf32>
      %157 = arith.truncf %156 : vector<8x16xf32> to vector<8x16xbf16>
      %c0_79 = arith.constant 0 : index
      %c176 = arith.constant 176 : index
      %158 = vector.load %arg18[%c0_79, %c176] : memref<16x192xf32, #tpu.memory_space<vmem>>, vector<8x16xf32>
      %159 = arith.truncf %158 : vector<8x16xf32> to vector<8x16xbf16>
      %cst_80 = arith.constant dense<0.000000e+00> : vector<8x8xf32>
      %160 = tpu.matmul %155, %157, %cst_80 {dimension_numbers = #tpu.dot_dimension_numbers<[1], [1], [0], [0], [0, 0, 1, 0], [], []>} : vector<8x16xbf16>, vector<8x16xbf16>, vector<8x8xf32> -> vector<8x8xf32>
      %161 = arith.addf %160, %90 : vector<8x8xf32>
      %cst_81 = arith.constant dense<0xFF800000> : vector<8xf32>
      %162 = vector.multi_reduction <maximumf>, %161, %cst_81 [1] : vector<8x8xf32> to vector<8xf32>
      %163 = vector.shape_cast %162 : vector<8xf32> to vector<8x1xf32>
      %164 = vector.broadcast %163 : vector<8x1xf32> to vector<8x8xf32>
      %165 = arith.subf %161, %164 : vector<8x8xf32>
      %166 = math.exp %165 : vector<8x8xf32>
      %cst_82 = arith.constant dense<0.000000e+00> : vector<8xf32>
      %167 = vector.multi_reduction <add>, %166, %cst_82 [1] : vector<8x8xf32> to vector<8xf32>
      %168 = vector.shape_cast %167 : vector<8xf32> to vector<8x1xf32>
      %169 = tpu.reciprocal %168 : vector<8x1xf32> -> vector<8x1xf32>
      %170 = vector.broadcast %169 : vector<8x1xf32> to vector<8x8xf32>
      %171 = arith.mulf %166, %170 : vector<8x8xf32>
      %172 = arith.truncf %171 : vector<8x8xf32> to vector<8x8xbf16>
      %cst_83 = arith.constant dense<0.000000e+00> : vector<8x16xf32>
      %173 = tpu.matmul %172, %159, %cst_83 {dimension_numbers = #tpu.dot_dimension_numbers<[1], [0], [0], [1], [0, 0, 1, 1], [], []>} : vector<8x8xbf16>, vector<8x16xbf16>, vector<8x16xf32> -> vector<8x16xf32>
      %c0_84 = arith.constant 0 : index
      %c48_85 = arith.constant 48 : index
      %174 = vector.load %arg19[%c0_84, %c48_85] : memref<16x64xf32, #tpu.memory_space<vmem>>, vector<8x16xf32>
      tpu.vector_store %arg19[%c0_84, %c48_85], %173 {strides = array<i32>} : memref<16x64xf32, #tpu.memory_space<vmem>>, vector<8x16xf32>,
      %c8 = arith.constant 8 : index
      %c0_86 = arith.constant 0 : index
      %175 = vector.load %arg18[%c8, %c0_86] : memref<16x192xf32, #tpu.memory_space<vmem>>, vector<8x16xf32>
      %176 = arith.truncf %175 : vector<8x16xf32> to vector<8x16xbf16>
      %c8_87 = arith.constant 8 : index
      %c64_88 = arith.constant 64 : index
      %177 = vector.load %arg18[%c8_87, %c64_88] : memref<16x192xf32, #tpu.memory_space<vmem>>, vector<8x16xf32>
      %178 = arith.truncf %177 : vector<8x16xf32> to vector<8x16xbf16>
      %c8_89 = arith.constant 8 : index
      %c128_90 = arith.constant 128 : index
      %179 = vector.load %arg18[%c8_89, %c128_90] : memref<16x192xf32, #tpu.memory_space<vmem>>, vector<8x16xf32>
      %180 = arith.truncf %179 : vector<8x16xf32> to vector<8x16xbf16>
      %cst_91 = arith.constant dense<0.000000e+00> : vector<8x8xf32>
      %181 = tpu.matmul %176, %178, %cst_91 {dimension_numbers = #tpu.dot_dimension_numbers<[1], [1], [0], [0], [0, 0, 1, 0], [], []>} : vector<8x16xbf16>, vector<8x16xbf16>, vector<8x8xf32> -> vector<8x8xf32>
      %182 = arith.addf %181, %90 : vector<8x8xf32>
      %cst_92 = arith.constant dense<0xFF800000> : vector<8xf32>
      %183 = vector.multi_reduction <maximumf>, %182, %cst_92 [1] : vector<8x8xf32> to vector<8xf32>
      %184 = vector.shape_cast %183 : vector<8xf32> to vector<8x1xf32>
      %185 = vector.broadcast %184 : vector<8x1xf32> to vector<8x8xf32>
      %186 = arith.subf %182, %185 : vector<8x8xf32>
      %187 = math.exp %186 : vector<8x8xf32>
      %cst_93 = arith.constant dense<0.000000e+00> : vector<8xf32>
      %188 = vector.multi_reduction <add>, %187, %cst_93 [1] : vector<8x8xf32> to vector<8xf32>
      %189 = vector.shape_cast %188 : vector<8xf32> to vector<8x1xf32>
      %190 = tpu.reciprocal %189 : vector<8x1xf32> -> vector<8x1xf32>
      %191 = vector.broadcast %190 : vector<8x1xf32> to vector<8x8xf32>
      %192 = arith.mulf %187, %191 : vector<8x8xf32>
      %193 = arith.truncf %192 : vector<8x8xf32> to vector<8x8xbf16>
      %cst_94 = arith.constant dense<0.000000e+00> : vector<8x16xf32>
      %194 = tpu.matmul %193, %180, %cst_94 {dimension_numbers = #tpu.dot_dimension_numbers<[1], [0], [0], [1], [0, 0, 1, 1], [], []>} : vector<8x8xbf16>, vector<8x16xbf16>, vector<8x16xf32> -> vector<8x16xf32>
      %c8_95 = arith.constant 8 : index
      %c0_96 = arith.constant 0 : index
      %195 = vector.load %arg19[%c8_95, %c0_96] : memref<16x64xf32, #tpu.memory_space<vmem>>, vector<8x16xf32>
      tpu.vector_store %arg19[%c8_95, %c0_96], %194 {strides = array<i32>} : memref<16x64xf32, #tpu.memory_space<vmem>>, vector<8x16xf32>,
      %c8_97 = arith.constant 8 : index
      %c16_98 = arith.constant 16 : index
      %196 = vector.load %arg18[%c8_97, %c16_98] : memref<16x192xf32, #tpu.memory_space<vmem>>, vector<8x16xf32>
      %197 = arith.truncf %196 : vector<8x16xf32> to vector<8x16xbf16>
      %c8_99 = arith.constant 8 : index
      %c80_100 = arith.constant 80 : index
      %198 = vector.load %arg18[%c8_99, %c80_100] : memref<16x192xf32, #tpu.memory_space<vmem>>, vector<8x16xf32>
      %199 = arith.truncf %198 : vector<8x16xf32> to vector<8x16xbf16>
      %c8_101 = arith.constant 8 : index
      %c144_102 = arith.constant 144 : index
      %200 = vector.load %arg18[%c8_101, %c144_102] : memref<16x192xf32, #tpu.memory_space<vmem>>, vector<8x16xf32>
      %201 = arith.truncf %200 : vector<8x16xf32> to vector<8x16xbf16>
      %cst_103 = arith.constant dense<0.000000e+00> : vector<8x8xf32>
      %202 = tpu.matmul %197, %199, %cst_103 {dimension_numbers = #tpu.dot_dimension_numbers<[1], [1], [0], [0], [0, 0, 1, 0], [], []>} : vector<8x16xbf16>, vector<8x16xbf16>, vector<8x8xf32> -> vector<8x8xf32>
      %203 = arith.addf %202, %90 : vector<8x8xf32>
      %cst_104 = arith.constant dense<0xFF800000> : vector<8xf32>
      %204 = vector.multi_reduction <maximumf>, %203, %cst_104 [1] : vector<8x8xf32> to vector<8xf32>
      %205 = vector.shape_cast %204 : vector<8xf32> to vector<8x1xf32>
      %206 = vector.broadcast %205 : vector<8x1xf32> to vector<8x8xf32>
      %207 = arith.subf %203, %206 : vector<8x8xf32>
      %208 = math.exp %207 : vector<8x8xf32>
      %cst_105 = arith.constant dense<0.000000e+00> : vector<8xf32>
      %209 = vector.multi_reduction <add>, %208, %cst_105 [1] : vector<8x8xf32> to vector<8xf32>
      %210 = vector.shape_cast %209 : vector<8xf32> to vector<8x1xf32>
      %211 = tpu.reciprocal %210 : vector<8x1xf32> -> vector<8x1xf32>
      %212 = vector.broadcast %211 : vector<8x1xf32> to vector<8x8xf32>
      %213 = arith.mulf %208, %212 : vector<8x8xf32>
      %214 = arith.truncf %213 : vector<8x8xf32> to vector<8x8xbf16>
      %cst_106 = arith.constant dense<0.000000e+00> : vector<8x16xf32>
      %215 = tpu.matmul %214, %201, %cst_106 {dimension_numbers = #tpu.dot_dimension_numbers<[1], [0], [0], [1], [0, 0, 1, 1], [], []>} : vector<8x8xbf16>, vector<8x16xbf16>, vector<8x16xf32> -> vector<8x16xf32>
      %c8_107 = arith.constant 8 : index
      %c16_108 = arith.constant 16 : index
      %216 = vector.load %arg19[%c8_107, %c16_108] : memref<16x64xf32, #tpu.memory_space<vmem>>, vector<8x16xf32>
      tpu.vector_store %arg19[%c8_107, %c16_108], %215 {strides = array<i32>} : memref<16x64xf32, #tpu.memory_space<vmem>>, vector<8x16xf32>,
      %c8_109 = arith.constant 8 : index
      %c32_110 = arith.constant 32 : index
      %217 = vector.load %arg18[%c8_109, %c32_110] : memref<16x192xf32, #tpu.memory_space<vmem>>, vector<8x16xf32>
      %218 = arith.truncf %217 : vector<8x16xf32> to vector<8x16xbf16>
      %c8_111 = arith.constant 8 : index
      %c96_112 = arith.constant 96 : index
      %219 = vector.load %arg18[%c8_111, %c96_112] : memref<16x192xf32, #tpu.memory_space<vmem>>, vector<8x16xf32>
      %220 = arith.truncf %219 : vector<8x16xf32> to vector<8x16xbf16>
      %c8_113 = arith.constant 8 : index
      %c160_114 = arith.constant 160 : index
      %221 = vector.load %arg18[%c8_113, %c160_114] : memref<16x192xf32, #tpu.memory_space<vmem>>, vector<8x16xf32>
      %222 = arith.truncf %221 : vector<8x16xf32> to vector<8x16xbf16>
      %cst_115 = arith.constant dense<0.000000e+00> : vector<8x8xf32>
      %223 = tpu.matmul %218, %220, %cst_115 {dimension_numbers = #tpu.dot_dimension_numbers<[1], [1], [0], [0], [0, 0, 1, 0], [], []>} : vector<8x16xbf16>, vector<8x16xbf16>, vector<8x8xf32> -> vector<8x8xf32>
      %224 = arith.addf %223, %90 : vector<8x8xf32>
      %cst_116 = arith.constant dense<0xFF800000> : vector<8xf32>
      %225 = vector.multi_reduction <maximumf>, %224, %cst_116 [1] : vector<8x8xf32> to vector<8xf32>
      %226 = vector.shape_cast %225 : vector<8xf32> to vector<8x1xf32>
      %227 = vector.broadcast %226 : vector<8x1xf32> to vector<8x8xf32>
      %228 = arith.subf %224, %227 : vector<8x8xf32>
      %229 = math.exp %228 : vector<8x8xf32>
      %cst_117 = arith.constant dense<0.000000e+00> : vector<8xf32>
      %230 = vector.multi_reduction <add>, %229, %cst_117 [1] : vector<8x8xf32> to vector<8xf32>
      %231 = vector.shape_cast %230 : vector<8xf32> to vector<8x1xf32>
      %232 = tpu.reciprocal %231 : vector<8x1xf32> -> vector<8x1xf32>
      %233 = vector.broadcast %232 : vector<8x1xf32> to vector<8x8xf32>
      %234 = arith.mulf %229, %233 : vector<8x8xf32>
      %235 = arith.truncf %234 : vector<8x8xf32> to vector<8x8xbf16>
      %cst_118 = arith.constant dense<0.000000e+00> : vector<8x16xf32>
      %236 = tpu.matmul %235, %222, %cst_118 {dimension_numbers = #tpu.dot_dimension_numbers<[1], [0], [0], [1], [0, 0, 1, 1], [], []>} : vector<8x8xbf16>, vector<8x16xbf16>, vector<8x16xf32> -> vector<8x16xf32>
      %c8_119 = arith.constant 8 : index
      %c32_120 = arith.constant 32 : index
      %237 = vector.load %arg19[%c8_119, %c32_120] : memref<16x64xf32, #tpu.memory_space<vmem>>, vector<8x16xf32>
      tpu.vector_store %arg19[%c8_119, %c32_120], %236 {strides = array<i32>} : memref<16x64xf32, #tpu.memory_space<vmem>>, vector<8x16xf32>,
      %c8_121 = arith.constant 8 : index
      %c48_122 = arith.constant 48 : index
      %238 = vector.load %arg18[%c8_121, %c48_122] : memref<16x192xf32, #tpu.memory_space<vmem>>, vector<8x16xf32>
      %239 = arith.truncf %238 : vector<8x16xf32> to vector<8x16xbf16>
      %c8_123 = arith.constant 8 : index
      %c112_124 = arith.constant 112 : index
      %240 = vector.load %arg18[%c8_123, %c112_124] : memref<16x192xf32, #tpu.memory_space<vmem>>, vector<8x16xf32>
      %241 = arith.truncf %240 : vector<8x16xf32> to vector<8x16xbf16>
      %c8_125 = arith.constant 8 : index
      %c176_126 = arith.constant 176 : index
      %242 = vector.load %arg18[%c8_125, %c176_126] : memref<16x192xf32, #tpu.memory_space<vmem>>, vector<8x16xf32>
      %243 = arith.truncf %242 : vector<8x16xf32> to vector<8x16xbf16>
      %cst_127 = arith.constant dense<0.000000e+00> : vector<8x8xf32>
      %244 = tpu.matmul %239, %241, %cst_127 {dimension_numbers = #tpu.dot_dimension_numbers<[1], [1], [0], [0], [0, 0, 1, 0], [], []>} : vector<8x16xbf16>, vector<8x16xbf16>, vector<8x8xf32> -> vector<8x8xf32>
      %245 = arith.addf %244, %90 : vector<8x8xf32>
      %cst_128 = arith.constant dense<0xFF800000> : vector<8xf32>
      %246 = vector.multi_reduction <maximumf>, %245, %cst_128 [1] : vector<8x8xf32> to vector<8xf32>
      %247 = vector.shape_cast %246 : vector<8xf32> to vector<8x1xf32>
      %248 = vector.broadcast %247 : vector<8x1xf32> to vector<8x8xf32>
      %249 = arith.subf %245, %248 : vector<8x8xf32>
      %250 = math.exp %249 : vector<8x8xf32>
      %cst_129 = arith.constant dense<0.000000e+00> : vector<8xf32>
      %251 = vector.multi_reduction <add>, %250, %cst_129 [1] : vector<8x8xf32> to vector<8xf32>
      %252 = vector.shape_cast %251 : vector<8xf32> to vector<8x1xf32>
      %253 = tpu.reciprocal %252 : vector<8x1xf32> -> vector<8x1xf32>
      %254 = vector.broadcast %253 : vector<8x1xf32> to vector<8x8xf32>
      %255 = arith.mulf %250, %254 : vector<8x8xf32>
      %256 = arith.truncf %255 : vector<8x8xf32> to vector<8x8xbf16>
      %cst_130 = arith.constant dense<0.000000e+00> : vector<8x16xf32>
      %257 = tpu.matmul %256, %243, %cst_130 {dimension_numbers = #tpu.dot_dimension_numbers<[1], [0], [0], [1], [0, 0, 1, 1], [], []>} : vector<8x8xbf16>, vector<8x16xbf16>, vector<8x16xf32> -> vector<8x16xf32>
      %c8_131 = arith.constant 8 : index
      %c48_132 = arith.constant 48 : index
      %258 = vector.load %arg19[%c8_131, %c48_132] : memref<16x64xf32, #tpu.memory_space<vmem>>, vector<8x16xf32>
      tpu.vector_store %arg19[%c8_131, %c48_132], %257 {strides = array<i32>} : memref<16x64xf32, #tpu.memory_space<vmem>>, vector<8x16xf32>,
      %c0_133 = arith.constant 0 : index
      %c0_134 = arith.constant 0 : index
      %259 = vector.load %arg19[%c0_133, %c0_134] : memref<16x64xf32, #tpu.memory_space<vmem>>, vector<16x64xf32>
      %260 = arith.truncf %259 : vector<16x64xf32> to vector<16x64xbf16>
      %c0_135 = arith.constant 0 : index
      %c0_136 = arith.constant 0 : index
      %261 = vector.load %arg7[%c0_135, %c0_136] : memref<64x64xbf16, #tpu.memory_space<vmem>>, vector<64x64xbf16>
      %cst_137 = arith.constant dense<0.000000e+00> : vector<16x64xf32>
      %262 = tpu.matmul %260, %261, %cst_137 {dimension_numbers = #tpu.dot_dimension_numbers<[1], [0], [0], [1], [0, 0, 1, 1], [], []>} : vector<16x64xbf16>, vector<64x64xbf16>, vector<16x64xf32> -> vector<16x64xf32>
      %c0_138 = arith.constant 0 : index
      %c0_139 = arith.constant 0 : index
      %263 = vector.load %arg8[%c0_138, %c0_139] : memref<1x64xf32, #tpu.memory_space<vmem>>, vector<1x64xf32>
      %264 = vector.broadcast %263 : vector<1x64xf32> to vector<16x64xf32>
      %265 = arith.addf %262, %264 : vector<16x64xf32>
      %266 = arith.addf %58, %265 : vector<16x64xf32>
      %c0_140 = arith.constant 0 : index
      %c0_141 = arith.constant 0 : index
      %267 = vector.load %arg9[%c0_140, %c0_141] : memref<1x64xf32, #tpu.memory_space<vmem>>, vector<1x64xf32>
      %c0_142 = arith.constant 0 : index
      %c0_143 = arith.constant 0 : index
      %268 = vector.load %arg10[%c0_142, %c0_143] : memref<1x64xf32, #tpu.memory_space<vmem>>, vector<1x64xf32>
      %cst_144 = arith.constant dense<0.000000e+00> : vector<16xf32>
      %269 = vector.multi_reduction <add>, %266, %cst_144 [1] : vector<16x64xf32> to vector<16xf32>
      %270 = vector.shape_cast %269 : vector<16xf32> to vector<16x1xf32>
      %cst_145 = arith.constant 6.400000e+01 : f32
      %271 = vector.broadcast %cst_145 : f32 to vector<16x1xf32>
      %272 = arith.divf %270, %271 : vector<16x1xf32>
      %273 = vector.broadcast %272 : vector<16x1xf32> to vector<16x64xf32>
      %274 = arith.subf %266, %273 : vector<16x64xf32>
      %275 = arith.mulf %274, %274 : vector<16x64xf32>
      %cst_146 = arith.constant dense<0.000000e+00> : vector<16xf32>
      %276 = vector.multi_reduction <add>, %275, %cst_146 [1] : vector<16x64xf32> to vector<16xf32>
      %277 = vector.shape_cast %276 : vector<16xf32> to vector<16x1xf32>
      %cst_147 = arith.constant 6.400000e+01 : f32
      %278 = vector.broadcast %cst_147 : f32 to vector<16x1xf32>
      %279 = arith.divf %277, %278 : vector<16x1xf32>
      %280 = vector.broadcast %272 : vector<16x1xf32> to vector<16x64xf32>
      %281 = arith.subf %266, %280 : vector<16x64xf32>
      %cst_148 = arith.constant 9.99999974E-6 : f32
      %282 = vector.broadcast %cst_148 : f32 to vector<16x1xf32>
      %283 = arith.addf %279, %282 : vector<16x1xf32>
      %284 = math.rsqrt %283 : vector<16x1xf32>
      %285 = vector.broadcast %284 : vector<16x1xf32> to vector<16x64xf32>
      %286 = arith.mulf %281, %285 : vector<16x64xf32>
      %287 = vector.broadcast %267 : vector<1x64xf32> to vector<16x64xf32>
      %288 = arith.mulf %286, %287 : vector<16x64xf32>
      %289 = vector.broadcast %268 : vector<1x64xf32> to vector<16x64xf32>
      %290 = arith.addf %288, %289 : vector<16x64xf32>
      %291 = arith.truncf %290 : vector<16x64xf32> to vector<16x64xbf16>
      %c0_149 = arith.constant 0 : index
      %c0_150 = arith.constant 0 : index
      %292 = vector.load %arg20[%c0_149, %c0_150] : memref<16x64xbf16, #tpu.memory_space<vmem>>, vector<16x64xbf16>
      tpu.vector_store %arg20[%c0_149, %c0_150], %291 {strides = array<i32>} : memref<16x64xbf16, #tpu.memory_space<vmem>>, vector<16x64xbf16>,
      %c0_151 = arith.constant 0 : index
      %c0_152 = arith.constant 0 : index
      %293 = vector.load %arg14[%c0_151, %c0_152] : memref<1x64xf32, #tpu.memory_space<vmem>>, vector<1x64xf32>
      %294 = vector.broadcast %293 : vector<1x64xf32> to vector<16x64xf32>
      %295 = arith.addf %266, %294 : vector<16x64xf32>
      %c0_153 = arith.constant 0 : index
      %c0_154 = arith.constant 0 : index
      %296 = vector.load %arg17[%c0_153, %c0_154] : memref<16x64xf32, #tpu.memory_space<vmem>>, vector<16x64xf32>
      tpu.vector_store %arg17[%c0_153, %c0_154], %295 {strides = array<i32>} : memref<16x64xf32, #tpu.memory_space<vmem>>, vector<16x64xf32>,
    } else {
    }
    %c0 = arith.constant 0 : index
    %c0_1 = arith.constant 0 : index
    %3 = vector.load %arg20[%c0, %c0_1] : memref<16x64xbf16, #tpu.memory_space<vmem>>, vector<16x64xbf16>
    %c0_2 = arith.constant 0 : index
    %c0_3 = arith.constant 0 : index
    %4 = vector.load %arg11[%c0_2, %c0_3] : memref<64x128xbf16, #tpu.memory_space<vmem>>, vector<64x128xbf16>
    %cst = arith.constant dense<0.000000e+00> : vector<16x128xf32>
    %5 = tpu.matmul %3, %4, %cst {dimension_numbers = #tpu.dot_dimension_numbers<[1], [0], [0], [1], [0, 0, 1, 1], [], []>} : vector<16x64xbf16>, vector<64x128xbf16>, vector<16x128xf32> -> vector<16x128xf32>
    %c0_4 = arith.constant 0 : index
    %c0_5 = arith.constant 0 : index
    %6 = vector.load %arg12[%c0_4, %c0_5] : memref<1x128xf32, #tpu.memory_space<vmem>>, vector<1x128xf32>
    %7 = vector.broadcast %6 : vector<1x128xf32> to vector<16x128xf32>
    %8 = arith.addf %5, %7 : vector<16x128xf32>
    %cst_6 = arith.constant 5.000000e-01 : f32
    %9 = vector.broadcast %cst_6 : f32 to vector<16x128xf32>
    %10 = arith.mulf %9, %8 : vector<16x128xf32>
    %cst_7 = arith.constant 0.707106769 : f32
    %11 = vector.broadcast %cst_7 : f32 to vector<16x128xf32>
    %12 = arith.mulf %8, %11 : vector<16x128xf32>
    %13 = math.absf %12 : vector<16x128xf32>
    %cst_8 = arith.constant 0.327591091 : f32
    %14 = vector.broadcast %cst_8 : f32 to vector<16x128xf32>
    %15 = arith.mulf %14, %13 : vector<16x128xf32>
    %cst_9 = arith.constant 1.000000e+00 : f32
    %16 = vector.broadcast %cst_9 : f32 to vector<16x128xf32>
    %17 = arith.addf %16, %15 : vector<16x128xf32>
    %cst_10 = arith.constant 1.000000e+00 : f32
    %18 = vector.broadcast %cst_10 : f32 to vector<16x128xf32>
    %19 = arith.divf %18, %17 : vector<16x128xf32>
    %cst_11 = arith.constant 1.06140542 : f32
    %20 = vector.broadcast %cst_11 : f32 to vector<16x128xf32>
    %21 = arith.mulf %20, %19 : vector<16x128xf32>
    %cst_12 = arith.constant -1.45315206 : f32
    %22 = vector.broadcast %cst_12 : f32 to vector<16x128xf32>
    %23 = arith.addf %21, %22 : vector<16x128xf32>
    %24 = arith.mulf %23, %19 : vector<16x128xf32>
    %cst_13 = arith.constant 1.42141378 : f32
    %25 = vector.broadcast %cst_13 : f32 to vector<16x128xf32>
    %26 = arith.addf %24, %25 : vector<16x128xf32>
    %27 = arith.mulf %26, %19 : vector<16x128xf32>
    %cst_14 = arith.constant -0.284496725 : f32
    %28 = vector.broadcast %cst_14 : f32 to vector<16x128xf32>
    %29 = arith.addf %27, %28 : vector<16x128xf32>
    %30 = arith.mulf %29, %19 : vector<16x128xf32>
    %cst_15 = arith.constant 0.254829586 : f32
    %31 = vector.broadcast %cst_15 : f32 to vector<16x128xf32>
    %32 = arith.addf %30, %31 : vector<16x128xf32>
    %33 = arith.mulf %32, %19 : vector<16x128xf32>
    %cst_16 = arith.constant 0.000000e+00 : f32
    %34 = vector.broadcast %cst_16 : f32 to vector<16x128xf32>
    %35 = arith.subf %34, %13 : vector<16x128xf32>
    %36 = arith.mulf %35, %13 : vector<16x128xf32>
    %37 = math.exp %36 : vector<16x128xf32>
    %38 = arith.mulf %33, %37 : vector<16x128xf32>
    %cst_17 = arith.constant 1.000000e+00 : f32
    %39 = vector.broadcast %cst_17 : f32 to vector<16x128xf32>
    %40 = arith.subf %39, %38 : vector<16x128xf32>
    %cst_18 = arith.constant 0.000000e+00 : f32
    %41 = vector.broadcast %cst_18 : f32 to vector<16x128xf32>
    %42 = arith.cmpf oge, %12, %41 : vector<16x128xf32>
    %cst_19 = arith.constant 0.000000e+00 : f32
    %43 = vector.broadcast %cst_19 : f32 to vector<16x128xf32>
    %44 = arith.subf %43, %40 : vector<16x128xf32>
    %45 = arith.select %42, %40, %44 : vector<16x128xi1>, vector<16x128xf32>
    %cst_20 = arith.constant 1.000000e+00 : f32
    %46 = vector.broadcast %cst_20 : f32 to vector<16x128xf32>
    %47 = arith.addf %46, %45 : vector<16x128xf32>
    %48 = arith.mulf %10, %47 : vector<16x128xf32>
    %c0_21 = arith.constant 0 : index
    %c0_22 = arith.constant 0 : index
    %49 = vector.load %arg17[%c0_21, %c0_22] : memref<16x64xf32, #tpu.memory_space<vmem>>, vector<16x64xf32>
    %50 = arith.truncf %48 : vector<16x128xf32> to vector<16x128xbf16>
    %c0_23 = arith.constant 0 : index
    %c0_24 = arith.constant 0 : index
    %51 = vector.load %arg13[%c0_23, %c0_24] : memref<128x64xbf16, #tpu.memory_space<vmem>>, vector<128x64xbf16>
    %cst_25 = arith.constant dense<0.000000e+00> : vector<16x64xf32>
    %52 = tpu.matmul %50, %51, %cst_25 {dimension_numbers = #tpu.dot_dimension_numbers<[1], [0], [0], [1], [0, 0, 1, 1], [], []>} : vector<16x128xbf16>, vector<128x64xbf16>, vector<16x64xf32> -> vector<16x64xf32>
    %53 = arith.addf %49, %52 : vector<16x64xf32>
    %c0_26 = arith.constant 0 : index
    %c0_27 = arith.constant 0 : index
    %54 = vector.load %arg17[%c0_26, %c0_27] : memref<16x64xf32, #tpu.memory_space<vmem>>, vector<16x64xf32>
    tpu.vector_store %arg17[%c0_26, %c0_27], %53 {strides = array<i32>} : memref<16x64xf32, #tpu.memory_space<vmem>>, vector<16x64xf32>,
    %c1_i32 = arith.constant 1 : i32
    %55 = arith.cmpi eq, %arg0, %c1_i32 : i32
    %56 = arith.extui %55 : i1 to i32
    %c0_i32_28 = arith.constant 0 : i32
    %57 = arith.cmpi ne, %56, %c0_i32_28 : i32
    scf.if %57 {
      %c0_29 = arith.constant 0 : index
      %c0_30 = arith.constant 0 : index
      %58 = vector.load %arg17[%c0_29, %c0_30] : memref<16x64xf32, #tpu.memory_space<vmem>>, vector<16x64xf32>
      %c0_31 = arith.constant 0 : index
      %c0_32 = arith.constant 0 : index
      %59 = vector.load %arg15[%c0_31, %c0_32] : memref<1x64xf32, #tpu.memory_space<vmem>>, vector<1x64xf32>
      %c0_33 = arith.constant 0 : index
      %c0_34 = arith.constant 0 : index
      %60 = vector.load %arg16[%c0_33, %c0_34] : memref<1x64xf32, #tpu.memory_space<vmem>>, vector<1x64xf32>
      %cst_35 = arith.constant dense<0.000000e+00> : vector<16xf32>
      %61 = vector.multi_reduction <add>, %58, %cst_35 [1] : vector<16x64xf32> to vector<16xf32>
      %62 = vector.shape_cast %61 : vector<16xf32> to vector<16x1xf32>
      %cst_36 = arith.constant 6.400000e+01 : f32
      %63 = vector.broadcast %cst_36 : f32 to vector<16x1xf32>
      %64 = arith.divf %62, %63 : vector<16x1xf32>
      %65 = vector.broadcast %64 : vector<16x1xf32> to vector<16x64xf32>
      %66 = arith.subf %58, %65 : vector<16x64xf32>
      %67 = arith.mulf %66, %66 : vector<16x64xf32>
      %cst_37 = arith.constant dense<0.000000e+00> : vector<16xf32>
      %68 = vector.multi_reduction <add>, %67, %cst_37 [1] : vector<16x64xf32> to vector<16xf32>
      %69 = vector.shape_cast %68 : vector<16xf32> to vector<16x1xf32>
      %cst_38 = arith.constant 6.400000e+01 : f32
      %70 = vector.broadcast %cst_38 : f32 to vector<16x1xf32>
      %71 = arith.divf %69, %70 : vector<16x1xf32>
      %72 = vector.broadcast %64 : vector<16x1xf32> to vector<16x64xf32>
      %73 = arith.subf %58, %72 : vector<16x64xf32>
      %cst_39 = arith.constant 9.99999974E-6 : f32
      %74 = vector.broadcast %cst_39 : f32 to vector<16x1xf32>
      %75 = arith.addf %71, %74 : vector<16x1xf32>
      %76 = math.rsqrt %75 : vector<16x1xf32>
      %77 = vector.broadcast %76 : vector<16x1xf32> to vector<16x64xf32>
      %78 = arith.mulf %73, %77 : vector<16x64xf32>
      %79 = vector.broadcast %59 : vector<1x64xf32> to vector<16x64xf32>
      %80 = arith.mulf %78, %79 : vector<16x64xf32>
      %81 = vector.broadcast %60 : vector<1x64xf32> to vector<16x64xf32>
      %82 = arith.addf %80, %81 : vector<16x64xf32>
      %c0_40 = arith.constant 0 : index
      %c0_41 = arith.constant 0 : index
      %83 = vector.load %arg17[%c0_40, %c0_41] : memref<16x64xf32, #tpu.memory_space<vmem>>, vector<16x64xf32>
      tpu.vector_store %arg17[%c0_40, %c0_41], %82 {strides = array<i32>} : memref<16x64xf32, #tpu.memory_space<vmem>>, vector<16x64xf32>,
    } else {
    }
    return
  }
  func.func @transform_0(%arg0: i32) -> (i32, i32) {
    %c0_i32 = arith.constant 0 : i32
    %c0_i32_0 = arith.constant 0 : i32
    %c0_i32_1 = arith.constant 0 : i32
    return %c0_i32, %c0_i32_0 : i32, i32
  }
  func.func @transform_1(%arg0: i32) -> (i32, i32) {
    %c0_i32 = arith.constant 0 : i32
    %c0_i32_0 = arith.constant 0 : i32
    %c0_i32_1 = arith.constant 0 : i32
    return %c0_i32, %c0_i32_0 : i32, i32
  }
  func.func @transform_2(%arg0: i32) -> (i32, i32) {
    %c0_i32 = arith.constant 0 : i32
    %c0_i32_0 = arith.constant 0 : i32
    %c0_i32_1 = arith.constant 0 : i32
    return %c0_i32, %c0_i32_0 : i32, i32
  }
  func.func @transform_3(%arg0: i32) -> (i32, i32) {
    %c0_i32 = arith.constant 0 : i32
    %c0_i32_0 = arith.constant 0 : i32
    %c0_i32_1 = arith.constant 0 : i32
    return %c0_i32, %c0_i32_0 : i32, i32
  }
  func.func @transform_4(%arg0: i32) -> (i32, i32) {
    %c0_i32 = arith.constant 0 : i32
    %c0_i32_0 = arith.constant 0 : i32
    %c0_i32_1 = arith.constant 0 : i32
    return %c0_i32, %c0_i32_0 : i32, i32
  }
  func.func @transform_5(%arg0: i32) -> (i32, i32) {
    %c0_i32 = arith.constant 0 : i32
    %c0_i32_0 = arith.constant 0 : i32
    %c0_i32_1 = arith.constant 0 : i32
    return %c0_i32, %c0_i32_0 : i32, i32
  }
  func.func @transform_6(%arg0: i32) -> (i32, i32) {
    %c0_i32 = arith.constant 0 : i32
    %c0_i32_0 = arith.constant 0 : i32
    %c0_i32_1 = arith.constant 0 : i32
    return %c0_i32, %c0_i32_0 : i32, i32
  }
  func.func @transform_7(%arg0: i32) -> (i32, i32) {
    %c0_i32 = arith.constant 0 : i32
    %c0_i32_0 = arith.constant 0 : i32
    %c0_i32_1 = arith.constant 0 : i32
    return %c0_i32, %c0_i32_0 : i32, i32
  }
  func.func @transform_8(%arg0: i32) -> (i32, i32) {
    %c0_i32 = arith.constant 0 : i32
    %c0_i32_0 = arith.constant 0 : i32
    %c0_i32_1 = arith.constant 0 : i32
    return %c0_i32, %c0_i32_0 : i32, i32
  }
  func.func @transform_9(%arg0: i32) -> (i32, i32) {
    %c0_i32 = arith.constant 0 : i32
    %c0_i32_0 = arith.constant 0 : i32
    %c0_i32_1 = arith.constant 0 : i32
    return %c0_i32, %c0_i32_0 : i32, i32
  }
  func.func @transform_10(%arg0: i32) -> (i32, i32) {
    %c0_i32 = arith.constant 0 : i32
    %c0_i32_0 = arith.constant 0 : i32
    return %c0_i32, %arg0 : i32, i32
  }
  func.func @transform_11(%arg0: i32) -> (i32, i32) {
    %c0_i32 = arith.constant 0 : i32
    %c0_i32_0 = arith.constant 0 : i32
    return %c0_i32, %arg0 : i32, i32
  }
  func.func @transform_12(%arg0: i32) -> (i32, i32) {
    %c0_i32 = arith.constant 0 : i32
    %c0_i32_0 = arith.constant 0 : i32
    return %arg0, %c0_i32 : i32, i32
  }
  func.func @transform_13(%arg0: i32) -> (i32, i32) {
    %c0_i32 = arith.constant 0 : i32
    %c0_i32_0 = arith.constant 0 : i32
    %c0_i32_1 = arith.constant 0 : i32
    return %c0_i32, %c0_i32_0 : i32, i32
  }
  func.func @transform_14(%arg0: i32) -> (i32, i32) {
    %c0_i32 = arith.constant 0 : i32
    %c0_i32_0 = arith.constant 0 : i32
    %c0_i32_1 = arith.constant 0 : i32
    return %c0_i32, %c0_i32_0 : i32, i32
  }
  func.func @transform_15(%arg0: i32) -> (i32, i32) {
    %c0_i32 = arith.constant 0 : i32
    %c0_i32_0 = arith.constant 0 : i32
    %c0_i32_1 = arith.constant 0 : i32
    return %c0_i32, %c0_i32_0 : i32, i32
  }
  func.func @transform_16(%arg0: i32) -> (i32, i32) {
    %c0_i32 = arith.constant 0 : i32
    %c0_i32_0 = arith.constant 0 : i32
    %c0_i32_1 = arith.constant 0 : i32
    return %c0_i32, %c0_i32_0 : i32, i32
  }
}

</mosaic_0001>

<bundles_post_ra>
// kernel: frozen_openclip_embedder_forward.3
= control target key start
LH: loop header
LB: loop body
LE: loop exit
PB: predicated region body
PF: predicated region fallthrough
CT: control target
= control target key end

     0   :  { %s3188_s0 = inlined_call_operand.vmem [shape: f32[16,64], index: 0, kind: input, shape index: {}]   ;;  %s3189_s1 = inlined_call_operand.vmem [shape: f32[8,8], index: 1, kind: input, shape index: {}]   ;;  %s3190_s2 = inlined_call_operand.vmem [shape: f32[1,64], index: 2, kind: input, shape index: {}]   ;;  %s3191_s3 = inlined_call_operand.vmem [shape: f32[1,64], index: 3, kind: input, shape index: {}]   ;;  %s3192_s4 = inlined_call_operand.vmem [shape: bf16[64,192], index: 4, kind: input, shape index: {}]   ;;  %s3193_s5 = inlined_call_operand.vmem [shape: f32[1,192], index: 5, kind: input, shape index: {}]   ;;  %s3194_s6 = inlined_call_operand.vmem [shape: bf16[64,64], index: 6, kind: input, shape index: {}]   ;;  %s3195_s7 = inlined_call_operand.vmem [shape: f32[1,64], index: 7, kind: input, shape index: {}]   ;;  %s3196_s8 = inlined_call_operand.vmem [shape: f32[1,64], index: 8, kind: input, shape index: {}]   ;;  %s3197_s9 = inlined_call_operand.vmem [shape: f32[1,64], index: 9, kind: input, shape index: {}]   ;;  %s3198_s10 = inlined_call_operand.vmem [shape: bf16[64,256], index: 10, kind: input, shape index: {}]   ;;  %s3199_s11 = inlined_call_operand.vmem [shape: f32[1,256], index: 11, kind: input, shape index: {}]   ;;  %s3200_s12 = inlined_call_operand.vmem [shape: bf16[256,64], index: 12, kind: input, shape index: {}]   ;;  %s3201_s13 = inlined_call_operand.vmem [shape: f32[1,64], index: 13, kind: input, shape index: {}]   ;;  %s3202_s14 = inlined_call_operand.vmem [shape: f32[1,64], index: 14, kind: input, shape index: {}]   ;;  %s3203_s15 = inlined_call_operand.vmem [shape: f32[1,64], index: 15, kind: input, shape index: {}]   ;;  %s3204_s16 = inlined_call_operand.hbm [shape: f32[16,64], index: 16, kind: output, shape index: {}]  }
   0x1   :  { %3210 = sst [smem:[#allocation12_spill]] %s3188_s0 }
   0x2   :  { %3211 = sst [smem:[#allocation13_spill]] %s3198_s10 }
   0x3   :  { %3212 = sst [smem:[#allocation14_spill]] %s3204_s16 }
   0x4   :  { %21 = vsyncpa [#allocation7], 0  ;;  %s2795_s21 = smov 0   ;;  %s2797_s22 = smov 0  }
   0x5   :  { %s2799_s23 = smov 0  }
   0x6 LB: > { %3213 = sst [smem:[#allocation9_spill]] %s2689_s22  ;;  %s2811_s24 = sadd.s32 4294967295, %s2693_s23   ;;  %s2693_s23 = sphi %s2799_s23, %s3220_s23   ;;  %s2689_s22 = sphi %s2797_s22, %s3222_s22   ;;  %s2685_s21 = sphi %s2795_s21, %s3221_s21  }
   0x7   : > { %s2814_s25 = sadd.s32 1, %s2693_s23   ;;  %s244_s27 = sadd.s32 1, %s2689_s22 }
   0x8   : > { %3214 = sst [smem:[#allocation10_spill]] %s2814_s25  ;;  %s241_s26 = ssub.s32 %s2693_s23, %s2814_s25 }
   0x9   : > { %p242_p0 = scmp.eq.s32.totalorder %s241_s26, 0  ;;  %p251_p1 = scmp.ne.s32.totalorder %s2689_s22, %s2685_s21 }
   0xa   : > { %p252_p2 = scmp.eq.s32.totalorder %s2693_s23, 0  ;;  %p2260_p4 = scmp.ge.s32.totalorder %s2693_s23, 2 }
   0xb   : > { %s2823_s28 = scalar_select %p242_p0, %s2689_s22, %s244_s27  }
   0xc   : > { %p253_p3 = por %p252_p2, %p251_p1  ;;  %452 = sbr.rel (%p2260_p4) target bundleno = 34 (0x22), region = 68 }
   0xd   : > { %3215 = sst [smem:[#allocation11_spill]] %s2823_s28 }
  0x13   : > { %455 = sbr.rel (!%p253_p3) target bundleno = 34 (0x22), region = 72  ;;  %s457_s29 = sand.u32 (%p253_p3), 1, %s2689_s22  }
  0x14   : > { %s2262_s30 = sshll.u32 (%p253_p3), %s2693_s23, 2  ;;  %s2261_s0 = sshll.u32 (%p253_p3), %s457_s29, 5 }
  0x15   : > { %s3216_s10 = sld [smem:[#allocation13_spill]] (%p253_p3)  ;;  %s459_s20 = scalar_lea.vmem (%p253_p3), [#allocation5], %s2261_s0 }
  0x1b   : > { %s461_s19 = scalar_lea.vmem %s3216_s10, %s2262_s30 }
  0x1c   : > { %v477_v0 = vld [vmem:[%s461_s19] sm:$0xf]  ;;  %v479_v1 = vld [vmem:[%s461_s19 + $0x8] sm:$0xf]  ;;  %v481_v2 = vld [vmem:[%s461_s19 + $0x10] sm:$0xf] }
  0x1d   : > { %478 = vst [vmem:[%s459_s20] sm:$0xf] %v477_v0  ;;  %480 = vst [vmem:[%s459_s20 + $0x4] sm:$0xf] %v479_v1  ;;  %v483_v3 = vld [vmem:[%s461_s19 + $0x18] sm:$0xf] }
  0x1e   : > { %v485_v4 = vld [vmem:[%s461_s19 + $0x20] sm:$0xf]  ;;  %482 = vst [vmem:[%s459_s20 + $0x8] sm:$0xf] %v481_v2  ;;  %484 = vst [vmem:[%s459_s20 + $0xc] sm:$0xf] %v483_v3 }
  0x1f   : > { %486 = vst [vmem:[%s459_s20 + $0x10] sm:$0xf] %v485_v4  ;;  %v487_v5 = vld [vmem:[%s461_s19 + $0x28] sm:$0xf]  ;;  %v489_v6 = vld [vmem:[%s461_s19 + $0x30] sm:$0xf] }
  0x20   : > { %v491_v7 = vld [vmem:[%s461_s19 + $0x38] sm:$0xf]  ;;  %488 = vst [vmem:[%s459_s20 + $0x14] sm:$0xf] %v487_v5  ;;  %490 = vst [vmem:[%s459_s20 + $0x18] sm:$0xf] %v489_v6 }
  0x21   : > { %492 = vst [vmem:[%s459_s20 + $0x1c] sm:$0xf] %v491_v7 }
  0x22 PF: > { %p2263_p5 = scmp.ge.s32.totalorder %s2693_s23, 1  ;;  %p545_p6 = scmp.lt.s32.totalorder %s2693_s23, 3 }
  0x24   : > { %p546_p7 = pnand %p2263_p5, %p545_p6 }
  0x25   : > { %s552_s26 = sand.u32 (!%p546_p7), 1, %s2685_s21   ;;  %p604_p8 = scmp.lt.s32.totalorder (!%p546_p7), %s2811_s24, 1 }
  0x26   : > { %549 = sbr.rel (%p546_p7) target bundleno = 3584 (0xe00), region = 121  ;;  %s2264_s27 = sshll.u32 (!%p546_p7), %s552_s26, 5 }
  0x27   : > { %s2265_s29 = sshll.u32 (!%p546_p7), %s2811_s24, 4  ;;  %s2848_s28 = scalar_lea.vmem (!%p546_p7), [#allocation5], %s2264_s27 }
  0x28   : > { %p608_p9 = scmp.lt.s32.totalorder (!%p546_p7), %s2265_s29, 31  ;;  %p2267_p10 = scmp.ne.s32.totalorder (!%p546_p7), %s2811_s24, 0 }
  0x2d   : > { %s2837_s30 = scalar_select %p604_p8, %s2811_s24, 1 }
  0x2e   : > { %s3224_s29 = smov (!%p608_p9, %s2265_s29), 31  ;;  %617 = sbr.rel (%p2267_p10) target bundleno = 2729 (0xaa9), region = 129 }
  0x2f   : > { %s606_s18 = scalar_lea.vmem %s3199_s11, %s2837_s30  ;;  %s2266_s23 = sshll.u32 %s3224_s29, 2  ;;  %vm622_vm0 = vcmask (!%p2267_p10), 523264   ;;  %v2561_v22 = vld [vmem:[%s3192_s4 + $0x4] ss:$8 sps:$4 sm:$0xff] (!%p2267_p10)   ;;  %v2563_v23 = vld [vmem:[%s3192_s4] ss:$8 sps:$4 sm:$0xff] (!%p2267_p10)   ;;  %v677_v48 = vlaneseq (!%p2267_p10) }
  0x30   : > { %s2846_s10 = scalar_lea.vmem %s3200_s12, %s2266_s23  ;;  %s3217_s22 = sld [smem:[#allocation12_spill]] (!%p2267_p10)  ;;  %730 = vmatprep.subr.bf16.mxu0 (!%p2267_p10), %v2561_v22  ;;  %v2564_v24 = vld [vmem:[%s3192_s4 + $0x14] ss:$8 sps:$4 sm:$0xff] (!%p2267_p10)   ;;  %v2566_v25 = vld [vmem:[%s3192_s4 + $0x10] ss:$8 sps:$4 sm:$0xff] (!%p2267_p10)   ;;  %v2695_v30 = vmov (!%p2267_p10), 0  }
  0x31   : > { %731 = vmatpush1.bf16.msra.mxu0 (!%p2267_p10), %v2563_v23  ;;  %v2567_v26 = vld [vmem:[%s3192_s4 + $0x24] ss:$8 sps:$4 sm:$0xff] (!%p2267_p10)   ;;  %v2569_v27 = vld [vmem:[%s3192_s4 + $0x20] ss:$8 sps:$4 sm:$0xff] (!%p2267_p10)   ;;  %v2570_v28 = vld [vmem:[%s3192_s4 + $0x34] ss:$8 sps:$4 sm:$0xff] (!%p2267_p10)   ;;  %762 = vmatprep.mubr.bf16.mxu0 (!%p2267_p10), %v2695_v30 }
  0x32   : > { %732 = vmatprep.subr.bf16.mxu0 (!%p2267_p10), %v2564_v24  ;;  %v2572_v29 = vld [vmem:[%s3192_s4 + $0x30] ss:$8 sps:$4 sm:$0xff] (!%p2267_p10)   ;;  %v2268_v39 = vld [vmem:[%s3190_s2] ss:$0 sm:$0xff] (!%p2267_p10)  ;;  %v678_v49 = vshrl.u32 (!%p2267_p10), %v677_v48, 7  ;;  %v2696_v50 = vmov (!%p2267_p10), 0.0  }
  0x33   : > { %v2269_v43 = vld [vmem:[%s3191_s3] ss:$0 sm:$0xff] (!%p2267_p10)  ;;  %2376 = vmatprep.subr.bf16.mxu1 (!%p2267_p10), %v2696_v50  ;;  %vm2697_vm1 = vmmov (!%p2267_p10), 0   ;;  %s2698_s16 = smov (!%p2267_p10), 64   ;;  %s2700_s27 = smov (!%p2267_p10), 96   ;;  %vm785_vm2 = vcmask (!%p2267_p10), 130048  }
  0x34   : > { %v679_v51 = vsub.s32 (!%p2267_p10), 0, %v678_v49  ;;  %v675_v52 = vld [vmem:[%s3193_s5] sm:$0x3] (!%p2267_p10)  ;;  %v683_v53 = vsub.s32 (!%p2267_p10), 1, %v678_v49  ;;  %2378 = vmatprep.mubr.msk.bf16.mxu1 (!%p2267_p10), %vm2697_vm1, %v2696_v50  ;;  %s2701_s29 = smov (!%p2267_p10), 80   ;;  %s2702_s17 = smov (!%p2267_p10), 48  }
  0x35   : > { %733 = vmatpush1.bf16.msra.mxu0 %v2566_v25  ;;  %s2703_s23 = smov 32   ;;  %s2704_s19 = smov 16   ;;  %vm848_vm3 = vcmask 1043456   ;;  %v2936_v7 = vld [vmem:[%s3189_s1] sm:$0xff]  ;;  %vm832_vm4 = vcmask 64512   ;;  %vm1013_vm5 = vcmask 261248  }
  0x36   : > { %s3218_s25 = smov %s3217_s22  ;;  %v2854_v8 = vld [vmem:[%s3217_s22] sm:$0xff]  ;;  %734 = vmatprep.subr.bf16.mxu0 %v2567_v26  ;;  %v680_v54 = vrot.slane %v675_v52, %v679_v51  ;;  %v684_v55 = vrot.slane %v675_v52, %v683_v53  ;;  %s2699_s22 = smov 112   ;;  %vm1135_vm6 = vcmask 392448   ;;  %vm1257_vm7 = vcmask 523648  }
  0x37   : > { %v2859_v9 = vld [vmem:[%s3218_s25 + $0x8] sm:$0xff]  ;;  %v623_v10 = vsel %vm622_vm0, %v2854_v8, 0.0 }
  0x38   : > { %624 = vadd.xlane.f32.xlu0 %v623_v10  ;;  %v626_v11 = vsel %vm622_vm0, %v2859_v9, 0.0 }
  0x39   : > { %735 = vmatpush1.bf16.msra.mxu0 %v2569_v27 }
  0x3a   : > { %736 = vmatprep.subr.bf16.mxu0 %v2570_v28 }
  0x3c   : > { %627 = vadd.xlane.f32.xlu0 %v626_v11 }
  0x3d   : > { %737 = vmatpush1.bf16.msra.mxu0 %v2572_v29 }
  0x3e   : > { %2400 = vmatprep.subr.bf16.mxu0 %v2696_v50 }
  0xc5   : > { %v625_v12 = vpop.xlane.xlu0 %624 }
  0xc6   : > { %v630_v13 = vmul.f32 0.015625, %v625_v12 }
  0xc8   : > { %v632_v14 = vsub.f32 %v2854_v8, %v630_v13 }
  0xc9   : > { %v628_v15 = vpop.xlane.xlu0 %627 }
  0xca   : > { %v631_v16 = vmul.f32 0.015625, %v628_v15  ;;  %v634_v17 = vmul.f32 %v632_v14, %v632_v14 }
  0xcc   : > { %v633_v18 = vsub.f32 %v2859_v9, %v631_v16  ;;  %v636_v19 = vsel %vm622_vm0, %v634_v17, 0.0 }
  0xcd   : > { %637 = vadd.xlane.f32.xlu1 %v636_v19 }
  0xce   : > { %v635_v20 = vmul.f32 %v633_v18, %v633_v18 }
  0xd0   : > { %v639_v21 = vsel %vm622_vm0, %v635_v20, 0.0 }
  0xd1   : > { %640 = vadd.xlane.f32.xlu1 %v639_v21 }
 0x15a   : > { %v638_v31 = vpop.xlane.xlu1 %637 }
 0x15b   : > { %v642_v32 = vmul.f32 0.015625, %v638_v31 }
 0x15d   : > { %v644_v33 = vadd.f32 1e-05, %v642_v32 }
 0x15e   : > { %v641_v34 = vpop.xlane.xlu1 %640 }
 0x15f   : > { %2577 = vrsqrt.f32 %v644_v33  ;;  %v643_v35 = vmul.f32 0.015625, %v641_v34 }
 0x161   : > { %v645_v36 = vadd.f32 1e-05, %v643_v35 }
 0x163   : > { %2579 = vrsqrt.f32 %v645_v36 }
 0x169   : > { %v2578_v37 = vpop.eup %2577 }
 0x16a   : > { %v648_v38 = vmul.f32 %v2578_v37, %v632_v14 }
 0x16c   : > { %v656_v42 = vmul.f32 %v2268_v39, %v648_v38 }
 0x16d   : > { %v2580_v40 = vpop.eup %2579 }
 0x16e   : > { %v649_v41 = vmul.f32 %v2580_v40, %v633_v18  ;;  %v664_v45 = vadd.f32 %v2269_v43, %v656_v42 }
 0x170   : > { %v657_v44 = vmul.f32 %v2268_v39, %v649_v41 }
 0x172   : > { %v665_v46 = vadd.f32 %v2269_v43, %v657_v44 }
 0x174   : > { %v666_v47 = vpack.c.bf16 %v665_v46, %v664_v45 }
 0x176   : > { %2278 = vmatmul.mubr.msk.bf16.vlgmr.msra.gmra.mrb[0].mxu0 %vm622_vm0, %v666_v47 }
 0x177   : > { %2402 = vmatprep.mubr.msk.bf16.mxu0 %vm2697_vm1, %v2696_v50 }
 0x249   : > { %v764_v56 = vpop.f32.mrb[0].mxu0 }
 0x24a   : > { %v765_v57 = vadd.f32 %v764_v56, %v680_v54  ;;  %v766_v58 = vpop.f32.mrb[1].mxu0 }
 0x24b   : > { %v767_v59 = vadd.f32 %v766_v58, %v684_v55  ;;  %v768_v60 = vpop.f32.mrb[2].mxu0 }
 0x24c   : > { %v769_v61 = vadd.f32 %v768_v60, %v680_v54  ;;  %v770_v62 = vpop.f32.mrb[3].mxu0  ;;  %v779_v63 = vpack.c.bf16 %v765_v57, %v765_v57 }
 0x24d   : > { %774 = vst.msk [vmem:[#allocation2 + $0x8] sm:$0xff] %vm622_vm0, %v767_v59  ;;  %v771_v0 = vadd.f32 %v770_v62, %v684_v55 }
 0x24e   : > { %783 = vrot.lane.b32.xlu0 %v779_v63, %s2698_s16  ;;  %v2915_v1 = vpack.c.bf16 %v769_v61, %v769_v61 }
 0x24f   : > { %776 = vst.msk [vmem:[#allocation2 + $0x18] sm:$0xff] %vm622_vm0, %v771_v0 }
 0x252   : > { %898 = vrot.lane.b32.xlu0 %v779_v63, %s2699_s22 }
 0x254   : > { %v780_v4 = vld [vmem:[#allocation2 + $0x8] sm:$0xff] }
 0x255   : > { %v2925_v5 = vpack.c.bf16 %v780_v4, %v780_v4 }
 0x256   : > { %1020 = vrot.lane.b32.xlu0 %v779_v63, %s2700_s27 }
 0x257   : > { %v850_v6 = vsel %vm848_vm3, %v2925_v5, 0 }
 0x25a   : > { %1142 = vrot.lane.b32.xlu0 %v779_v63, %s2701_s29 }
 0x25e   : > { %1378 = vrot.lane.b32.xlu0 %v2915_v1, %s2702_s17 }
 0x262   : > { %1499 = vrot.lane.b32.xlu0 %v2915_v1, %s2703_s23 }
 0x266   : > { %1620 = vrot.lane.b32.xlu0 %v2915_v1, %s2704_s19 }
 0x2c0   : > { %v784_v2 = vpop.permute.xlu0 %783 }
 0x2c1   : > { %v790_v3 = vsel %vm785_vm2, %v784_v2, 0 }
 0x2c2   : > { %2377 = vmatpush3.bf16.xpose.msra.mxu1 %v790_v3 }
 0x2c3   : > { %2382 = vmatprep.subr.bf16.mxu1 %v2696_v50 }
 0x2c4   : > { %v899_v25 = vpop.permute.xlu0 %898 }
 0x2c8   : > { %v1021_v30 = vpop.permute.xlu0 %1020 }
 0x2c9   : > { %2379 = vmatmul.mubr.msk.bf16.vlgmr.msra.gmra.mrb[0].mxu1 %vm785_vm2, %v779_v63 }
 0x2ca   : > { %2383 = vmatpush3.bf16.msra.mxu1 %v850_v6  ;;  %2384 = vmatprep.mubr.msk.bf16.mxu1 %vm2697_vm1, %v2696_v50 }
 0x2cb   : > { %2388 = vmatprep.subr.bf16.mxu1 %v2696_v50 }
 0x2cc   : > { %v1143_v34 = vpop.permute.xlu0 %1142 }
 0x2d0   : > { %v1379_v36 = vpop.permute.xlu0 %1378 }
 0x2d1   : > { %v1384_v37 = vsel %vm785_vm2, %v1379_v36, 0 }
 0x2d4   : > { %v1500_v38 = vpop.permute.xlu0 %1499 }
 0x2d5   : > { %v1505_v40 = vsel %vm785_vm2, %v1500_v38, 0 }
 0x2d8   : > { %v1621_v41 = vpop.permute.xlu0 %1620 }
 0x2d9   : > { %v1626_v43 = vsel %vm785_vm2, %v1621_v41, 0 }
 0x39c   : > { %v826_v10 = vpop.f32.mrb[0].mxu1 }
 0x39d   : > { %v827_v11 = vadd.f32 %v826_v10, %v2936_v7  ;;  %v2380_v12 = vpop.f32.mrb[1].mxu1 }
 0x39e   : > { %v829_v13 = vpop.f32.mrb[2].mxu1 }
 0x39f   : > { %v2381_v14 = vpop.f32.mrb[3].mxu1  ;;  %v833_v15 = vsel %vm832_vm4, %v827_v11, -inf }
 0x3a0   : > { %834 = vmax.xlane.f32.xlu1 %v833_v15 }
 0x42d   : > { %v835_v16 = vpop.xlane.xlu1 %834 }
 0x42e   : > { %v836_v17 = vsub.f32 %v827_v11, %v835_v16 }
 0x430   : > { %v837_v18 = vmul.f32 1.442695, %v836_v17 }
 0x432   : > { %2581 = vpow2.f32 %v837_v18 }
 0x43c   : > { %v2582_v19 = vpop.eup %2581 }
 0x43d   : > { %v839_v20 = vsel %vm832_vm4, %v2582_v19, 0.0 }
 0x43e   : > { %840 = vadd.xlane.f32.xlu1 %v839_v20 }
 0x44f   : > { %900 = vrot.lane.b32.xlu1 %v779_v63, %s2702_s17 }
 0x453   : > { %1022 = vrot.lane.b32.xlu1 %v779_v63, %s2703_s23 }
 0x457   : > { %1144 = vrot.lane.b32.xlu1 %v779_v63, %s2704_s19 }
 0x45b   : > { %1264 = vrot.lane.b32.xlu1 %v2915_v1, %s2698_s16 }
 0x45f   : > { %1376 = vrot.lane.b32.xlu1 %v2915_v1, %s2699_s22 }
 0x463   : > { %1497 = vrot.lane.b32.xlu1 %v2915_v1, %s2700_s27 }
 0x467   : > { %1618 = vrot.lane.b32.xlu1 %v2915_v1, %s2701_s29 }
 0x4cb   : > { %v841_v21 = vpop.xlane.xlu1 %840 }
 0x4cc   : > { %2583 = vrcp.f32 %v841_v21 }
 0x4cf   : > { %v901_v22 = vpop.permute.xlu1 %900 }
 0x4d0   : > { %v906_v31 = vsel %vm785_vm2, %v901_v22, 0 }
 0x4d3   : > { %v1023_v23 = vpop.permute.xlu1 %1022 }
 0x4d4   : > { %v1028_v24 = vsel %vm785_vm2, %v1023_v23, 0 }
 0x4d5   : > { %2401 = vmatpush3.bf16.xpose.msra.mxu0 %v1028_v24 }
 0x4d6   : > { %v2584_v26 = vpop.eup %2583  ;;  %2412 = vmatprep.subr.bf16.mxu0 %v2696_v50 }
 0x4d7   : > { %v843_v27 = vmul.f32 %v2584_v26, %v2582_v19  ;;  %v1145_v28 = vpop.permute.xlu1 %1144 }
 0x4d8   : > { %v1150_v32 = vsel %vm785_vm2, %v1145_v28, 0 }
 0x4d9   : > { %v844_v29 = vpack.c.bf16 %v843_v27, %v843_v27 }
 0x4db   : > { %2385 = vmatmul.mubr.msk.bf16.vlgmr.msra.gmra.mrb[4].mxu1 %vm832_vm4, %v844_v29  ;;  %v1265_v33 = vpop.permute.xlu1 %1264 }
 0x4dc   : > { %2389 = vmatpush3.bf16.xpose.msra.mxu1 %v906_v31  ;;  %2403 = vmatmul.mubr.msk.bf16.vlgmr.msra.gmra.mrb[4].mxu0 %vm785_vm2, %v1021_v30  ;;  %v1270_v35 = vsel %vm785_vm2, %v1265_v33, 0 }
 0x4dd   : > { %2413 = vmatpush3.bf16.xpose.msra.mxu0 %v1150_v32  ;;  %2390 = vmatprep.mubr.msk.bf16.mxu1 %vm2697_vm1, %v2696_v50 }
 0x4de   : > { %2414 = vmatprep.mubr.msk.bf16.mxu0 %vm2697_vm1, %v2696_v50  ;;  %2424 = vmatprep.subr.bf16.mxu0 %v2696_v50 }
 0x4df   : > { %2394 = vmatprep.subr.bf16.mxu1 %v2696_v50  ;;  %v1377_v39 = vpop.permute.xlu1 %1376 }
 0x4e3   : > { %2391 = vmatmul.mubr.msk.bf16.vlgmr.msra.gmra.mrb[8].mxu1 %vm785_vm2, %v899_v25  ;;  %v1498_v42 = vpop.permute.xlu1 %1497 }
 0x4e4   : > { %2415 = vmatmul.mubr.msk.bf16.vlgmr.msra.gmra.mrb[8].mxu0 %vm785_vm2, %v1143_v34  ;;  %2396 = vmatprep.mubr.msk.bf16.mxu1 %vm2697_vm1, %v2696_v50 }
 0x4e5   : > { %2425 = vmatpush3.bf16.xpose.msra.mxu0 %v1270_v35  ;;  %2426 = vmatprep.mubr.msk.bf16.mxu0 %vm2697_vm1, %v2696_v50 }
 0x4e6   : > { %2436 = vmatprep.subr.bf16.mxu0 %v2696_v50 }
 0x4e7   : > { %v1619_v44 = vpop.permute.xlu1 %1618 }
 0x4ec   : > { %2427 = vmatmul.mubr.msk.bf16.vlgmr.msra.gmra.mrb[12].mxu0 %vm785_vm2, %v2915_v1 }
 0x4ed   : > { %2437 = vmatpush3.bf16.xpose.msra.mxu0 %v1384_v37  ;;  %2438 = vmatprep.mubr.msk.bf16.mxu0 %vm2697_vm1, %v2696_v50 }
 0x4ee   : > { %2448 = vmatprep.subr.bf16.mxu0 %v2696_v50 }
 0x4f4   : > { %2439 = vmatmul.mubr.msk.bf16.vlgmr.msra.gmra.mrb[16].mxu0 %vm785_vm2, %v1377_v39 }
 0x4f5   : > { %2449 = vmatpush3.bf16.xpose.msra.mxu0 %v1505_v40  ;;  %2450 = vmatprep.mubr.msk.bf16.mxu0 %vm2697_vm1, %v2696_v50 }
 0x4f6   : > { %2460 = vmatprep.subr.bf16.mxu0 %v2696_v50 }
 0x4fc   : > { %2451 = vmatmul.mubr.msk.bf16.vlgmr.msra.gmra.mrb[20].mxu0 %vm785_vm2, %v1498_v42 }
 0x4fd   : > { %2461 = vmatpush3.bf16.xpose.msra.mxu0 %v1626_v43  ;;  %2462 = vmatprep.mubr.msk.bf16.mxu0 %vm2697_vm1, %v2696_v50 }
 0x4fe   : > { %2472 = vmatprep.subr.bf16.mxu0 %v2696_v50 }
 0x504   : > { %2463 = vmatmul.mubr.msk.bf16.vlgmr.msra.gmra.mrb[24].mxu0 %vm785_vm2, %v1619_v44 }
 0x505   : > { %2480 = vmatprep.mubr.msk.bf16.mxu0 %vm2697_vm1, %v2696_v50 }
 0x5ae   : > { %v886_v45 = vpop.f32.mrb[4].mxu1 }
 0x5af   : > { %892 = vst.msk [vmem:[#allocation3] sm:$0xff] %vm785_vm2, %v886_v45  ;;  %v2386_v46 = vpop.f32.mrb[5].mxu1  ;;  %v1064_v47 = vpop.f32.mrb[4].mxu0 }
 0x5b0   : > { %v1065_v48 = vadd.f32 %v1064_v47, %v2936_v7  ;;  %v889_v49 = vpop.f32.mrb[6].mxu1  ;;  %v2404_v51 = vpop.f32.mrb[5].mxu0 }
 0x5b1   : > { %v2387_v52 = vpop.f32.mrb[7].mxu1  ;;  %v1067_v53 = vpop.f32.mrb[6].mxu0 }
 0x5b2   : > { %v2405_v54 = vpop.f32.mrb[7].mxu0  ;;  %v1070_v55 = vsel %vm832_vm4, %v1065_v48, -inf }
 0x5b3   : > { %1071 = vmax.xlane.f32.xlu1 %v1070_v55 }
 0x5b6   : > { %v942_v56 = vpop.f32.mrb[8].mxu1 }
 0x5b7   : > { %v943_v57 = vadd.f32 %v942_v56, %v2936_v7  ;;  %v2392_v58 = vpop.f32.mrb[9].mxu1  ;;  %v1186_v59 = vpop.f32.mrb[8].mxu0 }
 0x5b8   : > { %v945_v60 = vpop.f32.mrb[10].mxu1  ;;  %v2416_v61 = vpop.f32.mrb[9].mxu0  ;;  %v1187_v62 = vadd.f32 %v1186_v59, %v2936_v7 }
 0x5b9   : > { %v2393_v63 = vpop.f32.mrb[11].mxu1  ;;  %v1189_v0 = vpop.f32.mrb[10].mxu0  ;;  %v948_v1 = vsel %vm832_vm4, %v943_v57, -inf }
 0x5ba   : > { %949 = vmax.xlane.f32.xlu0 %v948_v1  ;;  %v2417_v2 = vpop.f32.mrb[11].mxu0  ;;  %v1192_v3 = vsel %vm832_vm4, %v1187_v62, -inf }
 0x5be   : > { %1193 = vmax.xlane.f32.xlu0 %v1192_v3  ;;  %v1373_v3 = vld [vmem:[#allocation2 + $0x18] sm:$0xff] }
 0x5bf   : > { %v1306_v4 = vpop.f32.mrb[12].mxu0 }
 0x5c0   : > { %v1307_v6 = vadd.f32 %v1306_v4, %v2936_v7  ;;  %v2428_v10 = vpop.f32.mrb[13].mxu0  ;;  %v1374_v4 = vpack.c.bf16 %v1373_v3, %v1373_v3  ;;  %v2573_v3 = vld [vmem:[%s3194_s6] sm:$0xff]  }
 0x5c1   : > { %v1309_v11 = vpop.f32.mrb[14].mxu0  ;;  %2473 = vmatpush3.bf16.msra.mxu0 %v2573_v3 }
 0x5c2   : > { %v2429_v12 = vpop.f32.mrb[15].mxu0  ;;  %v1312_v13 = vsel %vm832_vm4, %v1307_v6, -inf  ;;  %2474 = vmatprep.subr.bf16.mxu0 %v2696_v50 }
 0x5c3   : > { %1313 = vmax.xlane.f32.xlu0 %v1312_v13 }
 0x5c7   : > { %v1420_v14 = vpop.f32.mrb[16].mxu0 }
 0x5c8   : > { %v1421_v15 = vadd.f32 %v1420_v14, %v2936_v7  ;;  %v2440_v16 = vpop.f32.mrb[17].mxu0 }
 0x5c9   : > { %v1423_v17 = vpop.f32.mrb[18].mxu0 }
 0x5ca   : > { %v2441_v18 = vpop.f32.mrb[19].mxu0  ;;  %v1426_v19 = vsel %vm832_vm4, %v1421_v15, -inf }
 0x5cb   : > { %1427 = vmax.xlane.f32.xlu0 %v1426_v19 }
 0x5cf   : > { %v1541_v20 = vpop.f32.mrb[20].mxu0 }
 0x5d0   : > { %v1542_v21 = vadd.f32 %v1541_v20, %v2936_v7  ;;  %v2452_v22 = vpop.f32.mrb[21].mxu0 }
 0x5d1   : > { %v1544_v23 = vpop.f32.mrb[22].mxu0 }
 0x5d2   : > { %v2453_v24 = vpop.f32.mrb[23].mxu0  ;;  %v1547_v25 = vsel %vm832_vm4, %v1542_v21, -inf }
 0x5d3   : > { %1548 = vmax.xlane.f32.xlu1 %v1547_v25 }
 0x5d7   : > { %v1662_v26 = vpop.f32.mrb[24].mxu0 }
 0x5d8   : > { %v1663_v27 = vadd.f32 %v1662_v26, %v2936_v7  ;;  %v2464_v28 = vpop.f32.mrb[25].mxu0 }
 0x5d9   : > { %v1665_v29 = vpop.f32.mrb[26].mxu0 }
 0x5da   : > { %v2465_v30 = vpop.f32.mrb[27].mxu0  ;;  %v1668_v31 = vsel %vm832_vm4, %v1663_v27, -inf  ;;  %v1328_v29 = vsel %vm848_vm3, %v1374_v4, 0 }
 0x5db   : > { %1669 = vmax.xlane.f32.xlu0 %v1668_v31 }
 0x640   : > { %v1072_v32 = vpop.xlane.xlu1 %1071 }
 0x641   : > { %v1073_v33 = vsub.f32 %v1065_v48, %v1072_v32 }
 0x643   : > { %v1074_v34 = vmul.f32 1.442695, %v1073_v33 }
 0x645   : > { %2585 = vpow2.f32 %v1074_v34 }
 0x647   : > { %v950_v35 = vpop.xlane.xlu0 %949 }
 0x648   : > { %v951_v36 = vsub.f32 %v943_v57, %v950_v35 }
 0x64a   : > { %v952_v39 = vmul.f32 1.442695, %v951_v36 }
 0x64b   : > { %v1194_v37 = vpop.xlane.xlu0 %1193 }
 0x64c   : > { %v1195_v38 = vsub.f32 %v1187_v62, %v1194_v37 }
 0x64e   : > { %v1196_v40 = vmul.f32 1.442695, %v1195_v38 }
 0x64f   : > { %v3006_v41 = vpop.eup %2585 }
 0x650   : > { %2587 = vpow2.f32 %v1196_v40  ;;  %v1314_v7 = vpop.xlane.xlu0 %1313  ;;  %v1076_v42 = vsel %vm832_vm4, %v3006_v41, 0.0 }
 0x651   : > { %v1315_v43 = vsub.f32 %v1307_v6, %v1314_v7  ;;  %1077 = vadd.xlane.f32.xlu0 %v1076_v42  ;;  %2589 = vpow2.f32 %v952_v39 }
 0x653   : > { %v1316_v44 = vmul.f32 1.442695, %v1315_v43 }
 0x655   : > { %2591 = vpow2.f32 %v1316_v44 }
 0x658   : > { %v1428_v45 = vpop.xlane.xlu0 %1427 }
 0x659   : > { %v1429_v46 = vsub.f32 %v1421_v15, %v1428_v45 }
 0x65a   : > { %v3010_v47 = vpop.eup %2587 }
 0x65b   : > { %v1430_v48 = vmul.f32 1.442695, %v1429_v46  ;;  %v1198_v49 = vsel %vm832_vm4, %v3010_v47, 0.0  ;;  %v2590_v51 = vpop.eup %2589 }
 0x65c   : > { %1199 = vadd.xlane.f32.xlu1 %v1198_v49  ;;  %v954_v53 = vsel %vm832_vm4, %v2590_v51, 0.0 }
 0x65d   : > { %2593 = vpow2.f32 %v1430_v48 }
 0x65f   : > { %v3014_v52 = vpop.eup %2591 }
 0x660   : > { %955 = vadd.xlane.f32.xlu1 %v954_v53  ;;  %v1318_v54 = vsel %vm832_vm4, %v3014_v52, 0.0  ;;  %v1549_v57 = vpop.xlane.xlu1 %1548 }
 0x661   : > { %1319 = vadd.xlane.f32.xlu0 %v1318_v54  ;;  %v1550_v58 = vsub.f32 %v1542_v21, %v1549_v57 }
 0x663   : > { %v1551_v59 = vmul.f32 1.442695, %v1550_v58 }
 0x665   : > { %2595 = vpow2.f32 %v1551_v59 }
 0x667   : > { %v3019_v55 = vpop.eup %2593 }
 0x668   : > { %v1432_v56 = vsel %vm832_vm4, %v3019_v55, 0.0  ;;  %v1670_v60 = vpop.xlane.xlu0 %1669 }
 0x669   : > { %1433 = vadd.xlane.f32.xlu0 %v1432_v56  ;;  %v1671_v61 = vsub.f32 %v1663_v27, %v1670_v60 }
 0x66b   : > { %v1672_v62 = vmul.f32 1.442695, %v1671_v61 }
 0x66d   : > { %2597 = vpow2.f32 %v1672_v62 }
 0x66f   : > { %v3029_v63 = vpop.eup %2595 }
 0x670   : > { %v1553_v0 = vsel %vm832_vm4, %v3029_v63, 0.0 }
 0x671   : > { %961 = vrot.lane.b32.xlu1 %v2925_v5, %s2699_s22 }
 0x677   : > { %v3033_v1 = vpop.eup %2597 }
 0x678   : > { %v1674_v2 = vsel %vm832_vm4, %v3033_v1, 0.0 }
 0x67f   : > { %1083 = vrot.lane.b32.xlu0 %v2925_v5, %s2700_s27 }
 0x683   : > { %1205 = vrot.lane.b32.xlu0 %v2925_v5, %s2701_s29 }
 0x695   : > { %1554 = vadd.xlane.f32.xlu1 %v1553_v0 }
 0x6a2   : > { %1675 = vadd.xlane.f32.xlu0 %v1674_v2 }
 0x6a6   : > { %1439 = vrot.lane.b32.xlu1 %v1374_v4, %s2699_s22 }
 0x6aa   : > { %1681 = vrot.lane.b32.xlu1 %v1374_v4, %s2701_s29 }
 0x6b8   : > { %1560 = vrot.lane.b32.xlu0 %v1374_v4, %s2700_s27 }
 0x6de   : > { %v1078_v10 = vpop.xlane.xlu0 %1077 }
 0x6e9   : > { %v1200_v5 = vpop.xlane.xlu1 %1199 }
 0x6ed   : > { %v956_v6 = vpop.xlane.xlu1 %955 }
 0x6ee   : > { %2599 = vrcp.f32 %v956_v6  ;;  %v1320_v12 = vpop.xlane.xlu0 %1319  ;;  %v2574_v6 = vld [vmem:[%s3194_s6 + $0x8] sm:$0xff]  }
 0x6ef   : > { %2601 = vrcp.f32 %v1078_v10  ;;  %2475 = vmatpush3.bf16.msra.mxu0 %v2574_v6  ;;  %v2575_v10 = vld [vmem:[%s3194_s6 + $0x10] sm:$0xff]  }
 0x6f0   : > { %2603 = vrcp.f32 %v1200_v5  ;;  %2476 = vmatprep.subr.bf16.mxu0 %v2696_v50 }
 0x6f1   : > { %v962_v11 = vpop.permute.xlu1 %961  ;;  %2605 = vrcp.f32 %v1320_v12 }
 0x6f2   : > { %v967_v13 = vsel %vm848_vm3, %v962_v11, 0  ;;  %v2576_v11 = vld [vmem:[%s3194_s6 + $0x18] sm:$0xff]  }
 0x6f3   : > { %2395 = vmatpush3.bf16.msra.mxu1 %v967_v13  ;;  %2477 = vmatpush3.bf16.msra.mxu0 %v2575_v10 }
 0x6f4   : > { %2406 = vmatprep.subr.bf16.mxu1 %v2696_v50  ;;  %2478 = vmatprep.subr.bf16.mxu0 %v2696_v50 }
 0x6f6   : > { %v1434_v14 = vpop.xlane.xlu0 %1433 }
 0x6f7   : > { %2607 = vrcp.f32 %v1434_v14  ;;  %2479 = vmatpush3.bf16.msra.mxu0 %v2576_v11 }
 0x6f8   : > { %v2600_v15 = vpop.eup %2599 }
 0x6f9   : > { %v958_v16 = vmul.f32 %v2600_v15, %v2590_v51  ;;  %v2602_v20 = vpop.eup %2601 }
 0x6fa   : > { %v1084_v17 = vpop.permute.xlu0 %1083  ;;  %v1080_v21 = vmul.f32 %v2602_v20, %v3006_v41  ;;  %v2604_v24 = vpop.eup %2603 }
 0x6fb   : > { %v1089_v18 = vsel %vm848_vm3, %v1084_v17, 0  ;;  %v959_v19 = vpack.c.bf16 %v958_v16, %v958_v16  ;;  %v1202_v26 = vmul.f32 %v2604_v24, %v3010_v47  ;;  %v2606_v28 = vpop.eup %2605 }
 0x6fc   : > { %v1081_v23 = vpack.c.bf16 %v1080_v21, %v1080_v21  ;;  %v1322_v30 = vmul.f32 %v2606_v28, %v3014_v52  ;;  %v2295_v28 = vld [vmem:[%s3195_s7] ss:$0 sm:$0xff] }
 0x6fd   : > { %2397 = vmatmul.mubr.msk.bf16.vlgmr.msra.gmra.mrb[12].mxu1 %vm832_vm4, %v959_v19  ;;  %v1203_v27 = vpack.c.bf16 %v1202_v26, %v1202_v26 }
 0x6fe   : > { %2407 = vmatpush3.bf16.msra.mxu1 %v1089_v18  ;;  %2408 = vmatprep.mubr.msk.bf16.mxu1 %vm2697_vm1, %v2696_v50  ;;  %v1206_v22 = vpop.permute.xlu0 %1205  ;;  %v1323_v31 = vpack.c.bf16 %v1322_v30, %v1322_v30 }
 0x6ff   : > { %2418 = vmatprep.subr.bf16.mxu1 %v2696_v50  ;;  %v1211_v25 = vsel %vm848_vm3, %v1206_v22, 0 }
 0x701   : > { %v2608_v32 = vpop.eup %2607 }
 0x702   : > { %v1436_v34 = vmul.f32 %v2608_v32, %v3019_v55  ;;  %v2303_v32 = vld [vmem:[%s3201_s13] ss:$0 sm:$0xff] }
 0x704   : > { %v1437_v37 = vpack.c.bf16 %v1436_v34, %v1436_v34 }
 0x705   : > { %2409 = vmatmul.mubr.msk.bf16.vlgmr.msra.gmra.mrb[16].mxu1 %vm832_vm4, %v1081_v23 }
 0x706   : > { %2419 = vmatpush3.bf16.msra.mxu1 %v1211_v25  ;;  %2420 = vmatprep.mubr.msk.bf16.mxu1 %vm2697_vm1, %v2696_v50 }
 0x707   : > { %2430 = vmatprep.subr.bf16.mxu1 %v2696_v50 }
 0x70d   : > { %2421 = vmatmul.mubr.msk.bf16.vlgmr.msra.gmra.mrb[20].mxu1 %vm832_vm4, %v1203_v27 }
 0x70e   : > { %2431 = vmatpush3.bf16.msra.mxu1 %v1328_v29  ;;  %2432 = vmatprep.mubr.msk.bf16.mxu1 %vm2697_vm1, %v2696_v50 }
 0x70f   : > { %2442 = vmatprep.subr.bf16.mxu1 %v2696_v50 }
 0x715   : > { %2433 = vmatmul.mubr.msk.bf16.vlgmr.msra.gmra.mrb[24].mxu1 %vm832_vm4, %v1323_v31 }
 0x716   : > { %2444 = vmatprep.mubr.msk.bf16.mxu1 %vm2697_vm1, %v2696_v50 }
 0x722   : > { %v1555_v33 = vpop.xlane.xlu1 %1554 }
 0x723   : > { %2609 = vrcp.f32 %v1555_v33 }
 0x726   : > { %v1440_v35 = vpop.permute.xlu1 %1439 }
 0x727   : > { %v1445_v36 = vsel %vm848_vm3, %v1440_v35, 0 }
 0x728   : > { %2443 = vmatpush3.bf16.msra.mxu1 %v1445_v36 }
 0x729   : > { %2454 = vmatprep.subr.bf16.mxu1 %v2696_v50 }
 0x72a   : > { %v1682_v42 = vpop.permute.xlu1 %1681 }
 0x72b   : > { %2445 = vmatmul.mubr.msk.bf16.vlgmr.msra.gmra.mrb[28].mxu1 %vm832_vm4, %v1437_v37  ;;  %v1687_v44 = vsel %vm848_vm3, %v1682_v42, 0 }
 0x72c   : > { %2456 = vmatprep.mubr.msk.bf16.mxu1 %vm2697_vm1, %v2696_v50 }
 0x72d   : > { %v2610_v38 = vpop.eup %2609 }
 0x72e   : > { %v1557_v40 = vmul.f32 %v2610_v38, %v3029_v63 }
 0x72f   : > { %v1676_v39 = vpop.xlane.xlu0 %1675 }
 0x730   : > { %2611 = vrcp.f32 %v1676_v39  ;;  %v1558_v43 = vpack.c.bf16 %v1557_v40, %v1557_v40 }
 0x733   : > { %v1561_v41 = vpop.permute.xlu0 %1560 }
 0x734   : > { %v1566_v7 = vsel %vm848_vm3, %v1561_v41, 0 }
 0x735   : > { %2455 = vmatpush3.bf16.msra.mxu1 %v1566_v7 }
 0x736   : > { %2466 = vmatprep.subr.bf16.mxu1 %v2696_v50 }
 0x738   : > { %2457 = vmatmul.mubr.msk.bf16.vlgmr.msra.gmra.mrb[32].mxu1 %vm832_vm4, %v1558_v43 }
 0x739   : > { %2467 = vmatpush3.bf16.msra.mxu1 %v1687_v44  ;;  %2468 = vmatprep.mubr.msk.bf16.mxu1 %vm2697_vm1, %v2696_v50 }
 0x73a   : > { %v2612_v45 = vpop.eup %2611 }
 0x73b   : > { %v1678_v46 = vmul.f32 %v2612_v45, %v3033_v1 }
 0x73d   : > { %v1679_v47 = vpack.c.bf16 %v1678_v46, %v1678_v46 }
 0x740   : > { %2469 = vmatmul.mubr.msk.bf16.vlgmr.msra.gmra.mrb[36].mxu1 %vm832_vm4, %v1679_v47 }
 0x7d0   : > { %v1003_v48 = vpop.f32.mrb[12].mxu1 }
 0x7d1   : > { %1010 = vrot.lane.b32.xlu1 %v1003_v48, %s2704_s19  ;;  %v2398_v49 = vpop.f32.mrb[13].mxu1 }
 0x7d2   : > { %v1006_v51 = vpop.f32.mrb[14].mxu1 }
 0x7d3   : > { %v2399_v52 = vpop.f32.mrb[15].mxu1 }
 0x7d8   : > { %v1125_v53 = vpop.f32.mrb[16].mxu1 }
 0x7d9   : > { %1132 = vrot.lane.b32.xlu1 %v1125_v53, %s2703_s23  ;;  %v2410_v54 = vpop.f32.mrb[17].mxu1 }
 0x7da   : > { %v1128_v55 = vpop.f32.mrb[18].mxu1 }
 0x7db   : > { %v2411_v56 = vpop.f32.mrb[19].mxu1 }
 0x7e0   : > { %v1247_v57 = vpop.f32.mrb[20].mxu1 }
 0x7e1   : > { %1254 = vrot.lane.b32.xlu0 %v1247_v57, %s2702_s17  ;;  %v2422_v58 = vpop.f32.mrb[21].mxu1 }
 0x7e2   : > { %v1250_v59 = vpop.f32.mrb[22].mxu1  ;;  %v2301_v58 = vld [vmem:[%s3196_s8] ss:$0 sm:$0xff] }
 0x7e3   : > { %v2423_v60 = vpop.f32.mrb[23].mxu1 }
 0x7e8   : > { %v1364_v61 = vpop.f32.mrb[24].mxu1 }
 0x7e9   : > { %1370 = vst.msk [vmem:[#allocation3 + $0x8] sm:$0xff] %vm785_vm2, %v1364_v61  ;;  %v2434_v62 = vpop.f32.mrb[25].mxu1 }
 0x7ea   : > { %v1367_v63 = vpop.f32.mrb[26].mxu1  ;;  %v2302_v62 = vld [vmem:[%s3197_s9] ss:$0 sm:$0xff] }
 0x7eb   : > { %v2435_v0 = vpop.f32.mrb[27].mxu1 }
 0x7fe   : > { %v1481_v1 = vpop.f32.mrb[28].mxu1 }
 0x7ff   : > { %1488 = vrot.lane.b32.xlu1 %v1481_v1, %s2704_s19  ;;  %v2446_v2 = vpop.f32.mrb[29].mxu1 }
 0x800   : > { %v1484_v4 = vpop.f32.mrb[30].mxu1 }
 0x801   : > { %v2447_v5 = vpop.f32.mrb[31].mxu1 }
 0x80b   : > { %v1602_v12 = vpop.f32.mrb[32].mxu1 }
 0x80c   : > { %1609 = vrot.lane.b32.xlu1 %v1602_v12, %s2703_s23  ;;  %v2458_v13 = vpop.f32.mrb[33].mxu1 }
 0x80d   : > { %v1605_v14 = vpop.f32.mrb[34].mxu1 }
 0x80e   : > { %v2459_v15 = vpop.f32.mrb[35].mxu1 }
 0x813   : > { %v1723_v16 = vpop.f32.mrb[36].mxu1 }
 0x814   : > { %1730 = vrot.lane.b32.xlu1 %v1723_v16, %s2702_s17  ;;  %v2470_v17 = vpop.f32.mrb[37].mxu1 }
 0x815   : > { %v1726_v18 = vpop.f32.mrb[38].mxu1 }
 0x816   : > { %v2471_v19 = vpop.f32.mrb[39].mxu1 }
 0x843   : > { %v1011_v20 = vpop.permute.xlu1 %1010 }
 0x844   : > { %1014 = vst.msk [vmem:[#allocation3] sm:$0xff] %vm1013_vm5, %v1011_v20 }
 0x84b   : > { %v1133_v21 = vpop.permute.xlu1 %1132 }
 0x84c   : > { %1136 = vst.msk [vmem:[#allocation3] sm:$0xff] %vm1135_vm6, %v1133_v21 }
 0x853   : > { %v1255_v50 = vpop.permute.xlu0 %1254 }
 0x854   : > { %1258 = vst.msk [vmem:[#allocation3] sm:$0xff] %vm1257_vm7, %v1255_v50 }
 0x85b   : > { %v1734_v25 = vld [vmem:[#allocation3] sm:$0xff] }
 0x871   : > { %v1489_v22 = vpop.permute.xlu1 %1488 }
 0x872   : > { %1491 = vst.msk [vmem:[#allocation3 + $0x8] sm:$0xff] %vm1013_vm5, %v1489_v22 }
 0x87e   : > { %v1610_v23 = vpop.permute.xlu1 %1609 }
 0x87f   : > { %1612 = vst.msk [vmem:[#allocation3 + $0x8] sm:$0xff] %vm1135_vm6, %v1610_v23 }
 0x886   : > { %v1731_v24 = vpop.permute.xlu1 %1730 }
 0x887   : > { %1733 = vst.msk [vmem:[#allocation3 + $0x8] sm:$0xff] %vm1257_vm7, %v1731_v24 }
 0x88e   : > { %v1735_v26 = vld [vmem:[#allocation3 + $0x8] sm:$0xff] }
 0x88f   : > { %v1736_v27 = vpack.c.bf16 %v1735_v26, %v1734_v25 }
 0x891   : > { %2481 = vmatmul.mubr.msk.bf16.vlgmr.msra.gmra.mrb[28].mxu0 %vm622_vm0, %v1736_v27 }
 0x964   : > { %v1813_v29 = vpop.f32.mrb[28].mxu0 }
 0x965   : > { %v1814_v30 = vadd.f32 %v2295_v28, %v1813_v29  ;;  %v2482_v31 = vpop.f32.mrb[29].mxu0 }
 0x966   : > { %v1816_v33 = vpop.f32.mrb[30].mxu0 }
 0x967   : > { %v1820_v34 = vadd.f32 %v1814_v30, %v2854_v8  ;;  %v1817_v35 = vadd.f32 %v2295_v28, %v1816_v33  ;;  %v2483_v36 = vpop.f32.mrb[31].mxu0 }
 0x969   : > { %v1875_v37 = vadd.f32 %v2303_v32, %v1820_v34  ;;  %v1821_v38 = vadd.f32 %v1817_v35, %v2859_v9  ;;  %v1824_v39 = vsel %vm622_vm0, %v1820_v34, 0.0 }
 0x96a   : > { %1825 = vadd.xlane.f32.xlu0 %v1824_v39 }
 0x96b   : > { %1877 = vst.msk [vmem:[#allocation6] sm:$0xff] %vm622_vm0, %v1875_v37  ;;  %v1876_v40 = vadd.f32 %v2303_v32, %v1821_v38  ;;  %v1827_v41 = vsel %vm622_vm0, %v1821_v38, 0.0 }
 0x96c   : > { %1828 = vadd.xlane.f32.xlu1 %v1827_v41 }
 0x96d   : > { %1878 = vst.msk [vmem:[#allocation6 + $0x8] sm:$0xff] %vm622_vm0, %v1876_v40 }
 0x9f7   : > { %v1826_v7 = vpop.xlane.xlu0 %1825 }
 0x9f8   : > { %v1830_v42 = vmul.f32 0.015625, %v1826_v7 }
 0x9f9   : > { %v1829_v43 = vpop.xlane.xlu1 %1828 }
 0x9fa   : > { %v1832_v8 = vsub.f32 %v1820_v34, %v1830_v42  ;;  %v1831_v44 = vmul.f32 0.015625, %v1829_v43 }
 0x9fc   : > { %v1833_v45 = vsub.f32 %v1821_v38, %v1831_v44  ;;  %v1834_v46 = vmul.f32 %v1832_v8, %v1832_v8 }
 0x9fe   : > { %v1836_v9 = vsel %vm622_vm0, %v1834_v46, 0.0  ;;  %v1835_v47 = vmul.f32 %v1833_v45, %v1833_v45 }
 0x9ff   : > { %1837 = vadd.xlane.f32.xlu0 %v1836_v9 }
 0xa00   : > { %v1839_v48 = vsel %vm622_vm0, %v1835_v47, 0.0 }
 0xa03   : > { %1840 = vadd.xlane.f32.xlu0 %v1839_v48 }
 0xa8c   : > { %v1838_v49 = vpop.xlane.xlu0 %1837 }
 0xa8d   : > { %v1842_v51 = vmul.f32 0.015625, %v1838_v49 }
 0xa8f   : > { %v1844_v52 = vadd.f32 1e-05, %v1842_v51 }
 0xa90   : > { %v1841_v53 = vpop.xlane.xlu0 %1840 }
 0xa91   : > { %2613 = vrsqrt.f32 %v1844_v52  ;;  %v1843_v54 = vmul.f32 0.015625, %v1841_v53 }
 0xa93   : > { %v1845_v55 = vadd.f32 1e-05, %v1843_v54 }
 0xa95   : > { %2615 = vrsqrt.f32 %v1845_v55 }
 0xa9b   : > { %v2614_v56 = vpop.eup %2613 }
 0xa9c   : > { %v1848_v57 = vmul.f32 %v2614_v56, %v1832_v8 }
 0xa9e   : > { %v1856_v60 = vmul.f32 %v2301_v58, %v1848_v57 }
 0xa9f   : > { %v2616_v59 = vpop.eup %2615 }
 0xaa0   : > { %v1849_v61 = vmul.f32 %v2616_v59, %v1833_v45  ;;  %v1864_v0 = vadd.f32 %v2302_v62, %v1856_v60 }
 0xaa2   : > { %v1857_v63 = vmul.f32 %v2301_v58, %v1849_v61 }
 0xaa4   : > { %v1865_v1 = vadd.f32 %v2302_v62, %v1857_v63 }
 0xaa6   : > { %v1866_v2 = vpack.c.bf16 %v1865_v1, %v1864_v0 }
 0xaa8   : > { %1867 = vst.msk [vmem:[#allocation4] sm:$0xff] %vm622_vm0, %v1866_v2 }
 0xaa9 PF: > { %v2617_v3 = vld [vmem:[%s2848_s28] sm:$0xff]   ;;  %v2705_v4 = vmov 0.0   ;;  %v2618_v5 = vld [vmem:[%s2848_s28 + $0x8] sm:$0xff]   ;;  %vm2706_vm8 = vmmov 0   ;;  %v2619_v6 = vld [vmem:[%s2848_s28 + $0x10] sm:$0xff]   ;;  %vm1919_vm9 = vcmask 523264  }
 0xaaa   : > { %2484 = vmatprep.subr.bf16.mxu0 %v2705_v4  ;;  %2496 = vmatprep.subr.bf16.mxu1 %v2705_v4  ;;  %v2620_v10 = vld [vmem:[%s2848_s28 + $0x18] sm:$0xff]   ;;  %v2621_v12 = vld [vmem:[%s2846_s10] sm:$0xff]   ;;  %v2622_v13 = vld [vmem:[%s2846_s10 + $0x8] sm:$0xff]   ;;  %p2318_p11 = scmp.ne.s32.totalorder %s2811_s24, 1 }
 0xaab   : > { %2485 = vmatpush3.bf16.msra.mxu0 %v2617_v3  ;;  %2492 = vmatprep.mubr.msk.bf16.mxu0 %vm2706_vm8, %v2705_v4  ;;  %v2623_v14 = vld [vmem:[%s2846_s10 + $0x10] sm:$0xff]   ;;  %v2624_v15 = vld [vmem:[%s2846_s10 + $0x18] sm:$0xff]   ;;  %v2625_v16 = vld [vmem:[%s2846_s10 + $0x20] sm:$0xff]  }
 0xaac   : > { %2486 = vmatprep.subr.bf16.mxu0 %v2705_v4  ;;  %2512 = vmatprep.mubr.msk.bf16.mxu1 %vm2706_vm8, %v2705_v4  ;;  %v2626_v17 = vld [vmem:[%s2846_s10 + $0x28] sm:$0xff]   ;;  %v2627_v18 = vld [vmem:[%s2846_s10 + $0x30] sm:$0xff]   ;;  %v2628_v19 = vld [vmem:[%s2846_s10 + $0x38] sm:$0xff]  }
 0xaad   : > { %2497 = vmatpush3.bf16.msra.mxu1 %v2621_v12  ;;  %v2304_v20 = vld [vmem:[%s606_s18] ss:$0 sm:$0xff] }
 0xaae   : > { %2498 = vmatprep.subr.bf16.mxu1 %v2705_v4 }
 0xaaf   : > { %2487 = vmatpush3.bf16.msra.mxu0 %v2618_v5  ;;  %v1879_v11 = vld [vmem:[#allocation4] sm:$0xff] }
 0xab0   : > { %2488 = vmatprep.subr.bf16.mxu0 %v2705_v4 }
 0xab1   : > { %2499 = vmatpush3.bf16.msra.mxu1 %v2622_v13 }
 0xab2   : > { %2500 = vmatprep.subr.bf16.mxu1 %v2705_v4 }
 0xab3   : > { %2489 = vmatpush3.bf16.msra.mxu0 %v2619_v6 }
 0xab4   : > { %2490 = vmatprep.subr.bf16.mxu0 %v2705_v4 }
 0xab5   : > { %2501 = vmatpush3.bf16.msra.mxu1 %v2623_v14  ;;  %v2018_v14 = vld [vmem:[#allocation6] sm:$0xff] }
 0xab6   : > { %2502 = vmatprep.subr.bf16.mxu1 %v2705_v4 }
 0xab7   : > { %2491 = vmatpush3.bf16.msra.mxu0 %v2620_v10 }
 0xab9   : > { %2503 = vmatpush3.bf16.msra.mxu1 %v2624_v15 }
 0xaba   : > { %2493 = vmatmul.mubr.msk.bf16.vlgmr.msra.gmra.mrb[0].mxu0 %vm1919_vm9, %v1879_v11  ;;  %2504 = vmatprep.subr.bf16.mxu1 %v2705_v4 }
 0xabd   : > { %2505 = vmatpush3.bf16.msra.mxu1 %v2625_v16  ;;  %v2019_v16 = vld [vmem:[#allocation6 + $0x8] sm:$0xff] }
 0xabe   : > { %2506 = vmatprep.subr.bf16.mxu1 %v2705_v4 }
 0xac1   : > { %2507 = vmatpush3.bf16.msra.mxu1 %v2626_v17 }
 0xac2   : > { %2508 = vmatprep.subr.bf16.mxu1 %v2705_v4 }
 0xac5   : > { %2509 = vmatpush3.bf16.msra.mxu1 %v2627_v18 }
 0xac6   : > { %2510 = vmatprep.subr.bf16.mxu1 %v2705_v4 }
 0xac9   : > { %2511 = vmatpush3.bf16.msra.mxu1 %v2628_v19 }
 0xb8d   : > { %v1957_v21 = vpop.f32.mrb[0].mxu0 }
 0xb8e   : > { %v1958_v50 = vadd.f32 %v2304_v20, %v1957_v21  ;;  %v2494_v22 = vpop.f32.mrb[1].mxu0 }
 0xb8f   : > { %v1960_v23 = vpop.f32.mrb[2].mxu0 }
 0xb90   : > { %v1966_v24 = vmul.f32 0.70710677, %v1958_v50  ;;  %v1961_v25 = vadd.f32 %v2304_v20, %v1960_v23  ;;  %v2495_v26 = vpop.f32.mrb[3].mxu0  ;;  %v1964_v5 = vmul.f32 0.5, %v1958_v50 }
 0xb92   : > { %v1968_v27 = vand.u32 2147483647, %v1966_v24  ;;  %v1967_v28 = vmul.f32 0.70710677, %v1961_v25  ;;  %vm2008_vm10 = vcmp.ge.f32.partialorder %v1966_v24, 0.0  ;;  %v1965_v6 = vmul.f32 0.5, %v1961_v25 }
 0xb94   : > { %v1970_v29 = vmul.f32 0.3275911, %v1968_v27  ;;  %v1969_v30 = vand.u32 2147483647, %v1967_v28  ;;  %v1996_v34 = vsub.f32 0.0, %v1968_v27  ;;  %vm2009_vm11 = vcmp.ge.f32.partialorder %v1967_v28, 0.0 }
 0xb96   : > { %v1972_v31 = vadd.f32 1.0, %v1970_v29  ;;  %v1971_v32 = vmul.f32 0.3275911, %v1969_v30  ;;  %v1997_v35 = vsub.f32 0.0, %v1969_v30  ;;  %v1998_v37 = vmul.f32 %v1996_v34, %v1968_v27 }
 0xb98   : > { %2629 = vrcp.f32 %v1972_v31  ;;  %v1973_v33 = vadd.f32 1.0, %v1971_v32  ;;  %v1999_v41 = vmul.f32 %v1997_v35, %v1969_v30  ;;  %v2000_v7 = vmul.f32 1.442695, %v1998_v37 }
 0xb9a   : > { %2631 = vrcp.f32 %v1973_v33  ;;  %v2002_v45 = vmul.f32 1.442695, %v1999_v41 }
 0xb9b   : > { %2633 = vpow2.f32 %v2000_v7  ;;  %v2319_v7 = vld [vmem:[%s3202_s14] ss:$0 sm:$0xff] (!%p2318_p11) }
 0xb9c   : > { %2635 = vpow2.f32 %v2002_v45 }
 0xba2   : > { %v2630_v36 = vpop.eup %2629 }
 0xba3   : > { %v1978_v38 = vmul.f32 1.0614054, %v2630_v36 }
 0xba4   : > { %v2632_v39 = vpop.eup %2631 }
 0xba5   : > { %v1980_v40 = vadd.f32 -1.4531521, %v1978_v38  ;;  %v1979_v42 = vmul.f32 1.0614054, %v2632_v39  ;;  %v2634_v56 = vpop.eup %2633 }
 0xba6   : > { %v2636_v60 = vpop.eup %2635 }
 0xba7   : > { %v1982_v43 = vmul.f32 %v2630_v36, %v1980_v40  ;;  %v1981_v8 = vadd.f32 -1.4531521, %v1979_v42 }
 0xba9   : > { %v1984_v44 = vadd.f32 1.4214138, %v1982_v43  ;;  %v1983_v46 = vmul.f32 %v2632_v39, %v1981_v8  ;;  %v2320_v43 = vld [vmem:[%s3203_s15] ss:$0 sm:$0xff] (!%p2318_p11) }
 0xbab   : > { %v1986_v9 = vmul.f32 %v2630_v36, %v1984_v44  ;;  %v1985_v47 = vadd.f32 1.4214138, %v1983_v46 }
 0xbad   : > { %v1988_v48 = vadd.f32 -0.28449672, %v1986_v9  ;;  %v1987_v49 = vmul.f32 %v2632_v39, %v1985_v47 }
 0xbaf   : > { %v1990_v51 = vmul.f32 %v2630_v36, %v1988_v48  ;;  %v1989_v52 = vadd.f32 -0.28449672, %v1987_v49 }
 0xbb1   : > { %v1992_v53 = vadd.f32 0.2548296, %v1990_v51  ;;  %v1991_v54 = vmul.f32 %v2632_v39, %v1989_v52 }
 0xbb3   : > { %v1994_v55 = vmul.f32 %v2630_v36, %v1992_v53  ;;  %v1993_v57 = vadd.f32 0.2548296, %v1991_v54 }
 0xbb5   : > { %v2004_v58 = vmul.f32 %v2634_v56, %v1994_v55  ;;  %v1995_v59 = vmul.f32 %v2632_v39, %v1993_v57 }
 0xbb7   : > { %v2006_v61 = vsub.f32 1.0, %v2004_v58  ;;  %v2005_v62 = vmul.f32 %v2636_v60, %v1995_v59 }
 0xbb9   : > { %v2010_v63 = vsub.f32 0.0, %v2006_v61  ;;  %v2007_v0 = vsub.f32 1.0, %v2005_v62 }
 0xbbb   : > { %v2012_v1 = vsel %vm2008_vm10, %v2006_v61, %v2010_v63  ;;  %v2011_v2 = vsub.f32 0.0, %v2007_v0 }
 0xbbc   : > { %v2014_v3 = vadd.f32 1.0, %v2012_v1 }
 0xbbd   : > { %v2013_v4 = vsel %vm2009_vm11, %v2007_v0, %v2011_v2 }
 0xbbe   : > { %v2015_v10 = vadd.f32 1.0, %v2013_v4  ;;  %v2016_v11 = vmul.f32 %v2014_v3, %v1964_v5 }
 0xbc0   : > { %v2017_v12 = vmul.f32 %v2015_v10, %v1965_v6 }
 0xbc2   : > { %v2020_v13 = vpack.c.bf16 %v2017_v12, %v2016_v11 }
 0xbc4   : > { %2513 = vmatmul.mubr.bf16.vlgmr.msra.gmra.mrb[0].mxu1 %v2020_v13 }
 0xc96   : > { %2133 = sbr.rel (%p2318_p11) target bundleno = 3552 (0xde0), region = 133 }
 0xc97   : > { %v2119_v15 = vpop.f32.mrb[0].mxu1 }
 0xc98   : > { %v2126_v17 = vadd.f32 %v2119_v15, %v2018_v14  ;;  %v2514_v18 = vpop.f32.mrb[1].mxu1 }
 0xc99   : > { %v2122_v19 = vpop.f32.mrb[2].mxu1 }
 0xc9a   : > { %2128 = vst.msk [vmem:[#allocation6] sm:$0xff] %vm1919_vm9, %v2126_v17  ;;  %v2127_v20 = vadd.f32 %v2122_v19, %v2019_v16  ;;  %v2515_v21 = vpop.f32.mrb[3].mxu1 }
 0xc9c   : > { %2129 = vst.msk [vmem:[#allocation6 + $0x8] sm:$0xff] %vm1919_vm9, %v2127_v20 }
 0xca1   : > { %v2134_v50 = vld [vmem:[#allocation6] sm:$0xff] }
 0xca2   : > { %v2138_v23 = vsel %vm1919_vm9, %v2134_v50, 0.0 }
 0xca3   : > { %v2135_v22 = vld [vmem:[#allocation6 + $0x8] sm:$0xff]  ;;  %2139 = vadd.xlane.f32.xlu0 %v2138_v23 }
 0xca4   : > { %v2141_v24 = vsel %vm1919_vm9, %v2135_v22, 0.0 }
 0xca7   : > { %2142 = vadd.xlane.f32.xlu0 %v2141_v24 }
 0xd30   : > { %v2140_v25 = vpop.xlane.xlu0 %2139 }
 0xd31   : > { %v2145_v26 = vmul.f32 0.015625, %v2140_v25 }
 0xd33   : > { %v2147_v27 = vsub.f32 %v2134_v50, %v2145_v26 }
 0xd34   : > { %v2143_v28 = vpop.xlane.xlu0 %2142 }
 0xd35   : > { %v2146_v29 = vmul.f32 0.015625, %v2143_v28  ;;  %v2149_v30 = vmul.f32 %v2147_v27, %v2147_v27 }
 0xd37   : > { %v2148_v31 = vsub.f32 %v2135_v22, %v2146_v29  ;;  %v2151_v32 = vsel %vm1919_vm9, %v2149_v30, 0.0 }
 0xd38   : > { %2152 = vadd.xlane.f32.xlu1 %v2151_v32 }
 0xd39   : > { %v2150_v33 = vmul.f32 %v2148_v31, %v2148_v31 }
 0xd3b   : > { %v2154_v34 = vsel %vm1919_vm9, %v2150_v33, 0.0 }
 0xd3c   : > { %2155 = vadd.xlane.f32.xlu1 %v2154_v34 }
 0xdc5   : > { %v2153_v35 = vpop.xlane.xlu1 %2152 }
 0xdc6   : > { %v2157_v36 = vmul.f32 0.015625, %v2153_v35 }
 0xdc8   : > { %v2159_v37 = vadd.f32 1e-05, %v2157_v36 }
 0xdc9   : > { %v2156_v38 = vpop.xlane.xlu1 %2155 }
 0xdca   : > { %2637 = vrsqrt.f32 %v2159_v37  ;;  %v2158_v39 = vmul.f32 0.015625, %v2156_v38 }
 0xdcc   : > { %v2160_v40 = vadd.f32 1e-05, %v2158_v39 }
 0xdce   : > { %2639 = vrsqrt.f32 %v2160_v40 }
 0xdd4   : > { %v2638_v41 = vpop.eup %2637 }
 0xdd5   : > { %v2163_v42 = vmul.f32 %v2638_v41, %v2147_v27 }
 0xdd7   : > { %v2171_v8 = vmul.f32 %v2319_v7, %v2163_v42 }
 0xdd8   : > { %v2640_v44 = vpop.eup %2639 }
 0xdd9   : > { %v2179_v45 = vadd.f32 %v2320_v43, %v2171_v8  ;;  %v2164_v46 = vmul.f32 %v2640_v44, %v2148_v31 }
 0xddb   : > { %2181 = vst.msk [vmem:[#allocation6] sm:$0xff] %vm1919_vm9, %v2179_v45  ;;  %v2172_v9 = vmul.f32 %v2319_v7, %v2164_v46 }
 0xddd   : > { %v2180_v47 = vadd.f32 %v2320_v43, %v2172_v9 }
 0xddf   : > { %2182 = vst.msk [vmem:[#allocation6 + $0x8] sm:$0xff] %vm1919_vm9, %v2180_v47 }
 0xde0 PF: > { %p2520_p12 = scmp.eq.s32.totalorder %s2811_s24, 1  ;;  %s2707_s20 = smov [#allocation6]  }
 0xde1   : > { %s2189_s17 = sshll.u32 %s2707_s20, 4  ;;  %s2190_s17 = int_to_ptr.vmem [resolvable:$true] %s2189_s17 }
 0xde2   : > { %s2641_s23 = scalar_lea.vmem %s2190_s17, 256  ;;  %p2648_p2 = scmp.lt.s32.totalorder %s2190_s17, %s2190_s17 }
 0xde3   : > { %p2642_p13 = scmp.ne.s32.totalorder %s2190_s17, %s2641_s23  ;;  %p2649_p3 = scmp.lt.s32.totalorder %s2641_s23, %s2641_s23 }
 0xde5   : > { %p2643_p0 = pnand %p2642_p13, %p2520_p12  ;;  %p2650_p4 = por %p2649_p3, %p2648_p2 }
 0xde7   : > { %p2644_p1 = pneg %p2643_p0 }
 0xde9   : > { %p2651_p5 = pnand %p2650_p4, %p2644_p1 }
 0xdeb   : > { %2654 = shalt.err (!%p2651_p5)
}
 0xdec   : > { %s3219_s0 = sld [smem:[#allocation14_spill]] }
 0xdf2   : > { %s2655_s16 = scalar_lea.hbm %s3219_s0, 256 }
 0xdf3   : > { %p2656_p6 = scmp.ne.s32.totalorder %s3219_s0, %s2655_s16  ;;  %p2661_p9 = scmp.lt.u32.totalorder %s2655_s16, %s3219_s0 }
 0xdf5   : > { %p2657_p7 = pnand %p2656_p6, %p2520_p12 }
 0xdf7   : > { %p2658_p8 = pneg %p2657_p7 }
 0xdf9   : > { %p2663_p10 = pnand %p2661_p9, %p2658_p8 }
 0xdfb   : > { %2666 = shalt.err (!%p2663_p10)
}
 0xdfc   : > { %s2708_s10 = smov 128   ;;  %s2709_s30 = smov 8  }
 0xdfd   : > { %2517 = dma.vmem_to_hbm [thread:$0]  (%p2520_p12), %s2190_s17, 256, %s3219_s0, [#allocation7], %s2708_s10, %s2708_s10, %s2709_s30  }
 0xdfe   : > { %2680 = dma.done.wait (%p2520_p12), [#allocation7], 256  }
 0xdff   : > { %2682 = vsyncadd (%p2520_p12), [#allocation7], 4294967040 }
 0xe00 PF: > { %s3220_s23 = sld [smem:[#allocation10_spill]]  ;;  %s3221_s21 = sld [smem:[#allocation9_spill]] }
 0xe01   : > { %s3222_s22 = sld [smem:[#allocation11_spill]] }
 0xe06   : > { %p24_p11 = scmp.ge.s32.totalorder %s3220_s23, 4  }
 0xe08   :  { %26 = sbr.rel (!%p24_p11) target bundleno = 6 (0x6), region = 171 }
 0xe0f   :  { %2205 = vsyncpa [#allocation7], 1 }
 0xe10   :  { %2207 = vsyncpa [#allocation7 + $0x1], 1 }

// kernel: frozen_openclip_embedder_forward.2
= control target key start
LH: loop header
LB: loop body
LE: loop exit
PB: predicated region body
PF: predicated region fallthrough
CT: control target
= control target key end

     0   :  { %s3045_s0 = inlined_call_operand.vmem [shape: f32[16,64], index: 0, kind: input, shape index: {}]   ;;  %s3046_s1 = inlined_call_operand.vmem [shape: f32[8,8], index: 1, kind: input, shape index: {}]   ;;  %s3047_s2 = inlined_call_operand.vmem [shape: f32[1,64], index: 2, kind: input, shape index: {}]   ;;  %s3048_s3 = inlined_call_operand.vmem [shape: f32[1,64], index: 3, kind: input, shape index: {}]   ;;  %s3049_s4 = inlined_call_operand.vmem [shape: bf16[64,192], index: 4, kind: input, shape index: {}]   ;;  %s3050_s5 = inlined_call_operand.vmem [shape: f32[1,192], index: 5, kind: input, shape index: {}]   ;;  %s3051_s6 = inlined_call_operand.vmem [shape: bf16[64,64], index: 6, kind: input, shape index: {}]   ;;  %s3052_s7 = inlined_call_operand.vmem [shape: f32[1,64], index: 7, kind: input, shape index: {}]   ;;  %s3053_s8 = inlined_call_operand.vmem [shape: f32[1,64], index: 8, kind: input, shape index: {}]   ;;  %s3054_s9 = inlined_call_operand.vmem [shape: f32[1,64], index: 9, kind: input, shape index: {}]   ;;  %s3055_s10 = inlined_call_operand.vmem [shape: bf16[64,256], index: 10, kind: input, shape index: {}]   ;;  %s3056_s11 = inlined_call_operand.vmem [shape: f32[1,256], index: 11, kind: input, shape index: {}]   ;;  %s3057_s12 = inlined_call_operand.vmem [shape: bf16[256,64], index: 12, kind: input, shape index: {}]   ;;  %s3058_s13 = inlined_call_operand.vmem [shape: f32[1,64], index: 13, kind: input, shape index: {}]   ;;  %s3059_s14 = inlined_call_operand.vmem [shape: f32[1,64], index: 14, kind: input, shape index: {}]   ;;  %s3060_s15 = inlined_call_operand.vmem [shape: f32[1,64], index: 15, kind: input, shape index: {}]   ;;  %s3061_s16 = inlined_call_operand.vmem [shape: f32[16,64], index: 16, kind: output, shape index: {}]  }
   0x1   :  { %3063 = sst [smem:[#allocation7_spill]] %s3045_s0 }
   0x2   :  { %3064 = sst [smem:[#allocation8_spill]] %s3055_s10 }
   0x3   :  { %s2670_s21 = smov 0   ;;  %s2672_s22 = smov 0  }
   0x4   :  { %s2674_s23 = smov 0  }
   0x5 LB: > { %s2686_s14 = sadd.s32 4294967295, %s2571_s23   ;;  %s2689_s15 = sadd.s32 1, %s2571_s23   ;;  %s2571_s23 = sphi %s2674_s23, %s3071_s23   ;;  %s2567_s22 = sphi %s2672_s22, %s3070_s22   ;;  %s2563_s21 = sphi %s2670_s21, %s3069_s21  }
   0x6   : > { %s240_s24 = ssub.s32 %s2571_s23, %s2689_s15  ;;  %s243_s25 = sadd.s32 1, %s2567_s22 }
   0x7   : > { %p241_p0 = scmp.eq.s32.totalorder %s240_s24, 0  ;;  %p250_p1 = scmp.ne.s32.totalorder %s2567_s22, %s2563_s21 }
   0x8   : > { %p251_p2 = scmp.eq.s32.totalorder %s2571_s23, 0  ;;  %p2186_p4 = scmp.ge.s32.totalorder %s2571_s23, 2 }
   0x9   : > { %s2698_s26 = scalar_select %p241_p0, %s2567_s22, %s243_s25  }
   0xa   : > { %p252_p3 = por %p251_p2, %p250_p1  ;;  %451 = sbr.rel (%p2186_p4) target bundleno = 32 (0x20), region = 68 }
   0xb   : > { %3065 = sst [smem:[#allocation6_spill]] %s2698_s26 }
  0x11   : > { %454 = sbr.rel (!%p252_p3) target bundleno = 32 (0x20), region = 72  ;;  %s456_s27 = sand.u32 (%p252_p3), 1, %s2567_s22  }
  0x12   : > { %s2188_s28 = sshll.u32 (%p252_p3), %s2571_s23, 2  ;;  %s2187_s29 = sshll.u32 (%p252_p3), %s456_s27, 5 }
  0x13   : > { %s3066_s10 = sld [smem:[#allocation8_spill]] (%p252_p3)  ;;  %s458_s18 = scalar_lea.vmem (%p252_p3), [#allocation5], %s2187_s29 }
  0x19   : > { %s460_s17 = scalar_lea.vmem %s3066_s10, %s2188_s28 }
  0x1a   : > { %v476_v0 = vld [vmem:[%s460_s17] sm:$0xf]  ;;  %v478_v1 = vld [vmem:[%s460_s17 + $0x8] sm:$0xf]  ;;  %v480_v2 = vld [vmem:[%s460_s17 + $0x10] sm:$0xf] }
  0x1b   : > { %477 = vst [vmem:[%s458_s18] sm:$0xf] %v476_v0  ;;  %479 = vst [vmem:[%s458_s18 + $0x4] sm:$0xf] %v478_v1  ;;  %v482_v3 = vld [vmem:[%s460_s17 + $0x18] sm:$0xf] }
  0x1c   : > { %v484_v4 = vld [vmem:[%s460_s17 + $0x20] sm:$0xf]  ;;  %481 = vst [vmem:[%s458_s18 + $0x8] sm:$0xf] %v480_v2  ;;  %483 = vst [vmem:[%s458_s18 + $0xc] sm:$0xf] %v482_v3 }
  0x1d   : > { %485 = vst [vmem:[%s458_s18 + $0x10] sm:$0xf] %v484_v4  ;;  %v486_v5 = vld [vmem:[%s460_s17 + $0x28] sm:$0xf]  ;;  %v488_v6 = vld [vmem:[%s460_s17 + $0x30] sm:$0xf] }
  0x1e   : > { %v490_v7 = vld [vmem:[%s460_s17 + $0x38] sm:$0xf]  ;;  %487 = vst [vmem:[%s458_s18 + $0x14] sm:$0xf] %v486_v5  ;;  %489 = vst [vmem:[%s458_s18 + $0x18] sm:$0xf] %v488_v6 }
  0x1f   : > { %491 = vst [vmem:[%s458_s18 + $0x1c] sm:$0xf] %v490_v7 }
  0x20 PF: > { %p2189_p5 = scmp.ge.s32.totalorder %s2571_s23, 1  ;;  %p544_p6 = scmp.lt.s32.totalorder %s2571_s23, 3 }
  0x22   : > { %p545_p7 = pnand %p2189_p5, %p544_p6 }
  0x23   : > { %s551_s19 = sand.u32 (!%p545_p7), 1, %s2563_s21   ;;  %p603_p8 = scmp.lt.s32.totalorder (!%p545_p7), %s2686_s14, 1 }
  0x24   : > { %548 = sbr.rel (%p545_p7) target bundleno = 3227 (0xc9b), region = 121  ;;  %s2190_s20 = sshll.u32 (!%p545_p7), %s551_s19, 5 }
  0x25   : > { %s2191_s24 = sshll.u32 (!%p545_p7), %s2686_s14, 4  ;;  %s2723_s18 = scalar_lea.vmem (!%p545_p7), [#allocation5], %s2190_s20 }
  0x26   : > { %p607_p9 = scmp.lt.s32.totalorder (!%p545_p7), %s2191_s24, 31  ;;  %p2193_p10 = scmp.ne.s32.totalorder (!%p545_p7), %s2686_s14, 0 }
  0x2b   : > { %s2712_s25 = scalar_select %p603_p8, %s2686_s14, 1 }
  0x2c   : > { %s3073_s24 = smov (!%p607_p9, %s2191_s24), 31  ;;  %616 = sbr.rel (%p2193_p10) target bundleno = 2727 (0xaa7), region = 129 }
  0x2d   : > { %s605_s29 = scalar_lea.vmem %s3056_s11, %s2712_s25  ;;  %s2192_s23 = sshll.u32 %s3073_s24, 2  ;;  %vm621_vm0 = vcmask (!%p2193_p10), 523264   ;;  %v2473_v22 = vld [vmem:[%s3049_s4 + $0x4] ss:$8 sps:$4 sm:$0xff] (!%p2193_p10)   ;;  %v2475_v23 = vld [vmem:[%s3049_s4] ss:$8 sps:$4 sm:$0xff] (!%p2193_p10)   ;;  %v676_v48 = vlaneseq (!%p2193_p10) }
  0x2e   : > { %s2721_s17 = scalar_lea.vmem %s3057_s12, %s2192_s23  ;;  %s3067_s10 = sld [smem:[#allocation7_spill]] (!%p2193_p10)  ;;  %729 = vmatprep.subr.bf16.mxu0 (!%p2193_p10), %v2473_v22  ;;  %v2476_v24 = vld [vmem:[%s3049_s4 + $0x14] ss:$8 sps:$4 sm:$0xff] (!%p2193_p10)   ;;  %v2478_v25 = vld [vmem:[%s3049_s4 + $0x10] ss:$8 sps:$4 sm:$0xff] (!%p2193_p10)   ;;  %v2573_v30 = vmov (!%p2193_p10), 0  }
  0x2f   : > { %730 = vmatpush1.bf16.msra.mxu0 (!%p2193_p10), %v2475_v23  ;;  %v2479_v26 = vld [vmem:[%s3049_s4 + $0x24] ss:$8 sps:$4 sm:$0xff] (!%p2193_p10)   ;;  %v2481_v27 = vld [vmem:[%s3049_s4 + $0x20] ss:$8 sps:$4 sm:$0xff] (!%p2193_p10)   ;;  %v2482_v28 = vld [vmem:[%s3049_s4 + $0x34] ss:$8 sps:$4 sm:$0xff] (!%p2193_p10)   ;;  %761 = vmatprep.mubr.bf16.mxu0 (!%p2193_p10), %v2573_v30 }
  0x30   : > { %731 = vmatprep.subr.bf16.mxu0 (!%p2193_p10), %v2476_v24  ;;  %v2484_v29 = vld [vmem:[%s3049_s4 + $0x30] ss:$8 sps:$4 sm:$0xff] (!%p2193_p10)   ;;  %v2194_v39 = vld [vmem:[%s3047_s2] ss:$0 sm:$0xff] (!%p2193_p10)  ;;  %v677_v49 = vshrl.u32 (!%p2193_p10), %v676_v48, 7  ;;  %v2574_v50 = vmov (!%p2193_p10), 0.0  }
  0x31   : > { %v2195_v43 = vld [vmem:[%s3048_s3] ss:$0 sm:$0xff] (!%p2193_p10)  ;;  %2297 = vmatprep.subr.bf16.mxu1 (!%p2193_p10), %v2574_v50  ;;  %vm2575_vm1 = vmmov (!%p2193_p10), 0   ;;  %s2576_s14 = smov (!%p2193_p10), 64   ;;  %s2577_s26 = smov (!%p2193_p10), 112   ;;  %vm784_vm2 = vcmask (!%p2193_p10), 130048  }
  0x32   : > { %v678_v51 = vsub.s32 (!%p2193_p10), 0, %v677_v49  ;;  %v674_v52 = vld [vmem:[%s3050_s5] sm:$0x3] (!%p2193_p10)  ;;  %v682_v53 = vsub.s32 (!%p2193_p10), 1, %v677_v49  ;;  %2299 = vmatprep.mubr.msk.bf16.mxu1 (!%p2193_p10), %vm2575_vm1, %v2574_v50  ;;  %s2578_s20 = smov (!%p2193_p10), 96   ;;  %s2579_s24 = smov (!%p2193_p10), 80  }
  0x33   : > { %732 = vmatpush1.bf16.msra.mxu0 %v2478_v25  ;;  %s2580_s28 = smov 48   ;;  %s2581_s23 = smov 32   ;;  %vm847_vm3 = vcmask 1043456   ;;  %v2811_v7 = vld [vmem:[%s3046_s1] sm:$0xff]  ;;  %vm831_vm4 = vcmask 64512   ;;  %vm1012_vm5 = vcmask 261248  }
  0x34   : > { %v2729_v8 = vld [vmem:[%s3067_s10] sm:$0xff]  ;;  %v2734_v9 = vld [vmem:[%s3067_s10 + $0x8] sm:$0xff]  ;;  %733 = vmatprep.subr.bf16.mxu0 %v2479_v26  ;;  %v679_v54 = vrot.slane %v674_v52, %v678_v51  ;;  %v683_v55 = vrot.slane %v674_v52, %v682_v53  ;;  %s2582_s30 = smov 16   ;;  %vm1134_vm6 = vcmask 392448   ;;  %vm1256_vm7 = vcmask 523648  }
  0x35   : > { %v622_v10 = vsel %vm621_vm0, %v2729_v8, 0.0  ;;  %v625_v11 = vsel %vm621_vm0, %v2734_v9, 0.0 }
  0x36   : > { %623 = vadd.xlane.f32.xlu0 %v622_v10 }
  0x37   : > { %734 = vmatpush1.bf16.msra.mxu0 %v2481_v27 }
  0x38   : > { %735 = vmatprep.subr.bf16.mxu0 %v2482_v28 }
  0x3a   : > { %626 = vadd.xlane.f32.xlu0 %v625_v11 }
  0x3b   : > { %736 = vmatpush1.bf16.msra.mxu0 %v2484_v29 }
  0x3c   : > { %2321 = vmatprep.subr.bf16.mxu0 %v2574_v50 }
  0xc3   : > { %v624_v12 = vpop.xlane.xlu0 %623 }
  0xc4   : > { %v629_v13 = vmul.f32 0.015625, %v624_v12 }
  0xc6   : > { %v631_v14 = vsub.f32 %v2729_v8, %v629_v13 }
  0xc7   : > { %v627_v15 = vpop.xlane.xlu0 %626 }
  0xc8   : > { %v630_v16 = vmul.f32 0.015625, %v627_v15  ;;  %v633_v17 = vmul.f32 %v631_v14, %v631_v14 }
  0xca   : > { %v632_v18 = vsub.f32 %v2734_v9, %v630_v16  ;;  %v635_v19 = vsel %vm621_vm0, %v633_v17, 0.0 }
  0xcb   : > { %636 = vadd.xlane.f32.xlu1 %v635_v19 }
  0xcc   : > { %v634_v20 = vmul.f32 %v632_v18, %v632_v18 }
  0xce   : > { %v638_v21 = vsel %vm621_vm0, %v634_v20, 0.0 }
  0xcf   : > { %639 = vadd.xlane.f32.xlu1 %v638_v21 }
 0x158   : > { %v637_v31 = vpop.xlane.xlu1 %636 }
 0x159   : > { %v641_v32 = vmul.f32 0.015625, %v637_v31 }
 0x15b   : > { %v643_v33 = vadd.f32 1e-05, %v641_v32 }
 0x15c   : > { %v640_v34 = vpop.xlane.xlu1 %639 }
 0x15d   : > { %2489 = vrsqrt.f32 %v643_v33  ;;  %v642_v35 = vmul.f32 0.015625, %v640_v34 }
 0x15f   : > { %v644_v36 = vadd.f32 1e-05, %v642_v35 }
 0x161   : > { %2491 = vrsqrt.f32 %v644_v36 }
 0x167   : > { %v2490_v37 = vpop.eup %2489 }
 0x168   : > { %v647_v38 = vmul.f32 %v2490_v37, %v631_v14 }
 0x16a   : > { %v655_v42 = vmul.f32 %v2194_v39, %v647_v38 }
 0x16b   : > { %v2492_v40 = vpop.eup %2491 }
 0x16c   : > { %v648_v41 = vmul.f32 %v2492_v40, %v632_v18  ;;  %v663_v45 = vadd.f32 %v2195_v43, %v655_v42 }
 0x16e   : > { %v656_v44 = vmul.f32 %v2194_v39, %v648_v41 }
 0x170   : > { %v664_v46 = vadd.f32 %v2195_v43, %v656_v44 }
 0x172   : > { %v665_v47 = vpack.c.bf16 %v664_v46, %v663_v45 }
 0x174   : > { %2204 = vmatmul.mubr.msk.bf16.vlgmr.msra.gmra.mrb[0].mxu0 %vm621_vm0, %v665_v47 }
 0x175   : > { %2323 = vmatprep.mubr.msk.bf16.mxu0 %vm2575_vm1, %v2574_v50 }
 0x247   : > { %v763_v56 = vpop.f32.mrb[0].mxu0 }
 0x248   : > { %v764_v57 = vadd.f32 %v763_v56, %v679_v54  ;;  %v765_v58 = vpop.f32.mrb[1].mxu0 }
 0x249   : > { %v766_v59 = vadd.f32 %v765_v58, %v683_v55  ;;  %v767_v60 = vpop.f32.mrb[2].mxu0 }
 0x24a   : > { %v768_v61 = vadd.f32 %v767_v60, %v679_v54  ;;  %v769_v62 = vpop.f32.mrb[3].mxu0  ;;  %v778_v63 = vpack.c.bf16 %v764_v57, %v764_v57 }
 0x24b   : > { %773 = vst.msk [vmem:[#allocation2 + $0x8] sm:$0xff] %vm621_vm0, %v766_v59  ;;  %v770_v0 = vadd.f32 %v769_v62, %v683_v55 }
 0x24c   : > { %782 = vrot.lane.b32.xlu0 %v778_v63, %s2576_s14  ;;  %v2790_v1 = vpack.c.bf16 %v768_v61, %v768_v61 }
 0x24d   : > { %775 = vst.msk [vmem:[#allocation2 + $0x18] sm:$0xff] %vm621_vm0, %v770_v0 }
 0x250   : > { %897 = vrot.lane.b32.xlu0 %v778_v63, %s2577_s26 }
 0x252   : > { %v779_v4 = vld [vmem:[#allocation2 + $0x8] sm:$0xff] }
 0x253   : > { %v2800_v5 = vpack.c.bf16 %v779_v4, %v779_v4 }
 0x254   : > { %1019 = vrot.lane.b32.xlu0 %v778_v63, %s2578_s20 }
 0x255   : > { %v849_v6 = vsel %vm847_vm3, %v2800_v5, 0 }
 0x258   : > { %1141 = vrot.lane.b32.xlu0 %v778_v63, %s2579_s24 }
 0x25c   : > { %1377 = vrot.lane.b32.xlu0 %v2790_v1, %s2580_s28 }
 0x260   : > { %1498 = vrot.lane.b32.xlu0 %v2790_v1, %s2581_s23 }
 0x264   : > { %1619 = vrot.lane.b32.xlu0 %v2790_v1, %s2582_s30 }
 0x2be   : > { %v783_v2 = vpop.permute.xlu0 %782 }
 0x2bf   : > { %v789_v3 = vsel %vm784_vm2, %v783_v2, 0 }
 0x2c0   : > { %2298 = vmatpush3.bf16.xpose.msra.mxu1 %v789_v3 }
 0x2c1   : > { %2303 = vmatprep.subr.bf16.mxu1 %v2574_v50 }
 0x2c2   : > { %v898_v25 = vpop.permute.xlu0 %897 }
 0x2c6   : > { %v1020_v30 = vpop.permute.xlu0 %1019 }
 0x2c7   : > { %2300 = vmatmul.mubr.msk.bf16.vlgmr.msra.gmra.mrb[0].mxu1 %vm784_vm2, %v778_v63 }
 0x2c8   : > { %2304 = vmatpush3.bf16.msra.mxu1 %v849_v6  ;;  %2305 = vmatprep.mubr.msk.bf16.mxu1 %vm2575_vm1, %v2574_v50 }
 0x2c9   : > { %2309 = vmatprep.subr.bf16.mxu1 %v2574_v50 }
 0x2ca   : > { %v1142_v34 = vpop.permute.xlu0 %1141 }
 0x2ce   : > { %v1378_v36 = vpop.permute.xlu0 %1377 }
 0x2cf   : > { %v1383_v37 = vsel %vm784_vm2, %v1378_v36, 0 }
 0x2d2   : > { %v1499_v38 = vpop.permute.xlu0 %1498 }
 0x2d3   : > { %v1504_v40 = vsel %vm784_vm2, %v1499_v38, 0 }
 0x2d6   : > { %v1620_v41 = vpop.permute.xlu0 %1619 }
 0x2d7   : > { %v1625_v43 = vsel %vm784_vm2, %v1620_v41, 0 }
 0x39a   : > { %v825_v10 = vpop.f32.mrb[0].mxu1 }
 0x39b   : > { %v826_v11 = vadd.f32 %v825_v10, %v2811_v7  ;;  %v2301_v12 = vpop.f32.mrb[1].mxu1 }
 0x39c   : > { %v828_v13 = vpop.f32.mrb[2].mxu1 }
 0x39d   : > { %v2302_v14 = vpop.f32.mrb[3].mxu1  ;;  %v832_v15 = vsel %vm831_vm4, %v826_v11, -inf }
 0x39e   : > { %833 = vmax.xlane.f32.xlu1 %v832_v15 }
 0x42b   : > { %v834_v16 = vpop.xlane.xlu1 %833 }
 0x42c   : > { %v835_v17 = vsub.f32 %v826_v11, %v834_v16 }
 0x42e   : > { %v836_v18 = vmul.f32 1.442695, %v835_v17 }
 0x430   : > { %2493 = vpow2.f32 %v836_v18 }
 0x43a   : > { %v2494_v19 = vpop.eup %2493 }
 0x43b   : > { %v838_v20 = vsel %vm831_vm4, %v2494_v19, 0.0 }
 0x43c   : > { %839 = vadd.xlane.f32.xlu1 %v838_v20 }
 0x44d   : > { %899 = vrot.lane.b32.xlu1 %v778_v63, %s2580_s28 }
 0x451   : > { %1021 = vrot.lane.b32.xlu1 %v778_v63, %s2581_s23 }
 0x455   : > { %1143 = vrot.lane.b32.xlu1 %v778_v63, %s2582_s30 }
 0x459   : > { %1263 = vrot.lane.b32.xlu1 %v2790_v1, %s2576_s14 }
 0x45d   : > { %1375 = vrot.lane.b32.xlu1 %v2790_v1, %s2577_s26 }
 0x461   : > { %1496 = vrot.lane.b32.xlu1 %v2790_v1, %s2578_s20 }
 0x465   : > { %1617 = vrot.lane.b32.xlu1 %v2790_v1, %s2579_s24 }
 0x4c9   : > { %v840_v21 = vpop.xlane.xlu1 %839 }
 0x4ca   : > { %2495 = vrcp.f32 %v840_v21 }
 0x4cd   : > { %v900_v22 = vpop.permute.xlu1 %899 }
 0x4ce   : > { %v905_v31 = vsel %vm784_vm2, %v900_v22, 0 }
 0x4d1   : > { %v1022_v23 = vpop.permute.xlu1 %1021 }
 0x4d2   : > { %v1027_v24 = vsel %vm784_vm2, %v1022_v23, 0 }
 0x4d3   : > { %2322 = vmatpush3.bf16.xpose.msra.mxu0 %v1027_v24 }
 0x4d4   : > { %v2496_v26 = vpop.eup %2495  ;;  %2333 = vmatprep.subr.bf16.mxu0 %v2574_v50 }
 0x4d5   : > { %v842_v27 = vmul.f32 %v2496_v26, %v2494_v19  ;;  %v1144_v28 = vpop.permute.xlu1 %1143 }
 0x4d6   : > { %v1149_v32 = vsel %vm784_vm2, %v1144_v28, 0 }
 0x4d7   : > { %v843_v29 = vpack.c.bf16 %v842_v27, %v842_v27 }
 0x4d9   : > { %2306 = vmatmul.mubr.msk.bf16.vlgmr.msra.gmra.mrb[4].mxu1 %vm831_vm4, %v843_v29  ;;  %v1264_v33 = vpop.permute.xlu1 %1263 }
 0x4da   : > { %2310 = vmatpush3.bf16.xpose.msra.mxu1 %v905_v31  ;;  %2324 = vmatmul.mubr.msk.bf16.vlgmr.msra.gmra.mrb[4].mxu0 %vm784_vm2, %v1020_v30  ;;  %v1269_v35 = vsel %vm784_vm2, %v1264_v33, 0 }
 0x4db   : > { %2334 = vmatpush3.bf16.xpose.msra.mxu0 %v1149_v32  ;;  %2311 = vmatprep.mubr.msk.bf16.mxu1 %vm2575_vm1, %v2574_v50 }
 0x4dc   : > { %2335 = vmatprep.mubr.msk.bf16.mxu0 %vm2575_vm1, %v2574_v50  ;;  %2345 = vmatprep.subr.bf16.mxu0 %v2574_v50 }
 0x4dd   : > { %2315 = vmatprep.subr.bf16.mxu1 %v2574_v50  ;;  %v1376_v39 = vpop.permute.xlu1 %1375 }
 0x4e1   : > { %2312 = vmatmul.mubr.msk.bf16.vlgmr.msra.gmra.mrb[8].mxu1 %vm784_vm2, %v898_v25  ;;  %v1497_v42 = vpop.permute.xlu1 %1496 }
 0x4e2   : > { %2336 = vmatmul.mubr.msk.bf16.vlgmr.msra.gmra.mrb[8].mxu0 %vm784_vm2, %v1142_v34  ;;  %2317 = vmatprep.mubr.msk.bf16.mxu1 %vm2575_vm1, %v2574_v50 }
 0x4e3   : > { %2346 = vmatpush3.bf16.xpose.msra.mxu0 %v1269_v35  ;;  %2347 = vmatprep.mubr.msk.bf16.mxu0 %vm2575_vm1, %v2574_v50 }
 0x4e4   : > { %2357 = vmatprep.subr.bf16.mxu0 %v2574_v50 }
 0x4e5   : > { %v1618_v44 = vpop.permute.xlu1 %1617 }
 0x4ea   : > { %2348 = vmatmul.mubr.msk.bf16.vlgmr.msra.gmra.mrb[12].mxu0 %vm784_vm2, %v2790_v1 }
 0x4eb   : > { %2358 = vmatpush3.bf16.xpose.msra.mxu0 %v1383_v37  ;;  %2359 = vmatprep.mubr.msk.bf16.mxu0 %vm2575_vm1, %v2574_v50 }
 0x4ec   : > { %2369 = vmatprep.subr.bf16.mxu0 %v2574_v50 }
 0x4f2   : > { %2360 = vmatmul.mubr.msk.bf16.vlgmr.msra.gmra.mrb[16].mxu0 %vm784_vm2, %v1376_v39 }
 0x4f3   : > { %2370 = vmatpush3.bf16.xpose.msra.mxu0 %v1504_v40  ;;  %2371 = vmatprep.mubr.msk.bf16.mxu0 %vm2575_vm1, %v2574_v50 }
 0x4f4   : > { %2381 = vmatprep.subr.bf16.mxu0 %v2574_v50 }
 0x4fa   : > { %2372 = vmatmul.mubr.msk.bf16.vlgmr.msra.gmra.mrb[20].mxu0 %vm784_vm2, %v1497_v42 }
 0x4fb   : > { %2382 = vmatpush3.bf16.xpose.msra.mxu0 %v1625_v43  ;;  %2383 = vmatprep.mubr.msk.bf16.mxu0 %vm2575_vm1, %v2574_v50 }
 0x4fc   : > { %2393 = vmatprep.subr.bf16.mxu0 %v2574_v50 }
 0x502   : > { %2384 = vmatmul.mubr.msk.bf16.vlgmr.msra.gmra.mrb[24].mxu0 %vm784_vm2, %v1618_v44 }
 0x503   : > { %2401 = vmatprep.mubr.msk.bf16.mxu0 %vm2575_vm1, %v2574_v50 }
 0x5ac   : > { %v885_v45 = vpop.f32.mrb[4].mxu1 }
 0x5ad   : > { %891 = vst.msk [vmem:[#allocation3] sm:$0xff] %vm784_vm2, %v885_v45  ;;  %v2307_v46 = vpop.f32.mrb[5].mxu1  ;;  %v1063_v47 = vpop.f32.mrb[4].mxu0 }
 0x5ae   : > { %v1064_v48 = vadd.f32 %v1063_v47, %v2811_v7  ;;  %v888_v49 = vpop.f32.mrb[6].mxu1  ;;  %v2325_v51 = vpop.f32.mrb[5].mxu0 }
 0x5af   : > { %v2308_v52 = vpop.f32.mrb[7].mxu1  ;;  %v1066_v53 = vpop.f32.mrb[6].mxu0 }
 0x5b0   : > { %v2326_v54 = vpop.f32.mrb[7].mxu0  ;;  %v1069_v55 = vsel %vm831_vm4, %v1064_v48, -inf }
 0x5b1   : > { %1070 = vmax.xlane.f32.xlu1 %v1069_v55 }
 0x5b4   : > { %v941_v56 = vpop.f32.mrb[8].mxu1 }
 0x5b5   : > { %v942_v57 = vadd.f32 %v941_v56, %v2811_v7  ;;  %v2313_v58 = vpop.f32.mrb[9].mxu1  ;;  %v1185_v59 = vpop.f32.mrb[8].mxu0 }
 0x5b6   : > { %v944_v60 = vpop.f32.mrb[10].mxu1  ;;  %v2337_v61 = vpop.f32.mrb[9].mxu0  ;;  %v1186_v62 = vadd.f32 %v1185_v59, %v2811_v7 }
 0x5b7   : > { %v2314_v63 = vpop.f32.mrb[11].mxu1  ;;  %v1188_v0 = vpop.f32.mrb[10].mxu0  ;;  %v947_v1 = vsel %vm831_vm4, %v942_v57, -inf }
 0x5b8   : > { %948 = vmax.xlane.f32.xlu0 %v947_v1  ;;  %v2338_v2 = vpop.f32.mrb[11].mxu0  ;;  %v1191_v3 = vsel %vm831_vm4, %v1186_v62, -inf }
 0x5bc   : > { %1192 = vmax.xlane.f32.xlu0 %v1191_v3  ;;  %v1372_v3 = vld [vmem:[#allocation2 + $0x18] sm:$0xff] }
 0x5bd   : > { %v1305_v4 = vpop.f32.mrb[12].mxu0 }
 0x5be   : > { %v1306_v6 = vadd.f32 %v1305_v4, %v2811_v7  ;;  %v2349_v10 = vpop.f32.mrb[13].mxu0  ;;  %v1373_v4 = vpack.c.bf16 %v1372_v3, %v1372_v3  ;;  %v2485_v3 = vld [vmem:[%s3051_s6] sm:$0xff]  }
 0x5bf   : > { %v1308_v11 = vpop.f32.mrb[14].mxu0  ;;  %2394 = vmatpush3.bf16.msra.mxu0 %v2485_v3 }
 0x5c0   : > { %v2350_v12 = vpop.f32.mrb[15].mxu0  ;;  %v1311_v13 = vsel %vm831_vm4, %v1306_v6, -inf  ;;  %2395 = vmatprep.subr.bf16.mxu0 %v2574_v50 }
 0x5c1   : > { %1312 = vmax.xlane.f32.xlu0 %v1311_v13 }
 0x5c5   : > { %v1419_v14 = vpop.f32.mrb[16].mxu0 }
 0x5c6   : > { %v1420_v15 = vadd.f32 %v1419_v14, %v2811_v7  ;;  %v2361_v16 = vpop.f32.mrb[17].mxu0 }
 0x5c7   : > { %v1422_v17 = vpop.f32.mrb[18].mxu0 }
 0x5c8   : > { %v2362_v18 = vpop.f32.mrb[19].mxu0  ;;  %v1425_v19 = vsel %vm831_vm4, %v1420_v15, -inf }
 0x5c9   : > { %1426 = vmax.xlane.f32.xlu0 %v1425_v19 }
 0x5cd   : > { %v1540_v20 = vpop.f32.mrb[20].mxu0 }
 0x5ce   : > { %v1541_v21 = vadd.f32 %v1540_v20, %v2811_v7  ;;  %v2373_v22 = vpop.f32.mrb[21].mxu0 }
 0x5cf   : > { %v1543_v23 = vpop.f32.mrb[22].mxu0 }
 0x5d0   : > { %v2374_v24 = vpop.f32.mrb[23].mxu0  ;;  %v1546_v25 = vsel %vm831_vm4, %v1541_v21, -inf }
 0x5d1   : > { %1547 = vmax.xlane.f32.xlu1 %v1546_v25 }
 0x5d5   : > { %v1661_v26 = vpop.f32.mrb[24].mxu0 }
 0x5d6   : > { %v1662_v27 = vadd.f32 %v1661_v26, %v2811_v7  ;;  %v2385_v28 = vpop.f32.mrb[25].mxu0 }
 0x5d7   : > { %v1664_v29 = vpop.f32.mrb[26].mxu0 }
 0x5d8   : > { %v2386_v30 = vpop.f32.mrb[27].mxu0  ;;  %v1667_v31 = vsel %vm831_vm4, %v1662_v27, -inf  ;;  %v1327_v29 = vsel %vm847_vm3, %v1373_v4, 0 }
 0x5d9   : > { %1668 = vmax.xlane.f32.xlu0 %v1667_v31 }
 0x63e   : > { %v1071_v32 = vpop.xlane.xlu1 %1070 }
 0x63f   : > { %v1072_v33 = vsub.f32 %v1064_v48, %v1071_v32 }
 0x641   : > { %v1073_v34 = vmul.f32 1.442695, %v1072_v33 }
 0x643   : > { %2497 = vpow2.f32 %v1073_v34 }
 0x645   : > { %v949_v35 = vpop.xlane.xlu0 %948 }
 0x646   : > { %v950_v36 = vsub.f32 %v942_v57, %v949_v35 }
 0x648   : > { %v951_v39 = vmul.f32 1.442695, %v950_v36 }
 0x649   : > { %v1193_v37 = vpop.xlane.xlu0 %1192 }
 0x64a   : > { %v1194_v38 = vsub.f32 %v1186_v62, %v1193_v37 }
 0x64c   : > { %v1195_v40 = vmul.f32 1.442695, %v1194_v38 }
 0x64d   : > { %v2881_v41 = vpop.eup %2497 }
 0x64e   : > { %2499 = vpow2.f32 %v1195_v40  ;;  %v1313_v7 = vpop.xlane.xlu0 %1312  ;;  %v1075_v42 = vsel %vm831_vm4, %v2881_v41, 0.0 }
 0x64f   : > { %v1314_v43 = vsub.f32 %v1306_v6, %v1313_v7  ;;  %1076 = vadd.xlane.f32.xlu0 %v1075_v42  ;;  %2501 = vpow2.f32 %v951_v39 }
 0x651   : > { %v1315_v44 = vmul.f32 1.442695, %v1314_v43 }
 0x653   : > { %2503 = vpow2.f32 %v1315_v44 }
 0x656   : > { %v1427_v45 = vpop.xlane.xlu0 %1426 }
 0x657   : > { %v1428_v46 = vsub.f32 %v1420_v15, %v1427_v45 }
 0x658   : > { %v2885_v47 = vpop.eup %2499 }
 0x659   : > { %v1429_v48 = vmul.f32 1.442695, %v1428_v46  ;;  %v1197_v49 = vsel %vm831_vm4, %v2885_v47, 0.0  ;;  %v2502_v51 = vpop.eup %2501 }
 0x65a   : > { %1198 = vadd.xlane.f32.xlu1 %v1197_v49  ;;  %v953_v53 = vsel %vm831_vm4, %v2502_v51, 0.0 }
 0x65b   : > { %2505 = vpow2.f32 %v1429_v48 }
 0x65d   : > { %v2889_v52 = vpop.eup %2503 }
 0x65e   : > { %954 = vadd.xlane.f32.xlu1 %v953_v53  ;;  %v1317_v54 = vsel %vm831_vm4, %v2889_v52, 0.0  ;;  %v1548_v57 = vpop.xlane.xlu1 %1547 }
 0x65f   : > { %1318 = vadd.xlane.f32.xlu0 %v1317_v54  ;;  %v1549_v58 = vsub.f32 %v1541_v21, %v1548_v57 }
 0x661   : > { %v1550_v59 = vmul.f32 1.442695, %v1549_v58 }
 0x663   : > { %2507 = vpow2.f32 %v1550_v59 }
 0x665   : > { %v2894_v55 = vpop.eup %2505 }
 0x666   : > { %v1431_v56 = vsel %vm831_vm4, %v2894_v55, 0.0  ;;  %v1669_v60 = vpop.xlane.xlu0 %1668 }
 0x667   : > { %1432 = vadd.xlane.f32.xlu0 %v1431_v56  ;;  %v1670_v61 = vsub.f32 %v1662_v27, %v1669_v60 }
 0x669   : > { %v1671_v62 = vmul.f32 1.442695, %v1670_v61 }
 0x66b   : > { %2509 = vpow2.f32 %v1671_v62 }
 0x66d   : > { %v2904_v63 = vpop.eup %2507 }
 0x66e   : > { %v1552_v0 = vsel %vm831_vm4, %v2904_v63, 0.0 }
 0x66f   : > { %960 = vrot.lane.b32.xlu1 %v2800_v5, %s2577_s26 }
 0x675   : > { %v2908_v1 = vpop.eup %2509 }
 0x676   : > { %v1673_v2 = vsel %vm831_vm4, %v2908_v1, 0.0 }
 0x67d   : > { %1082 = vrot.lane.b32.xlu0 %v2800_v5, %s2578_s20 }
 0x681   : > { %1204 = vrot.lane.b32.xlu0 %v2800_v5, %s2579_s24 }
 0x693   : > { %1553 = vadd.xlane.f32.xlu1 %v1552_v0 }
 0x6a0   : > { %1674 = vadd.xlane.f32.xlu0 %v1673_v2 }
 0x6a4   : > { %1438 = vrot.lane.b32.xlu1 %v1373_v4, %s2577_s26 }
 0x6a8   : > { %1680 = vrot.lane.b32.xlu1 %v1373_v4, %s2579_s24 }
 0x6b6   : > { %1559 = vrot.lane.b32.xlu0 %v1373_v4, %s2578_s20 }
 0x6dc   : > { %v1077_v10 = vpop.xlane.xlu0 %1076 }
 0x6e7   : > { %v1199_v5 = vpop.xlane.xlu1 %1198 }
 0x6eb   : > { %v955_v6 = vpop.xlane.xlu1 %954 }
 0x6ec   : > { %2511 = vrcp.f32 %v955_v6  ;;  %v1319_v12 = vpop.xlane.xlu0 %1318  ;;  %v2486_v6 = vld [vmem:[%s3051_s6 + $0x8] sm:$0xff]  }
 0x6ed   : > { %2513 = vrcp.f32 %v1077_v10  ;;  %2396 = vmatpush3.bf16.msra.mxu0 %v2486_v6  ;;  %v2487_v10 = vld [vmem:[%s3051_s6 + $0x10] sm:$0xff]  }
 0x6ee   : > { %2515 = vrcp.f32 %v1199_v5  ;;  %2397 = vmatprep.subr.bf16.mxu0 %v2574_v50 }
 0x6ef   : > { %v961_v11 = vpop.permute.xlu1 %960  ;;  %2517 = vrcp.f32 %v1319_v12 }
 0x6f0   : > { %v966_v13 = vsel %vm847_vm3, %v961_v11, 0  ;;  %v2488_v11 = vld [vmem:[%s3051_s6 + $0x18] sm:$0xff]  }
 0x6f1   : > { %2316 = vmatpush3.bf16.msra.mxu1 %v966_v13  ;;  %2398 = vmatpush3.bf16.msra.mxu0 %v2487_v10 }
 0x6f2   : > { %2327 = vmatprep.subr.bf16.mxu1 %v2574_v50  ;;  %2399 = vmatprep.subr.bf16.mxu0 %v2574_v50 }
 0x6f4   : > { %v1433_v14 = vpop.xlane.xlu0 %1432 }
 0x6f5   : > { %2519 = vrcp.f32 %v1433_v14  ;;  %2400 = vmatpush3.bf16.msra.mxu0 %v2488_v11 }
 0x6f6   : > { %v2512_v15 = vpop.eup %2511 }
 0x6f7   : > { %v957_v16 = vmul.f32 %v2512_v15, %v2502_v51  ;;  %v2514_v20 = vpop.eup %2513 }
 0x6f8   : > { %v1083_v17 = vpop.permute.xlu0 %1082  ;;  %v1079_v21 = vmul.f32 %v2514_v20, %v2881_v41  ;;  %v2516_v24 = vpop.eup %2515 }
 0x6f9   : > { %v1088_v18 = vsel %vm847_vm3, %v1083_v17, 0  ;;  %v958_v19 = vpack.c.bf16 %v957_v16, %v957_v16  ;;  %v1201_v26 = vmul.f32 %v2516_v24, %v2885_v47  ;;  %v2518_v28 = vpop.eup %2517 }
 0x6fa   : > { %v1080_v23 = vpack.c.bf16 %v1079_v21, %v1079_v21  ;;  %v1321_v30 = vmul.f32 %v2518_v28, %v2889_v52  ;;  %v2221_v28 = vld [vmem:[%s3052_s7] ss:$0 sm:$0xff] }
 0x6fb   : > { %2318 = vmatmul.mubr.msk.bf16.vlgmr.msra.gmra.mrb[12].mxu1 %vm831_vm4, %v958_v19  ;;  %v1202_v27 = vpack.c.bf16 %v1201_v26, %v1201_v26 }
 0x6fc   : > { %2328 = vmatpush3.bf16.msra.mxu1 %v1088_v18  ;;  %2329 = vmatprep.mubr.msk.bf16.mxu1 %vm2575_vm1, %v2574_v50  ;;  %v1205_v22 = vpop.permute.xlu0 %1204  ;;  %v1322_v31 = vpack.c.bf16 %v1321_v30, %v1321_v30 }
 0x6fd   : > { %2339 = vmatprep.subr.bf16.mxu1 %v2574_v50  ;;  %v1210_v25 = vsel %vm847_vm3, %v1205_v22, 0 }
 0x6ff   : > { %v2520_v32 = vpop.eup %2519 }
 0x700   : > { %v1435_v34 = vmul.f32 %v2520_v32, %v2894_v55  ;;  %v2229_v32 = vld [vmem:[%s3058_s13] ss:$0 sm:$0xff] }
 0x702   : > { %v1436_v37 = vpack.c.bf16 %v1435_v34, %v1435_v34 }
 0x703   : > { %2330 = vmatmul.mubr.msk.bf16.vlgmr.msra.gmra.mrb[16].mxu1 %vm831_vm4, %v1080_v23 }
 0x704   : > { %2340 = vmatpush3.bf16.msra.mxu1 %v1210_v25  ;;  %2341 = vmatprep.mubr.msk.bf16.mxu1 %vm2575_vm1, %v2574_v50 }
 0x705   : > { %2351 = vmatprep.subr.bf16.mxu1 %v2574_v50 }
 0x70b   : > { %2342 = vmatmul.mubr.msk.bf16.vlgmr.msra.gmra.mrb[20].mxu1 %vm831_vm4, %v1202_v27 }
 0x70c   : > { %2352 = vmatpush3.bf16.msra.mxu1 %v1327_v29  ;;  %2353 = vmatprep.mubr.msk.bf16.mxu1 %vm2575_vm1, %v2574_v50 }
 0x70d   : > { %2363 = vmatprep.subr.bf16.mxu1 %v2574_v50 }
 0x713   : > { %2354 = vmatmul.mubr.msk.bf16.vlgmr.msra.gmra.mrb[24].mxu1 %vm831_vm4, %v1322_v31 }
 0x714   : > { %2365 = vmatprep.mubr.msk.bf16.mxu1 %vm2575_vm1, %v2574_v50 }
 0x720   : > { %v1554_v33 = vpop.xlane.xlu1 %1553 }
 0x721   : > { %2521 = vrcp.f32 %v1554_v33 }
 0x724   : > { %v1439_v35 = vpop.permute.xlu1 %1438 }
 0x725   : > { %v1444_v36 = vsel %vm847_vm3, %v1439_v35, 0 }
 0x726   : > { %2364 = vmatpush3.bf16.msra.mxu1 %v1444_v36 }
 0x727   : > { %2375 = vmatprep.subr.bf16.mxu1 %v2574_v50 }
 0x728   : > { %v1681_v42 = vpop.permute.xlu1 %1680 }
 0x729   : > { %2366 = vmatmul.mubr.msk.bf16.vlgmr.msra.gmra.mrb[28].mxu1 %vm831_vm4, %v1436_v37  ;;  %v1686_v44 = vsel %vm847_vm3, %v1681_v42, 0 }
 0x72a   : > { %2377 = vmatprep.mubr.msk.bf16.mxu1 %vm2575_vm1, %v2574_v50 }
 0x72b   : > { %v2522_v38 = vpop.eup %2521 }
 0x72c   : > { %v1556_v40 = vmul.f32 %v2522_v38, %v2904_v63 }
 0x72d   : > { %v1675_v39 = vpop.xlane.xlu0 %1674 }
 0x72e   : > { %2523 = vrcp.f32 %v1675_v39  ;;  %v1557_v43 = vpack.c.bf16 %v1556_v40, %v1556_v40 }
 0x731   : > { %v1560_v41 = vpop.permute.xlu0 %1559 }
 0x732   : > { %v1565_v7 = vsel %vm847_vm3, %v1560_v41, 0 }
 0x733   : > { %2376 = vmatpush3.bf16.msra.mxu1 %v1565_v7 }
 0x734   : > { %2387 = vmatprep.subr.bf16.mxu1 %v2574_v50 }
 0x736   : > { %2378 = vmatmul.mubr.msk.bf16.vlgmr.msra.gmra.mrb[32].mxu1 %vm831_vm4, %v1557_v43 }
 0x737   : > { %2388 = vmatpush3.bf16.msra.mxu1 %v1686_v44  ;;  %2389 = vmatprep.mubr.msk.bf16.mxu1 %vm2575_vm1, %v2574_v50 }
 0x738   : > { %v2524_v45 = vpop.eup %2523 }
 0x739   : > { %v1677_v46 = vmul.f32 %v2524_v45, %v2908_v1 }
 0x73b   : > { %v1678_v47 = vpack.c.bf16 %v1677_v46, %v1677_v46 }
 0x73e   : > { %2390 = vmatmul.mubr.msk.bf16.vlgmr.msra.gmra.mrb[36].mxu1 %vm831_vm4, %v1678_v47 }
 0x7ce   : > { %v1002_v48 = vpop.f32.mrb[12].mxu1 }
 0x7cf   : > { %1009 = vrot.lane.b32.xlu1 %v1002_v48, %s2582_s30  ;;  %v2319_v49 = vpop.f32.mrb[13].mxu1 }
 0x7d0   : > { %v1005_v51 = vpop.f32.mrb[14].mxu1 }
 0x7d1   : > { %v2320_v52 = vpop.f32.mrb[15].mxu1 }
 0x7d6   : > { %v1124_v53 = vpop.f32.mrb[16].mxu1 }
 0x7d7   : > { %1131 = vrot.lane.b32.xlu1 %v1124_v53, %s2581_s23  ;;  %v2331_v54 = vpop.f32.mrb[17].mxu1 }
 0x7d8   : > { %v1127_v55 = vpop.f32.mrb[18].mxu1 }
 0x7d9   : > { %v2332_v56 = vpop.f32.mrb[19].mxu1 }
 0x7de   : > { %v1246_v57 = vpop.f32.mrb[20].mxu1 }
 0x7df   : > { %1253 = vrot.lane.b32.xlu0 %v1246_v57, %s2580_s28  ;;  %v2343_v58 = vpop.f32.mrb[21].mxu1 }
 0x7e0   : > { %v1249_v59 = vpop.f32.mrb[22].mxu1  ;;  %v2227_v58 = vld [vmem:[%s3053_s8] ss:$0 sm:$0xff] }
 0x7e1   : > { %v2344_v60 = vpop.f32.mrb[23].mxu1 }
 0x7e6   : > { %v1363_v61 = vpop.f32.mrb[24].mxu1 }
 0x7e7   : > { %1369 = vst.msk [vmem:[#allocation3 + $0x8] sm:$0xff] %vm784_vm2, %v1363_v61  ;;  %v2355_v62 = vpop.f32.mrb[25].mxu1 }
 0x7e8   : > { %v1366_v63 = vpop.f32.mrb[26].mxu1  ;;  %v2228_v62 = vld [vmem:[%s3054_s9] ss:$0 sm:$0xff] }
 0x7e9   : > { %v2356_v0 = vpop.f32.mrb[27].mxu1 }
 0x7fc   : > { %v1480_v1 = vpop.f32.mrb[28].mxu1 }
 0x7fd   : > { %1487 = vrot.lane.b32.xlu1 %v1480_v1, %s2582_s30  ;;  %v2367_v2 = vpop.f32.mrb[29].mxu1 }
 0x7fe   : > { %v1483_v4 = vpop.f32.mrb[30].mxu1 }
 0x7ff   : > { %v2368_v5 = vpop.f32.mrb[31].mxu1 }
 0x809   : > { %v1601_v12 = vpop.f32.mrb[32].mxu1 }
 0x80a   : > { %1608 = vrot.lane.b32.xlu1 %v1601_v12, %s2581_s23  ;;  %v2379_v13 = vpop.f32.mrb[33].mxu1 }
 0x80b   : > { %v1604_v14 = vpop.f32.mrb[34].mxu1 }
 0x80c   : > { %v2380_v15 = vpop.f32.mrb[35].mxu1 }
 0x811   : > { %v1722_v16 = vpop.f32.mrb[36].mxu1 }
 0x812   : > { %1729 = vrot.lane.b32.xlu1 %v1722_v16, %s2580_s28  ;;  %v2391_v17 = vpop.f32.mrb[37].mxu1 }
 0x813   : > { %v1725_v18 = vpop.f32.mrb[38].mxu1 }
 0x814   : > { %v2392_v19 = vpop.f32.mrb[39].mxu1 }
 0x841   : > { %v1010_v20 = vpop.permute.xlu1 %1009 }
 0x842   : > { %1013 = vst.msk [vmem:[#allocation3] sm:$0xff] %vm1012_vm5, %v1010_v20 }
 0x849   : > { %v1132_v21 = vpop.permute.xlu1 %1131 }
 0x84a   : > { %1135 = vst.msk [vmem:[#allocation3] sm:$0xff] %vm1134_vm6, %v1132_v21 }
 0x851   : > { %v1254_v50 = vpop.permute.xlu0 %1253 }
 0x852   : > { %1257 = vst.msk [vmem:[#allocation3] sm:$0xff] %vm1256_vm7, %v1254_v50 }
 0x859   : > { %v1733_v25 = vld [vmem:[#allocation3] sm:$0xff] }
 0x86f   : > { %v1488_v22 = vpop.permute.xlu1 %1487 }
 0x870   : > { %1490 = vst.msk [vmem:[#allocation3 + $0x8] sm:$0xff] %vm1012_vm5, %v1488_v22 }
 0x87c   : > { %v1609_v23 = vpop.permute.xlu1 %1608 }
 0x87d   : > { %1611 = vst.msk [vmem:[#allocation3 + $0x8] sm:$0xff] %vm1134_vm6, %v1609_v23 }
 0x884   : > { %v1730_v24 = vpop.permute.xlu1 %1729 }
 0x885   : > { %1732 = vst.msk [vmem:[#allocation3 + $0x8] sm:$0xff] %vm1256_vm7, %v1730_v24 }
 0x88c   : > { %v1734_v26 = vld [vmem:[#allocation3 + $0x8] sm:$0xff] }
 0x88d   : > { %v1735_v27 = vpack.c.bf16 %v1734_v26, %v1733_v25 }
 0x88f   : > { %2402 = vmatmul.mubr.msk.bf16.vlgmr.msra.gmra.mrb[28].mxu0 %vm621_vm0, %v1735_v27 }
 0x962   : > { %v1812_v29 = vpop.f32.mrb[28].mxu0 }
 0x963   : > { %v1813_v30 = vadd.f32 %v2221_v28, %v1812_v29  ;;  %v2403_v31 = vpop.f32.mrb[29].mxu0 }
 0x964   : > { %v1815_v33 = vpop.f32.mrb[30].mxu0 }
 0x965   : > { %v1819_v34 = vadd.f32 %v1813_v30, %v2729_v8  ;;  %v1816_v35 = vadd.f32 %v2221_v28, %v1815_v33  ;;  %v2404_v36 = vpop.f32.mrb[31].mxu0 }
 0x967   : > { %v1874_v37 = vadd.f32 %v2229_v32, %v1819_v34  ;;  %v1820_v38 = vadd.f32 %v1816_v35, %v2734_v9  ;;  %v1823_v39 = vsel %vm621_vm0, %v1819_v34, 0.0 }
 0x968   : > { %1824 = vadd.xlane.f32.xlu0 %v1823_v39 }
 0x969   : > { %1876 = vst.msk [vmem:[%s3061_s16] sm:$0xff] %vm621_vm0, %v1874_v37  ;;  %v1875_v40 = vadd.f32 %v2229_v32, %v1820_v38  ;;  %v1826_v41 = vsel %vm621_vm0, %v1820_v38, 0.0 }
 0x96a   : > { %1827 = vadd.xlane.f32.xlu1 %v1826_v41 }
 0x96b   : > { %1877 = vst.msk [vmem:[%s3061_s16 + $0x8] sm:$0xff] %vm621_vm0, %v1875_v40 }
 0x9f5   : > { %v1825_v8 = vpop.xlane.xlu0 %1824 }
 0x9f6   : > { %v1829_v7 = vmul.f32 0.015625, %v1825_v8 }
 0x9f7   : > { %v1828_v9 = vpop.xlane.xlu1 %1827 }
 0x9f8   : > { %v1831_v42 = vsub.f32 %v1819_v34, %v1829_v7  ;;  %v1830_v43 = vmul.f32 0.015625, %v1828_v9 }
 0x9fa   : > { %v1832_v44 = vsub.f32 %v1820_v38, %v1830_v43  ;;  %v1833_v45 = vmul.f32 %v1831_v42, %v1831_v42 }
 0x9fc   : > { %v1835_v46 = vsel %vm621_vm0, %v1833_v45, 0.0  ;;  %v1834_v47 = vmul.f32 %v1832_v44, %v1832_v44 }
 0x9fd   : > { %1836 = vadd.xlane.f32.xlu0 %v1835_v46 }
 0x9fe   : > { %v1838_v48 = vsel %vm621_vm0, %v1834_v47, 0.0 }
 0xa01   : > { %1839 = vadd.xlane.f32.xlu0 %v1838_v48 }
 0xa8a   : > { %v1837_v49 = vpop.xlane.xlu0 %1836 }
 0xa8b   : > { %v1841_v51 = vmul.f32 0.015625, %v1837_v49 }
 0xa8d   : > { %v1843_v52 = vadd.f32 1e-05, %v1841_v51 }
 0xa8e   : > { %v1840_v53 = vpop.xlane.xlu0 %1839 }
 0xa8f   : > { %2525 = vrsqrt.f32 %v1843_v52  ;;  %v1842_v54 = vmul.f32 0.015625, %v1840_v53 }
 0xa91   : > { %v1844_v55 = vadd.f32 1e-05, %v1842_v54 }
 0xa93   : > { %2527 = vrsqrt.f32 %v1844_v55 }
 0xa99   : > { %v2526_v56 = vpop.eup %2525 }
 0xa9a   : > { %v1847_v57 = vmul.f32 %v2526_v56, %v1831_v42 }
 0xa9c   : > { %v1855_v60 = vmul.f32 %v2227_v58, %v1847_v57 }
 0xa9d   : > { %v2528_v59 = vpop.eup %2527 }
 0xa9e   : > { %v1848_v61 = vmul.f32 %v2528_v59, %v1832_v44  ;;  %v1863_v0 = vadd.f32 %v2228_v62, %v1855_v60 }
 0xaa0   : > { %v1856_v63 = vmul.f32 %v2227_v58, %v1848_v61 }
 0xaa2   : > { %v1864_v1 = vadd.f32 %v2228_v62, %v1856_v63 }
 0xaa4   : > { %v1865_v2 = vpack.c.bf16 %v1864_v1, %v1863_v0 }
 0xaa6   : > { %1866 = vst.msk [vmem:[#allocation4] sm:$0xff] %vm621_vm0, %v1865_v2 }
 0xaa7 PF: > { %v2529_v3 = vld [vmem:[%s2723_s18] sm:$0xff]   ;;  %v2583_v4 = vmov 0.0   ;;  %v2530_v5 = vld [vmem:[%s2723_s18 + $0x8] sm:$0xff]   ;;  %vm2584_vm8 = vmmov 0   ;;  %v2531_v6 = vld [vmem:[%s2723_s18 + $0x10] sm:$0xff]   ;;  %vm1918_vm9 = vcmask 523264  }
 0xaa8   : > { %2405 = vmatprep.subr.bf16.mxu0 %v2583_v4  ;;  %2417 = vmatprep.subr.bf16.mxu1 %v2583_v4  ;;  %v2532_v10 = vld [vmem:[%s2723_s18 + $0x18] sm:$0xff]   ;;  %v2533_v12 = vld [vmem:[%s2721_s17] sm:$0xff]   ;;  %v2534_v13 = vld [vmem:[%s2721_s17 + $0x8] sm:$0xff]  }
 0xaa9   : > { %2406 = vmatpush3.bf16.msra.mxu0 %v2529_v3  ;;  %2413 = vmatprep.mubr.msk.bf16.mxu0 %vm2584_vm8, %v2583_v4  ;;  %v2535_v14 = vld [vmem:[%s2721_s17 + $0x10] sm:$0xff]   ;;  %v2536_v15 = vld [vmem:[%s2721_s17 + $0x18] sm:$0xff]   ;;  %v2537_v16 = vld [vmem:[%s2721_s17 + $0x20] sm:$0xff]  }
 0xaaa   : > { %2407 = vmatprep.subr.bf16.mxu0 %v2583_v4  ;;  %2433 = vmatprep.mubr.msk.bf16.mxu1 %vm2584_vm8, %v2583_v4  ;;  %v2538_v17 = vld [vmem:[%s2721_s17 + $0x28] sm:$0xff]   ;;  %v2539_v18 = vld [vmem:[%s2721_s17 + $0x30] sm:$0xff]   ;;  %v2540_v19 = vld [vmem:[%s2721_s17 + $0x38] sm:$0xff]  }
 0xaab   : > { %2418 = vmatpush3.bf16.msra.mxu1 %v2533_v12  ;;  %v2230_v20 = vld [vmem:[%s605_s29] ss:$0 sm:$0xff] }
 0xaac   : > { %2419 = vmatprep.subr.bf16.mxu1 %v2583_v4 }
 0xaad   : > { %2408 = vmatpush3.bf16.msra.mxu0 %v2530_v5  ;;  %v1878_v11 = vld [vmem:[#allocation4] sm:$0xff] }
 0xaae   : > { %2409 = vmatprep.subr.bf16.mxu0 %v2583_v4 }
 0xaaf   : > { %2420 = vmatpush3.bf16.msra.mxu1 %v2534_v13 }
 0xab0   : > { %2421 = vmatprep.subr.bf16.mxu1 %v2583_v4 }
 0xab1   : > { %2410 = vmatpush3.bf16.msra.mxu0 %v2531_v6 }
 0xab2   : > { %2411 = vmatprep.subr.bf16.mxu0 %v2583_v4 }
 0xab3   : > { %2422 = vmatpush3.bf16.msra.mxu1 %v2535_v14  ;;  %v2017_v14 = vld [vmem:[%s3061_s16] sm:$0xff] }
 0xab4   : > { %2423 = vmatprep.subr.bf16.mxu1 %v2583_v4 }
 0xab5   : > { %2412 = vmatpush3.bf16.msra.mxu0 %v2532_v10 }
 0xab7   : > { %2424 = vmatpush3.bf16.msra.mxu1 %v2536_v15 }
 0xab8   : > { %2414 = vmatmul.mubr.msk.bf16.vlgmr.msra.gmra.mrb[0].mxu0 %vm1918_vm9, %v1878_v11  ;;  %2425 = vmatprep.subr.bf16.mxu1 %v2583_v4 }
 0xabb   : > { %2426 = vmatpush3.bf16.msra.mxu1 %v2537_v16  ;;  %v2018_v16 = vld [vmem:[%s3061_s16 + $0x8] sm:$0xff] }
 0xabc   : > { %2427 = vmatprep.subr.bf16.mxu1 %v2583_v4 }
 0xabf   : > { %2428 = vmatpush3.bf16.msra.mxu1 %v2538_v17 }
 0xac0   : > { %2429 = vmatprep.subr.bf16.mxu1 %v2583_v4 }
 0xac3   : > { %2430 = vmatpush3.bf16.msra.mxu1 %v2539_v18 }
 0xac4   : > { %2431 = vmatprep.subr.bf16.mxu1 %v2583_v4 }
 0xac7   : > { %2432 = vmatpush3.bf16.msra.mxu1 %v2540_v19 }
 0xb8b   : > { %v1956_v21 = vpop.f32.mrb[0].mxu0 }
 0xb8c   : > { %v1957_v50 = vadd.f32 %v2230_v20, %v1956_v21  ;;  %v2415_v22 = vpop.f32.mrb[1].mxu0 }
 0xb8d   : > { %v1959_v23 = vpop.f32.mrb[2].mxu0 }
 0xb8e   : > { %v1965_v24 = vmul.f32 0.70710677, %v1957_v50  ;;  %v1960_v25 = vadd.f32 %v2230_v20, %v1959_v23  ;;  %v2416_v26 = vpop.f32.mrb[3].mxu0  ;;  %v1963_v5 = vmul.f32 0.5, %v1957_v50 }
 0xb90   : > { %v1967_v27 = vand.u32 2147483647, %v1965_v24  ;;  %v1966_v28 = vmul.f32 0.70710677, %v1960_v25  ;;  %vm2007_vm10 = vcmp.ge.f32.partialorder %v1965_v24, 0.0  ;;  %v1964_v6 = vmul.f32 0.5, %v1960_v25 }
 0xb92   : > { %v1969_v29 = vmul.f32 0.3275911, %v1967_v27  ;;  %v1968_v30 = vand.u32 2147483647, %v1966_v28  ;;  %v1995_v34 = vsub.f32 0.0, %v1967_v27  ;;  %vm2008_vm11 = vcmp.ge.f32.partialorder %v1966_v28, 0.0 }
 0xb94   : > { %v1971_v31 = vadd.f32 1.0, %v1969_v29  ;;  %v1970_v32 = vmul.f32 0.3275911, %v1968_v30  ;;  %v1996_v35 = vsub.f32 0.0, %v1968_v30  ;;  %v1997_v37 = vmul.f32 %v1995_v34, %v1967_v27 }
 0xb96   : > { %2541 = vrcp.f32 %v1971_v31  ;;  %v1972_v33 = vadd.f32 1.0, %v1970_v32  ;;  %v1998_v41 = vmul.f32 %v1996_v35, %v1968_v30  ;;  %v1999_v8 = vmul.f32 1.442695, %v1997_v37 }
 0xb98   : > { %2543 = vrcp.f32 %v1972_v33  ;;  %v2001_v44 = vmul.f32 1.442695, %v1998_v41 }
 0xb99   : > { %2545 = vpow2.f32 %v1999_v8 }
 0xb9a   : > { %2547 = vpow2.f32 %v2001_v44 }
 0xba0   : > { %v2542_v36 = vpop.eup %2541 }
 0xba1   : > { %v1977_v38 = vmul.f32 1.0614054, %v2542_v36 }
 0xba2   : > { %v2544_v39 = vpop.eup %2543 }
 0xba3   : > { %v1979_v40 = vadd.f32 -1.4531521, %v1977_v38  ;;  %v1978_v7 = vmul.f32 1.0614054, %v2544_v39  ;;  %v2546_v56 = vpop.eup %2545 }
 0xba4   : > { %v2548_v60 = vpop.eup %2547 }
 0xba5   : > { %v1981_v9 = vmul.f32 %v2542_v36, %v1979_v40  ;;  %v1980_v42 = vadd.f32 -1.4531521, %v1978_v7 }
 0xba7   : > { %v1983_v43 = vadd.f32 1.4214138, %v1981_v9  ;;  %v1982_v45 = vmul.f32 %v2544_v39, %v1980_v42 }
 0xba9   : > { %v1985_v46 = vmul.f32 %v2542_v36, %v1983_v43  ;;  %v1984_v47 = vadd.f32 1.4214138, %v1982_v45 }
 0xbab   : > { %v1987_v48 = vadd.f32 -0.28449672, %v1985_v46  ;;  %v1986_v49 = vmul.f32 %v2544_v39, %v1984_v47 }
 0xbad   : > { %v1989_v51 = vmul.f32 %v2542_v36, %v1987_v48  ;;  %v1988_v52 = vadd.f32 -0.28449672, %v1986_v49 }
 0xbaf   : > { %v1991_v53 = vadd.f32 0.2548296, %v1989_v51  ;;  %v1990_v54 = vmul.f32 %v2544_v39, %v1988_v52 }
 0xbb1   : > { %v1993_v55 = vmul.f32 %v2542_v36, %v1991_v53  ;;  %v1992_v57 = vadd.f32 0.2548296, %v1990_v54 }
 0xbb3   : > { %v2003_v58 = vmul.f32 %v2546_v56, %v1993_v55  ;;  %v1994_v59 = vmul.f32 %v2544_v39, %v1992_v57 }
 0xbb5   : > { %v2005_v61 = vsub.f32 1.0, %v2003_v58  ;;  %v2004_v62 = vmul.f32 %v2548_v60, %v1994_v59 }
 0xbb7   : > { %v2009_v63 = vsub.f32 0.0, %v2005_v61  ;;  %v2006_v0 = vsub.f32 1.0, %v2004_v62 }
 0xbb9   : > { %v2011_v1 = vsel %vm2007_vm10, %v2005_v61, %v2009_v63  ;;  %v2010_v2 = vsub.f32 0.0, %v2006_v0 }
 0xbba   : > { %v2013_v3 = vadd.f32 1.0, %v2011_v1 }
 0xbbb   : > { %v2012_v4 = vsel %vm2008_vm11, %v2006_v0, %v2010_v2 }
 0xbbc   : > { %v2014_v10 = vadd.f32 1.0, %v2012_v4  ;;  %v2015_v11 = vmul.f32 %v2013_v3, %v1963_v5 }
 0xbbe   : > { %v2016_v12 = vmul.f32 %v2014_v10, %v1964_v6 }
 0xbc0   : > { %v2019_v13 = vpack.c.bf16 %v2016_v12, %v2015_v11 }
 0xbc2   : > { %2434 = vmatmul.mubr.bf16.vlgmr.msra.gmra.mrb[0].mxu1 %v2019_v13 }
 0xc95   : > { %v2118_v15 = vpop.f32.mrb[0].mxu1 }
 0xc96   : > { %v2125_v17 = vadd.f32 %v2118_v15, %v2017_v14  ;;  %v2435_v18 = vpop.f32.mrb[1].mxu1 }
 0xc97   : > { %v2121_v19 = vpop.f32.mrb[2].mxu1 }
 0xc98   : > { %2127 = vst.msk [vmem:[%s3061_s16] sm:$0xff] %vm1918_vm9, %v2125_v17  ;;  %v2126_v20 = vadd.f32 %v2121_v19, %v2018_v16  ;;  %v2436_v21 = vpop.f32.mrb[3].mxu1 }
 0xc9a   : > { %2128 = vst.msk [vmem:[%s3061_s16 + $0x8] sm:$0xff] %vm1918_vm9, %v2126_v20 }
 0xc9b PF: > { %s3068_s20 = sld [smem:[#allocation6_spill]]  ;;  %p23_p11 = scmp.ge.s32.totalorder %s2689_s15, 4  }
 0xc9c   : > { %s3069_s21 = smov %s2567_s22  ;;  %s3071_s23 = smov %s2689_s15 }
 0xc9d   :  { %25 = sbr.rel (!%p23_p11) target bundleno = 5 (0x5), region = 166 }
 0xca1   : > { %s3070_s22 = smov %s3068_s20 }

</bundles_post_ra>
